<compile_context>
chip_gen: v7x
topology: tpu7x:2x2x1
jax: 0.10.0
libtpu: 0.0.40
codegen_flags: <defaults>
</compile_context>

<pallas_src>
import functools

import jax
import jax.numpy as jnp
from jax.experimental import pallas as pl
from jax.experimental.pallas import tpu as pltpu


def _round_up(x, m):
    return (x + m - 1) // m * m


# TODO(synk): verify LayerNorm eps against the checkpoint (ImageBind ViT uses 1e-6).
def _layernorm(x, gamma, beta, eps=1e-6):
    mu = jnp.mean(x, axis=-1, keepdims=True)
    xc = x - mu
    var = jnp.mean(xc * xc, axis=-1, keepdims=True)
    return xc * jax.lax.rsqrt(var + eps) * gamma + beta


# --------------------------------------------------------------------------
# Single fused kernel: patch-embed (layer 0) -> all transformer blocks ->
# final LN + head + L2 normalize (last layer).  grid = (depth,), the sequence
# lives in a VMEM scratch, per-layer weights stream behind compute.
# --------------------------------------------------------------------------
def vit_kernel(patches_ref, wp_ref, add_ref,
               g1_ref, b1_ref, wqkv_ref, bqkv_ref, wo_ref, bo_ref,
               g2_ref, b2_ref, w1_ref, bb1_ref, w2_ref, bb2_ref,
               gf_ref, bf_ref, wh_ref,
               emb_ref, seq_ref, *, num_heads, seq_act):
    layer = pl.program_id(0)
    depth = pl.num_programs(0)

    B, Sp, D = seq_ref.shape
    P_pad = patches_ref.shape[2]
    M = B * Sp
    dh = D // num_heads
    scale = 1.0 / (dh ** 0.5)
    cls_row = seq_act - 1          # cls token stored at the last REAL row (aligned)

    # ---- layer 0: fused patch-embed matmul + (bias + cls + pos) additive term ----
    @pl.when(layer == 0)
    def _():
        p2 = patches_ref[...].reshape(M, P_pad).astype(jnp.bfloat16)
        tok = jnp.dot(p2, wp_ref[...], preferred_element_type=jnp.float32)
        seq_ref[...] = tok.reshape(B, Sp, D) + add_ref[...]     # one aligned store

    x2 = seq_ref[...].reshape(M, D)                             # (M, D) f32

    # ---- attention sub-block (pre-LN) ----
    xn = _layernorm(x2, g1_ref[0], b1_ref[0])
    qkv = jnp.dot(xn.astype(jnp.bfloat16), wqkv_ref[0],
                  preferred_element_type=jnp.float32) + bqkv_ref[0]      # (M, 3D)
    qkv3 = qkv.reshape(B, Sp, 3 * D)

    # additive mask: padded key rows (>= seq_act) contribute nothing to softmax
    kidx = jax.lax.broadcasted_iota(jnp.int32, (1, 1, Sp), 2)
    kbias = jnp.where(kidx < seq_act, 0.0, -1e30).astype(jnp.float32)

    wo = wo_ref[0]                                                       # (D, D) bf16
    attn = jnp.zeros((M, D), jnp.float32)
    for h in range(num_heads):     # static unroll; heads are lane-aligned slices
        q_h = qkv3[:, :, h * dh:(h + 1) * dh].astype(jnp.bfloat16)
        k_h = qkv3[:, :, D + h * dh:D + (h + 1) * dh].astype(jnp.bfloat16)
        v_h = qkv3[:, :, 2 * D + h * dh:2 * D + (h + 1) * dh].astype(jnp.bfloat16)
        s = jnp.einsum('bqd,bkd->bqk', q_h, k_h,
                       preferred_element_type=jnp.float32) * scale + kbias
        s = s - jnp.max(s, axis=-1, keepdims=True)
        p = jnp.exp(s)
        # TODO(synk): approx EUP reciprocal; use exact divide for bit-parity checks.
        p = p * pl.reciprocal(jnp.sum(p, axis=-1, keepdims=True), approx=True)
        ctx = jnp.einsum('bqk,bkd->bqd', p.astype(jnp.bfloat16), v_h,
                         preferred_element_type=jnp.float32)             # (B, Sp, dh)
        # fold the per-head output projection: sum_h ctx_h @ Wo[h*dh:(h+1)*dh, :]
        attn = attn + jnp.dot(ctx.reshape(M, dh).astype(jnp.bfloat16),
                              wo[h * dh:(h + 1) * dh, :],
                              preferred_element_type=jnp.float32)
    x2 = x2 + attn + bo_ref[0]

    # ---- MLP sub-block (pre-LN) ----
    xn2 = _layernorm(x2, g2_ref[0], b2_ref[0])
    h1 = jnp.dot(xn2.astype(jnp.bfloat16), w1_ref[0],
                 preferred_element_type=jnp.float32) + bb1_ref[0]
    # TODO(synk): ImageBind's ViT uses exact erf GELU; tanh approximation used here.
    h1 = jax.nn.gelu(h1, approximate=True)
    h2 = jnp.dot(h1.astype(jnp.bfloat16), w2_ref[0],
                 preferred_element_type=jnp.float32) + bb2_ref[0]
    x2 = x2 + h2
    seq_ref[...] = x2.reshape(B, Sp, D)

    # ---- last layer: final LN on cls token + linear head + L2 normalize ----
    @pl.when(layer == depth - 1)
    def _():
        cls = x2.reshape(B, Sp, D)[:, cls_row, :]                        # (B, D)
        cn = _layernorm(cls, gf_ref[...], bf_ref[...])
        e = jnp.dot(cn.astype(jnp.bfloat16), wh_ref[...],
                    preferred_element_type=jnp.float32)                  # (B, E)
        inv = jax.lax.rsqrt(jnp.sum(e * e, axis=-1, keepdims=True) + 1e-12)
        emb_ref[...] = e * inv


def imagebind_vision_forward(x_nchw, params, *, patch, num_heads):
    B, C, H, W = x_nchw.shape
    p = patch
    nH, nW = H // p, W // p
    N = nH * nW
    P = C * p * p

    P_pad, D = params["w_patch"].shape
    depth = params["w_qkv"].shape[0]
    Dm = params["w_1"].shape[2]
    E = params["w_head"].shape[1]
    S_act = N + 1
    S_pad = _round_up(S_act, 8)

    # im2col (stride-p patch conv as matmul), flattened (C, ph, pw) to match the
    # conv-weight flattening order; zero-pad contraction dim -> P_pad and rows -> S_pad.
    patches = x_nchw.reshape(B, C, nH, p, nW, p)
    patches = patches.transpose(0, 2, 4, 1, 3, 5).reshape(B, N, P)
    patches = jnp.pad(patches, ((0, 0), (0, S_pad - N), (0, P_pad - P)))

    # Per-row additive term: bias+pos for patch rows, cls+pos_cls at row N, zeros pad.
    add = jnp.concatenate([
        params["b_patch"] + params["pos_embed"][1:],
        params["cls_token"] + params["pos_embed"][0:1],
        jnp.zeros((S_pad - S_act, D), jnp.float32),
    ], axis=0)

    def wspec(d0, d1):
        return pl.BlockSpec((1, d0, d1), lambda l: (l, 0, 0))

    in_specs = [
        pl.BlockSpec((B, S_pad, P_pad), lambda l: (0, 0, 0)),   # patches (constant)
        pl.BlockSpec((P_pad, D), lambda l: (0, 0)),             # w_patch (constant)
        pl.BlockSpec((S_pad, D), lambda l: (0, 0)),             # add     (constant)
        wspec(1, D), wspec(1, D),                               # ln1 gamma/beta
        wspec(D, 3 * D), wspec(1, 3 * D),                       # Wqkv, bqkv
        wspec(D, D), wspec(1, D),                               # Wo, bo
        wspec(1, D), wspec(1, D),                               # ln2 gamma/beta
        wspec(D, Dm), wspec(1, Dm),                             # W1, b1
        wspec(Dm, D), wspec(1, D),                              # W2, b2
        pl.BlockSpec((1, D), lambda l: (0, 0)),                 # ln_f gamma (constant)
        pl.BlockSpec((1, D), lambda l: (0, 0)),                 # ln_f beta  (constant)
        pl.BlockSpec((D, E), lambda l: (0, 0)),                 # w_head     (constant)
    ]

    M = B * S_pad
    dh = D // num_heads
    flops = (2 * M * P_pad * D
             + depth * (2 * M * D * 3 * D + 2 * M * D * D + 4 * M * D * Dm
                        + 4 * B * num_heads * S_pad * S_pad * dh)
             + 2 * B * D * E)
    transcend = depth * (B * num_heads * S_pad * S_pad + M * Dm)
    bytes_acc = (B * S_pad * P_pad * 4 + P_pad * D * 2 + S_pad * D * 4
                 + depth * 2 * (D * 3 * D + D * D + 2 * D * Dm)      # bf16 weights x1
                 + depth * 4 * (3 * D + 7 * D + Dm)                  # f32 biases / LN
                 + 2 * D * 4 + D * E * 2 + B * E * 4)

    return pl.pallas_call(
        functools.partial(vit_kernel, num_heads=num_heads, seq_act=S_act),
        grid_spec=pltpu.PrefetchScalarGridSpec(
            num_scalar_prefetch=0,
            grid=(depth,),
            in_specs=in_specs,
            out_specs=pl.BlockSpec((B, E), lambda l: (0, 0)),
            scratch_shapes=[pltpu.VMEM((B, S_pad, D), jnp.float32)],
        ),
        out_shape=jax.ShapeDtypeStruct((B, E), jnp.float32),
        compiler_params=pltpu.CompilerParams(
            dimension_semantics=("arbitrary",),
            # actual need ~4 MiB at these shapes; 32 MiB leaves headroom on every gen
            # and never claims all of v7x's 64 MiB physical VMEM.
            vmem_limit_bytes=32 * 1024 * 1024,
        ),
        cost_estimate=pl.CostEstimate(
            flops=flops, transcendentals=transcend, bytes_accessed=bytes_acc),
    )(patches, params["w_patch"], add,
      params["ln1_g"], params["ln1_b"], params["w_qkv"], params["b_qkv"],
      params["w_o"], params["b_o"], params["ln2_g"], params["ln2_b"],
      params["w_1"], params["b_1"], params["w_2"], params["b_2"],
      params["ln_f_g"], params["ln_f_b"], params["w_head"])


# --------------------------------------------------------------------------
# Deterministic parameter construction (per-layer weights stacked on depth axis)
# --------------------------------------------------------------------------
def make_params(key, *, C, patch, D, depth, mlp_ratio, embed_dim, num_patches):
    P = C * patch * patch
    P_pad = _round_up(P, 128)
    Dm = D * mlp_ratio
    keys = jax.random.split(key, 8)

    def init(k, shape, scale=0.02, dtype=jnp.float32):
        return (scale * jax.random.normal(k, shape)).astype(dtype)

    # patch-conv weight: real rows 0..P-1, zero rows up to P_pad (matches zero-padded
    # im2col columns, so the padding is exact-identity).
    w_patch = jnp.zeros((P_pad, D), jnp.float32).at[:P].set(init(keys[0], (P, D)))

    kb = jax.random.split(keys[7], 4)
    return {
        "w_patch": w_patch.astype(jnp.bfloat16),
        "b_patch": jnp.zeros((1, D), jnp.float32),
        "cls_token": init(keys[1], (1, D)),
        "pos_embed": init(keys[2], (num_patches + 1, D)),   # row 0 = cls position
        "ln_f_g": jnp.ones((1, D), jnp.float32),
        "ln_f_b": jnp.zeros((1, D), jnp.float32),
        "w_head": init(keys[3], (D, embed_dim), dtype=jnp.bfloat16),
        "ln1_g": jnp.ones((depth, 1, D), jnp.float32),
        "ln1_b": jnp.zeros((depth, 1, D), jnp.float32),
        "w_qkv": init(kb[0], (depth, D, 3 * D), dtype=jnp.bfloat16),
        "b_qkv": jnp.zeros((depth, 1, 3 * D), jnp.float32),
        "w_o": init(kb[1], (depth, D, D), dtype=jnp.bfloat16),
        "b_o": jnp.zeros((depth, 1, D), jnp.float32),
        "ln2_g": jnp.ones((depth, 1, D), jnp.float32),
        "ln2_b": jnp.zeros((depth, 1, D), jnp.float32),
        "w_1": init(kb[2], (depth, D, Dm), dtype=jnp.bfloat16),
        "b_1": jnp.zeros((depth, 1, Dm), jnp.float32),
        "w_2": init(kb[3], (depth, Dm, D), dtype=jnp.bfloat16),
        "b_2": jnp.zeros((depth, 1, D), jnp.float32),
    }


if __name__ == "__main__":
    # Small synthetic, lane-aligned shapes consistent with the ViT vision encoder.
    B, C, H, W = 2, 3, 32, 32
    patch = 8
    D = 256           # hidden width, lane-dense (ImageBind-huge: 1280)
    depth = 2         # transformer blocks (huge: 32)
    num_heads = 2     # head dim = 128, lane-dense (huge: 16 heads x 80 -> pad to 128)
    mlp_ratio = 4
    embed_dim = 256   # output embedding dim (huge: 1024)
    num_patches = (H // patch) * (W // patch)

    key = jax.random.PRNGKey(0)
    k_x, k_p = jax.random.split(key)
    x = jax.random.normal(k_x, (B, C, H, W), dtype=jnp.float32)
    params = make_params(k_p, C=C, patch=patch, D=D, depth=depth,
                         mlp_ratio=mlp_ratio, embed_dim=embed_dim,
                         num_patches=num_patches)

    out = imagebind_vision_forward(x, params, patch=patch, num_heads=num_heads)
    out = jax.block_until_ready(out)
    assert out.shape == (B, embed_dim)
    assert bool(jnp.all(jnp.isfinite(out)))
    print("KERNEL_OK")
</pallas_src>

<mosaic_0001>
module attributes {stable_mosaic.version = 11 : i64} {
  func.func @vit_kernel(%arg0: i32, %arg1: memref<2x24x256xf32, #tpu.memory_space<vmem>>, %arg2: memref<256x256xbf16, #tpu.memory_space<vmem>>, %arg3: memref<24x256xf32, #tpu.memory_space<vmem>>, %arg4: memref<1x1x256xf32, #tpu.memory_space<vmem>>, %arg5: memref<1x1x256xf32, #tpu.memory_space<vmem>>, %arg6: memref<1x256x768xbf16, #tpu.memory_space<vmem>>, %arg7: memref<1x1x768xf32, #tpu.memory_space<vmem>>, %arg8: memref<1x256x256xbf16, #tpu.memory_space<vmem>>, %arg9: memref<1x1x256xf32, #tpu.memory_space<vmem>>, %arg10: memref<1x1x256xf32, #tpu.memory_space<vmem>>, %arg11: memref<1x1x256xf32, #tpu.memory_space<vmem>>, %arg12: memref<1x256x1024xbf16, #tpu.memory_space<vmem>>, %arg13: memref<1x1x1024xf32, #tpu.memory_space<vmem>>, %arg14: memref<1x1024x256xbf16, #tpu.memory_space<vmem>>, %arg15: memref<1x1x256xf32, #tpu.memory_space<vmem>>, %arg16: memref<1x256xf32, #tpu.memory_space<vmem>>, %arg17: memref<1x256xf32, #tpu.memory_space<vmem>>, %arg18: memref<256x256xbf16, #tpu.memory_space<vmem>>, %arg19: memref<2x256xf32, #tpu.memory_space<vmem>>, %arg20: memref<2x24x256xf32, #tpu.memory_space<vmem>>) attributes {dimension_semantics = [#tpu.dimension_semantics<arbitrary>], iteration_bounds = array<i64: 2>, scalar_prefetch = 0 : i64, scratch_operands = 1 : i64, tpu.core_type = #tpu.core_type<tc>, window_params = [{pipeline_mode = #tpu.pipeline_mode<synchronous>, transform_indices = @transform_0, window_bounds = array<i64: 2, 24, 256>}, {pipeline_mode = #tpu.pipeline_mode<synchronous>, transform_indices = @transform_1, window_bounds = array<i64: 256, 256>}, {pipeline_mode = #tpu.pipeline_mode<synchronous>, transform_indices = @transform_2, window_bounds = array<i64: 24, 256>}, {transform_indices = @transform_3, window_bounds = array<i64: 1, 1, 256>}, {transform_indices = @transform_4, window_bounds = array<i64: 1, 1, 256>}, {transform_indices = @transform_5, window_bounds = array<i64: 1, 256, 768>}, {transform_indices = @transform_6, window_bounds = array<i64: 1, 1, 768>}, {transform_indices = @transform_7, window_bounds = array<i64: 1, 256, 256>}, {transform_indices = @transform_8, window_bounds = array<i64: 1, 1, 256>}, {transform_indices = @transform_9, window_bounds = array<i64: 1, 1, 256>}, {transform_indices = @transform_10, window_bounds = array<i64: 1, 1, 256>}, {transform_indices = @transform_11, window_bounds = array<i64: 1, 256, 1024>}, {transform_indices = @transform_12, window_bounds = array<i64: 1, 1, 1024>}, {transform_indices = @transform_13, window_bounds = array<i64: 1, 1024, 256>}, {transform_indices = @transform_14, window_bounds = array<i64: 1, 1, 256>}, {pipeline_mode = #tpu.pipeline_mode<synchronous>, transform_indices = @transform_15, window_bounds = array<i64: 1, 256>}, {pipeline_mode = #tpu.pipeline_mode<synchronous>, transform_indices = @transform_16, window_bounds = array<i64: 1, 256>}, {pipeline_mode = #tpu.pipeline_mode<synchronous>, transform_indices = @transform_17, window_bounds = array<i64: 256, 256>}, {pipeline_mode = #tpu.pipeline_mode<synchronous>, transform_indices = @transform_18, window_bounds = array<i64: 2, 256>}]} {
    %c0_i32 = arith.constant 0 : i32
    %0 = arith.cmpi eq, %arg0, %c0_i32 : i32
    %1 = arith.extui %0 : i1 to i32
    %c0_i32_0 = arith.constant 0 : i32
    %2 = arith.cmpi ne, %1, %c0_i32_0 : i32
    scf.if %2 {
      %c0_74 = arith.constant 0 : index
      %c0_75 = arith.constant 0 : index
      %c0_76 = arith.constant 0 : index
      %167 = vector.load %arg1[%c0_74, %c0_75, %c0_76] : memref<2x24x256xf32, #tpu.memory_space<vmem>>, vector<2x24x256xf32>
      %168 = vector.shape_cast %167 : vector<2x24x256xf32> to vector<48x256xf32>
      %169 = arith.truncf %168 : vector<48x256xf32> to vector<48x256xbf16>
      %c0_77 = arith.constant 0 : index
      %c0_78 = arith.constant 0 : index
      %170 = vector.load %arg2[%c0_77, %c0_78] : memref<256x256xbf16, #tpu.memory_space<vmem>>, vector<256x256xbf16>
      %cst_79 = arith.constant dense<0.000000e+00> : vector<48x256xf32>
      %171 = tpu.matmul %169, %170, %cst_79 {dimension_numbers = #tpu.dot_dimension_numbers<[1], [0], [0], [1], [0, 0, 1, 1], [], []>} : vector<48x256xbf16>, vector<256x256xbf16>, vector<48x256xf32> -> vector<48x256xf32>
      %172 = vector.shape_cast %171 : vector<48x256xf32> to vector<2x24x256xf32>
      %c0_80 = arith.constant 0 : index
      %c0_81 = arith.constant 0 : index
      %173 = vector.load %arg3[%c0_80, %c0_81] : memref<24x256xf32, #tpu.memory_space<vmem>>, vector<24x256xf32>
      %174 = vector.shape_cast %173 : vector<24x256xf32> to vector<1x24x256xf32>
      %175 = vector.broadcast %174 : vector<1x24x256xf32> to vector<2x24x256xf32>
      %176 = arith.addf %172, %175 : vector<2x24x256xf32>
      %c0_82 = arith.constant 0 : index
      %c0_83 = arith.constant 0 : index
      %c0_84 = arith.constant 0 : index
      %177 = vector.load %arg20[%c0_82, %c0_83, %c0_84] : memref<2x24x256xf32, #tpu.memory_space<vmem>>, vector<2x24x256xf32>
      tpu.vector_store %arg20[%c0_82, %c0_83, %c0_84], %176 {strides = array<i32>} : memref<2x24x256xf32, #tpu.memory_space<vmem>>, vector<2x24x256xf32>,
    } else {
    }
    %c0 = arith.constant 0 : index
    %c0_1 = arith.constant 0 : index
    %c0_2 = arith.constant 0 : index
    %3 = vector.load %arg20[%c0, %c0_1, %c0_2] : memref<2x24x256xf32, #tpu.memory_space<vmem>>, vector<2x24x256xf32>
    %4 = vector.shape_cast %3 : vector<2x24x256xf32> to vector<48x256xf32>
    %c0_3 = arith.constant 0 : index
    %c0_4 = arith.constant 0 : index
    %c0_5 = arith.constant 0 : index
    %5 = vector.load %arg4[%c0_3, %c0_4, %c0_5] : memref<1x1x256xf32, #tpu.memory_space<vmem>>, vector<1x1x256xf32>
    %6 = vector.shape_cast %5 : vector<1x1x256xf32> to vector<1x256xf32>
    %c0_6 = arith.constant 0 : index
    %c0_7 = arith.constant 0 : index
    %c0_8 = arith.constant 0 : index
    %7 = vector.load %arg5[%c0_6, %c0_7, %c0_8] : memref<1x1x256xf32, #tpu.memory_space<vmem>>, vector<1x1x256xf32>
    %8 = vector.shape_cast %7 : vector<1x1x256xf32> to vector<1x256xf32>
    %cst = arith.constant dense<0.000000e+00> : vector<48xf32>
    %9 = vector.multi_reduction <add>, %4, %cst [1] : vector<48x256xf32> to vector<48xf32>
    %10 = vector.shape_cast %9 : vector<48xf32> to vector<48x1xf32>
    %cst_9 = arith.constant 2.560000e+02 : f32
    %11 = vector.broadcast %cst_9 : f32 to vector<48x1xf32>
    %12 = arith.divf %10, %11 : vector<48x1xf32>
    %13 = vector.broadcast %12 : vector<48x1xf32> to vector<48x256xf32>
    %14 = arith.subf %4, %13 : vector<48x256xf32>
    %15 = arith.mulf %14, %14 : vector<48x256xf32>
    %cst_10 = arith.constant dense<0.000000e+00> : vector<48xf32>
    %16 = vector.multi_reduction <add>, %15, %cst_10 [1] : vector<48x256xf32> to vector<48xf32>
    %17 = vector.shape_cast %16 : vector<48xf32> to vector<48x1xf32>
    %cst_11 = arith.constant 2.560000e+02 : f32
    %18 = vector.broadcast %cst_11 : f32 to vector<48x1xf32>
    %19 = arith.divf %17, %18 : vector<48x1xf32>
    %cst_12 = arith.constant 9.99999997E-7 : f32
    %20 = vector.broadcast %cst_12 : f32 to vector<48x1xf32>
    %21 = arith.addf %19, %20 : vector<48x1xf32>
    %22 = math.rsqrt %21 : vector<48x1xf32>
    %23 = vector.broadcast %22 : vector<48x1xf32> to vector<48x256xf32>
    %24 = arith.mulf %14, %23 : vector<48x256xf32>
    %25 = vector.broadcast %6 : vector<1x256xf32> to vector<48x256xf32>
    %26 = arith.mulf %24, %25 : vector<48x256xf32>
    %27 = vector.broadcast %8 : vector<1x256xf32> to vector<48x256xf32>
    %28 = arith.addf %26, %27 : vector<48x256xf32>
    %29 = arith.truncf %28 : vector<48x256xf32> to vector<48x256xbf16>
    %c0_13 = arith.constant 0 : index
    %c0_14 = arith.constant 0 : index
    %c0_15 = arith.constant 0 : index
    %30 = vector.load %arg6[%c0_13, %c0_14, %c0_15] : memref<1x256x768xbf16, #tpu.memory_space<vmem>>, vector<1x256x768xbf16>
    %31 = vector.shape_cast %30 : vector<1x256x768xbf16> to vector<256x768xbf16>
    %cst_16 = arith.constant dense<0.000000e+00> : vector<48x768xf32>
    %32 = tpu.matmul %29, %31, %cst_16 {dimension_numbers = #tpu.dot_dimension_numbers<[1], [0], [0], [1], [0, 0, 1, 1], [], []>} : vector<48x256xbf16>, vector<256x768xbf16>, vector<48x768xf32> -> vector<48x768xf32>
    %c0_17 = arith.constant 0 : index
    %c0_18 = arith.constant 0 : index
    %c0_19 = arith.constant 0 : index
    %33 = vector.load %arg7[%c0_17, %c0_18, %c0_19] : memref<1x1x768xf32, #tpu.memory_space<vmem>>, vector<1x1x768xf32>
    %34 = vector.shape_cast %33 : vector<1x1x768xf32> to vector<1x768xf32>
    %35 = vector.broadcast %34 : vector<1x768xf32> to vector<48x768xf32>
    %36 = arith.addf %32, %35 : vector<48x768xf32>
    %37 = vector.shape_cast %36 : vector<48x768xf32> to vector<2x24x768xf32>
    %38 = tpu.iota {dimensions = array<i32: 2>} : vector<1x1x24xi32>
    %c17_i32 = arith.constant 17 : i32
    %39 = vector.broadcast %c17_i32 : i32 to vector<1x1x24xi32>
    %40 = arith.cmpi slt, %38, %39 : vector<1x1x24xi32>
    %cst_20 = arith.constant 0.000000e+00 : f32
    %cst_21 = arith.constant -1.000000e+30 : f32
    %41 = vector.broadcast %cst_20 : f32 to vector<1x1x24xf32>
    %42 = vector.broadcast %cst_21 : f32 to vector<1x1x24xf32>
    %43 = arith.select %40, %41, %42 : vector<1x1x24xi1>, vector<1x1x24xf32>
    %c0_22 = arith.constant 0 : index
    %c0_23 = arith.constant 0 : index
    %c0_24 = arith.constant 0 : index
    %44 = vector.load %arg8[%c0_22, %c0_23, %c0_24] : memref<1x256x256xbf16, #tpu.memory_space<vmem>>, vector<1x256x256xbf16>
    %45 = vector.shape_cast %44 : vector<1x256x256xbf16> to vector<256x256xbf16>
    %cst_25 = arith.constant 0.000000e+00 : f32
    %46 = vector.broadcast %cst_25 : f32 to vector<48x256xf32>
    %47 = vector.extract_strided_slice %37 {offsets = [0, 0, 0], sizes = [2, 24, 128], strides = [1, 1, 1]} : vector<2x24x768xf32> to vector<2x24x128xf32>
    %48 = arith.truncf %47 : vector<2x24x128xf32> to vector<2x24x128xbf16>
    %49 = vector.extract_strided_slice %37 {offsets = [0, 0, 256], sizes = [2, 24, 128], strides = [1, 1, 1]} : vector<2x24x768xf32> to vector<2x24x128xf32>
    %50 = arith.truncf %49 : vector<2x24x128xf32> to vector<2x24x128xbf16>
    %51 = vector.extract_strided_slice %37 {offsets = [0, 0, 512], sizes = [2, 24, 128], strides = [1, 1, 1]} : vector<2x24x768xf32> to vector<2x24x128xf32>
    %52 = arith.truncf %51 : vector<2x24x128xf32> to vector<2x24x128xbf16>
    "tpu.trace_start"() <{level = 10 : i32, message = "bqd,bkd->bqk"}> : () -> ()
    %cst_26 = arith.constant dense<0.000000e+00> : vector<2x24x24xf32>
    %53 = tpu.matmul %48, %50, %cst_26 {dimension_numbers = #tpu.dot_dimension_numbers<[2], [2], [1], [1], [0, 0, 0, 1, 1, 1], [0], [0]>} : vector<2x24x128xbf16>, vector<2x24x128xbf16>, vector<2x24x24xf32> -> vector<2x24x24xf32>
    "tpu.trace_stop"() : () -> ()
    %cst_27 = arith.constant 0.0883883461 : f32
    %54 = vector.broadcast %cst_27 : f32 to vector<2x24x24xf32>
    %55 = arith.mulf %53, %54 : vector<2x24x24xf32>
    %56 = vector.broadcast %43 : vector<1x1x24xf32> to vector<2x24x24xf32>
    %57 = arith.addf %55, %56 : vector<2x24x24xf32>
    %cst_28 = arith.constant dense<0xFF800000> : vector<2x24xf32>
    %58 = vector.multi_reduction <maximumf>, %57, %cst_28 [2] : vector<2x24x24xf32> to vector<2x24xf32>
    %59 = vector.shape_cast %58 : vector<2x24xf32> to vector<2x24x1xf32>
    %60 = vector.broadcast %59 : vector<2x24x1xf32> to vector<2x24x24xf32>
    %61 = arith.subf %57, %60 : vector<2x24x24xf32>
    %62 = math.exp %61 : vector<2x24x24xf32>
    %cst_29 = arith.constant dense<0.000000e+00> : vector<2x24xf32>
    %63 = vector.multi_reduction <add>, %62, %cst_29 [2] : vector<2x24x24xf32> to vector<2x24xf32>
    %64 = vector.shape_cast %63 : vector<2x24xf32> to vector<2x24x1xf32>
    %65 = tpu.reciprocal %64 {approx = true} : vector<2x24x1xf32> -> vector<2x24x1xf32>
    %66 = vector.broadcast %65 : vector<2x24x1xf32> to vector<2x24x24xf32>
    %67 = arith.mulf %62, %66 : vector<2x24x24xf32>
    %68 = arith.truncf %67 : vector<2x24x24xf32> to vector<2x24x24xbf16>
    "tpu.trace_start"() <{level = 10 : i32, message = "bqk,bkd->bqd"}> : () -> ()
    %cst_30 = arith.constant dense<0.000000e+00> : vector<2x24x128xf32>
    %69 = tpu.matmul %68, %52, %cst_30 {dimension_numbers = #tpu.dot_dimension_numbers<[2], [1], [1], [2], [0, 0, 0, 1, 1, 2], [0], [0]>} : vector<2x24x24xbf16>, vector<2x24x128xbf16>, vector<2x24x128xf32> -> vector<2x24x128xf32>
    "tpu.trace_stop"() : () -> ()
    %70 = vector.shape_cast %69 : vector<2x24x128xf32> to vector<48x128xf32>
    %71 = arith.truncf %70 : vector<48x128xf32> to vector<48x128xbf16>
    %72 = vector.extract_strided_slice %45 {offsets = [0, 0], sizes = [128, 256], strides = [1, 1]} : vector<256x256xbf16> to vector<128x256xbf16>
    %cst_31 = arith.constant dense<0.000000e+00> : vector<48x256xf32>
    %73 = tpu.matmul %71, %72, %cst_31 {dimension_numbers = #tpu.dot_dimension_numbers<[1], [0], [0], [1], [0, 0, 1, 1], [], []>} : vector<48x128xbf16>, vector<128x256xbf16>, vector<48x256xf32> -> vector<48x256xf32>
    %74 = arith.addf %46, %73 : vector<48x256xf32>
    %75 = vector.extract_strided_slice %37 {offsets = [0, 0, 128], sizes = [2, 24, 128], strides = [1, 1, 1]} : vector<2x24x768xf32> to vector<2x24x128xf32>
    %76 = arith.truncf %75 : vector<2x24x128xf32> to vector<2x24x128xbf16>
    %77 = vector.extract_strided_slice %37 {offsets = [0, 0, 384], sizes = [2, 24, 128], strides = [1, 1, 1]} : vector<2x24x768xf32> to vector<2x24x128xf32>
    %78 = arith.truncf %77 : vector<2x24x128xf32> to vector<2x24x128xbf16>
    %79 = vector.extract_strided_slice %37 {offsets = [0, 0, 640], sizes = [2, 24, 128], strides = [1, 1, 1]} : vector<2x24x768xf32> to vector<2x24x128xf32>
    %80 = arith.truncf %79 : vector<2x24x128xf32> to vector<2x24x128xbf16>
    "tpu.trace_start"() <{level = 10 : i32, message = "bqd,bkd->bqk"}> : () -> ()
    %cst_32 = arith.constant dense<0.000000e+00> : vector<2x24x24xf32>
    %81 = tpu.matmul %76, %78, %cst_32 {dimension_numbers = #tpu.dot_dimension_numbers<[2], [2], [1], [1], [0, 0, 0, 1, 1, 1], [0], [0]>} : vector<2x24x128xbf16>, vector<2x24x128xbf16>, vector<2x24x24xf32> -> vector<2x24x24xf32>
    "tpu.trace_stop"() : () -> ()
    %cst_33 = arith.constant 0.0883883461 : f32
    %82 = vector.broadcast %cst_33 : f32 to vector<2x24x24xf32>
    %83 = arith.mulf %81, %82 : vector<2x24x24xf32>
    %84 = vector.broadcast %43 : vector<1x1x24xf32> to vector<2x24x24xf32>
    %85 = arith.addf %83, %84 : vector<2x24x24xf32>
    %cst_34 = arith.constant dense<0xFF800000> : vector<2x24xf32>
    %86 = vector.multi_reduction <maximumf>, %85, %cst_34 [2] : vector<2x24x24xf32> to vector<2x24xf32>
    %87 = vector.shape_cast %86 : vector<2x24xf32> to vector<2x24x1xf32>
    %88 = vector.broadcast %87 : vector<2x24x1xf32> to vector<2x24x24xf32>
    %89 = arith.subf %85, %88 : vector<2x24x24xf32>
    %90 = math.exp %89 : vector<2x24x24xf32>
    %cst_35 = arith.constant dense<0.000000e+00> : vector<2x24xf32>
    %91 = vector.multi_reduction <add>, %90, %cst_35 [2] : vector<2x24x24xf32> to vector<2x24xf32>
    %92 = vector.shape_cast %91 : vector<2x24xf32> to vector<2x24x1xf32>
    %93 = tpu.reciprocal %92 {approx = true} : vector<2x24x1xf32> -> vector<2x24x1xf32>
    %94 = vector.broadcast %93 : vector<2x24x1xf32> to vector<2x24x24xf32>
    %95 = arith.mulf %90, %94 : vector<2x24x24xf32>
    %96 = arith.truncf %95 : vector<2x24x24xf32> to vector<2x24x24xbf16>
    "tpu.trace_start"() <{level = 10 : i32, message = "bqk,bkd->bqd"}> : () -> ()
    %cst_36 = arith.constant dense<0.000000e+00> : vector<2x24x128xf32>
    %97 = tpu.matmul %96, %80, %cst_36 {dimension_numbers = #tpu.dot_dimension_numbers<[2], [1], [1], [2], [0, 0, 0, 1, 1, 2], [0], [0]>} : vector<2x24x24xbf16>, vector<2x24x128xbf16>, vector<2x24x128xf32> -> vector<2x24x128xf32>
    "tpu.trace_stop"() : () -> ()
    %98 = vector.shape_cast %97 : vector<2x24x128xf32> to vector<48x128xf32>
    %99 = arith.truncf %98 : vector<48x128xf32> to vector<48x128xbf16>
    %100 = vector.extract_strided_slice %45 {offsets = [128, 0], sizes = [128, 256], strides = [1, 1]} : vector<256x256xbf16> to vector<128x256xbf16>
    %cst_37 = arith.constant dense<0.000000e+00> : vector<48x256xf32>
    %101 = tpu.matmul %99, %100, %cst_37 {dimension_numbers = #tpu.dot_dimension_numbers<[1], [0], [0], [1], [0, 0, 1, 1], [], []>} : vector<48x128xbf16>, vector<128x256xbf16>, vector<48x256xf32> -> vector<48x256xf32>
    %102 = arith.addf %74, %101 : vector<48x256xf32>
    %103 = arith.addf %4, %102 : vector<48x256xf32>
    %c0_38 = arith.constant 0 : index
    %c0_39 = arith.constant 0 : index
    %c0_40 = arith.constant 0 : index
    %104 = vector.load %arg9[%c0_38, %c0_39, %c0_40] : memref<1x1x256xf32, #tpu.memory_space<vmem>>, vector<1x1x256xf32>
    %105 = vector.shape_cast %104 : vector<1x1x256xf32> to vector<1x256xf32>
    %106 = vector.broadcast %105 : vector<1x256xf32> to vector<48x256xf32>
    %107 = arith.addf %103, %106 : vector<48x256xf32>
    %c0_41 = arith.constant 0 : index
    %c0_42 = arith.constant 0 : index
    %c0_43 = arith.constant 0 : index
    %108 = vector.load %arg10[%c0_41, %c0_42, %c0_43] : memref<1x1x256xf32, #tpu.memory_space<vmem>>, vector<1x1x256xf32>
    %109 = vector.shape_cast %108 : vector<1x1x256xf32> to vector<1x256xf32>
    %c0_44 = arith.constant 0 : index
    %c0_45 = arith.constant 0 : index
    %c0_46 = arith.constant 0 : index
    %110 = vector.load %arg11[%c0_44, %c0_45, %c0_46] : memref<1x1x256xf32, #tpu.memory_space<vmem>>, vector<1x1x256xf32>
    %111 = vector.shape_cast %110 : vector<1x1x256xf32> to vector<1x256xf32>
    %cst_47 = arith.constant dense<0.000000e+00> : vector<48xf32>
    %112 = vector.multi_reduction <add>, %107, %cst_47 [1] : vector<48x256xf32> to vector<48xf32>
    %113 = vector.shape_cast %112 : vector<48xf32> to vector<48x1xf32>
    %cst_48 = arith.constant 2.560000e+02 : f32
    %114 = vector.broadcast %cst_48 : f32 to vector<48x1xf32>
    %115 = arith.divf %113, %114 : vector<48x1xf32>
    %116 = vector.broadcast %115 : vector<48x1xf32> to vector<48x256xf32>
    %117 = arith.subf %107, %116 : vector<48x256xf32>
    %118 = arith.mulf %117, %117 : vector<48x256xf32>
    %cst_49 = arith.constant dense<0.000000e+00> : vector<48xf32>
    %119 = vector.multi_reduction <add>, %118, %cst_49 [1] : vector<48x256xf32> to vector<48xf32>
    %120 = vector.shape_cast %119 : vector<48xf32> to vector<48x1xf32>
    %cst_50 = arith.constant 2.560000e+02 : f32
    %121 = vector.broadcast %cst_50 : f32 to vector<48x1xf32>
    %122 = arith.divf %120, %121 : vector<48x1xf32>
    %cst_51 = arith.constant 9.99999997E-7 : f32
    %123 = vector.broadcast %cst_51 : f32 to vector<48x1xf32>
    %124 = arith.addf %122, %123 : vector<48x1xf32>
    %125 = math.rsqrt %124 : vector<48x1xf32>
    %126 = vector.broadcast %125 : vector<48x1xf32> to vector<48x256xf32>
    %127 = arith.mulf %117, %126 : vector<48x256xf32>
    %128 = vector.broadcast %109 : vector<1x256xf32> to vector<48x256xf32>
    %129 = arith.mulf %127, %128 : vector<48x256xf32>
    %130 = vector.broadcast %111 : vector<1x256xf32> to vector<48x256xf32>
    %131 = arith.addf %129, %130 : vector<48x256xf32>
    %132 = arith.truncf %131 : vector<48x256xf32> to vector<48x256xbf16>
    %c0_52 = arith.constant 0 : index
    %c0_53 = arith.constant 0 : index
    %c0_54 = arith.constant 0 : index
    %133 = vector.load %arg12[%c0_52, %c0_53, %c0_54] : memref<1x256x1024xbf16, #tpu.memory_space<vmem>>, vector<1x256x1024xbf16>
    %134 = vector.shape_cast %133 : vector<1x256x1024xbf16> to vector<256x1024xbf16>
    %cst_55 = arith.constant dense<0.000000e+00> : vector<48x1024xf32>
    %135 = tpu.matmul %132, %134, %cst_55 {dimension_numbers = #tpu.dot_dimension_numbers<[1], [0], [0], [1], [0, 0, 1, 1], [], []>} : vector<48x256xbf16>, vector<256x1024xbf16>, vector<48x1024xf32> -> vector<48x1024xf32>
    %c0_56 = arith.constant 0 : index
    %c0_57 = arith.constant 0 : index
    %c0_58 = arith.constant 0 : index
    %136 = vector.load %arg13[%c0_56, %c0_57, %c0_58] : memref<1x1x1024xf32, #tpu.memory_space<vmem>>, vector<1x1x1024xf32>
    %137 = vector.shape_cast %136 : vector<1x1x1024xf32> to vector<1x1024xf32>
    %138 = vector.broadcast %137 : vector<1x1024xf32> to vector<48x1024xf32>
    %139 = arith.addf %135, %138 : vector<48x1024xf32>
    %140 = arith.mulf %139, %139 : vector<48x1024xf32>
    %141 = arith.mulf %139, %140 : vector<48x1024xf32>
    %cst_59 = arith.constant 4.471500e-02 : f32
    %142 = vector.broadcast %cst_59 : f32 to vector<48x1024xf32>
    %143 = arith.mulf %142, %141 : vector<48x1024xf32>
    %144 = arith.addf %139, %143 : vector<48x1024xf32>
    %cst_60 = arith.constant 0.797884583 : f32
    %145 = vector.broadcast %cst_60 : f32 to vector<48x1024xf32>
    %146 = arith.mulf %145, %144 : vector<48x1024xf32>
    %147 = math.tanh %146 : vector<48x1024xf32>
    %cst_61 = arith.constant 1.000000e+00 : f32
    %148 = vector.broadcast %cst_61 : f32 to vector<48x1024xf32>
    %149 = arith.addf %148, %147 : vector<48x1024xf32>
    %cst_62 = arith.constant 5.000000e-01 : f32
    %150 = vector.broadcast %cst_62 : f32 to vector<48x1024xf32>
    %151 = arith.mulf %150, %149 : vector<48x1024xf32>
    %152 = arith.mulf %139, %151 : vector<48x1024xf32>
    %153 = arith.truncf %152 : vector<48x1024xf32> to vector<48x1024xbf16>
    %c0_63 = arith.constant 0 : index
    %c0_64 = arith.constant 0 : index
    %c0_65 = arith.constant 0 : index
    %154 = vector.load %arg14[%c0_63, %c0_64, %c0_65] : memref<1x1024x256xbf16, #tpu.memory_space<vmem>>, vector<1x1024x256xbf16>
    %155 = vector.shape_cast %154 : vector<1x1024x256xbf16> to vector<1024x256xbf16>
    %cst_66 = arith.constant dense<0.000000e+00> : vector<48x256xf32>
    %156 = tpu.matmul %153, %155, %cst_66 {dimension_numbers = #tpu.dot_dimension_numbers<[1], [0], [0], [1], [0, 0, 1, 1], [], []>} : vector<48x1024xbf16>, vector<1024x256xbf16>, vector<48x256xf32> -> vector<48x256xf32>
    %c0_67 = arith.constant 0 : index
    %c0_68 = arith.constant 0 : index
    %c0_69 = arith.constant 0 : index
    %157 = vector.load %arg15[%c0_67, %c0_68, %c0_69] : memref<1x1x256xf32, #tpu.memory_space<vmem>>, vector<1x1x256xf32>
    %158 = vector.shape_cast %157 : vector<1x1x256xf32> to vector<1x256xf32>
    %159 = vector.broadcast %158 : vector<1x256xf32> to vector<48x256xf32>
    %160 = arith.addf %156, %159 : vector<48x256xf32>
    %161 = arith.addf %107, %160 : vector<48x256xf32>
    %162 = vector.shape_cast %161 : vector<48x256xf32> to vector<2x24x256xf32>
    %c0_70 = arith.constant 0 : index
    %c0_71 = arith.constant 0 : index
    %c0_72 = arith.constant 0 : index
    %163 = vector.load %arg20[%c0_70, %c0_71, %c0_72] : memref<2x24x256xf32, #tpu.memory_space<vmem>>, vector<2x24x256xf32>
    tpu.vector_store %arg20[%c0_70, %c0_71, %c0_72], %162 {strides = array<i32>} : memref<2x24x256xf32, #tpu.memory_space<vmem>>, vector<2x24x256xf32>,
    %c1_i32 = arith.constant 1 : i32
    %164 = arith.cmpi eq, %arg0, %c1_i32 : i32
    %165 = arith.extui %164 : i1 to i32
    %c0_i32_73 = arith.constant 0 : i32
    %166 = arith.cmpi ne, %165, %c0_i32_73 : i32
    scf.if %166 {
      %167 = vector.shape_cast %161 : vector<48x256xf32> to vector<2x24x256xf32>
      %168 = vector.extract_strided_slice %167 {offsets = [0, 16, 0], sizes = [2, 1, 256], strides = [1, 1, 1]} : vector<2x24x256xf32> to vector<2x1x256xf32>
      %169 = vector.shape_cast %168 : vector<2x1x256xf32> to vector<2x256xf32>
      %c0_74 = arith.constant 0 : index
      %c0_75 = arith.constant 0 : index
      %170 = vector.load %arg16[%c0_74, %c0_75] : memref<1x256xf32, #tpu.memory_space<vmem>>, vector<1x256xf32>
      %c0_76 = arith.constant 0 : index
      %c0_77 = arith.constant 0 : index
      %171 = vector.load %arg17[%c0_76, %c0_77] : memref<1x256xf32, #tpu.memory_space<vmem>>, vector<1x256xf32>
      %cst_78 = arith.constant dense<0.000000e+00> : vector<2xf32>
      %172 = vector.multi_reduction <add>, %169, %cst_78 [1] : vector<2x256xf32> to vector<2xf32>
      %173 = vector.shape_cast %172 : vector<2xf32> to vector<2x1xf32>
      %cst_79 = arith.constant 2.560000e+02 : f32
      %174 = vector.broadcast %cst_79 : f32 to vector<2x1xf32>
      %175 = arith.divf %173, %174 : vector<2x1xf32>
      %176 = vector.broadcast %175 : vector<2x1xf32> to vector<2x256xf32>
      %177 = arith.subf %169, %176 : vector<2x256xf32>
      %178 = arith.mulf %177, %177 : vector<2x256xf32>
      %cst_80 = arith.constant dense<0.000000e+00> : vector<2xf32>
      %179 = vector.multi_reduction <add>, %178, %cst_80 [1] : vector<2x256xf32> to vector<2xf32>
      %180 = vector.shape_cast %179 : vector<2xf32> to vector<2x1xf32>
      %cst_81 = arith.constant 2.560000e+02 : f32
      %181 = vector.broadcast %cst_81 : f32 to vector<2x1xf32>
      %182 = arith.divf %180, %181 : vector<2x1xf32>
      %cst_82 = arith.constant 9.99999997E-7 : f32
      %183 = vector.broadcast %cst_82 : f32 to vector<2x1xf32>
      %184 = arith.addf %182, %183 : vector<2x1xf32>
      %185 = math.rsqrt %184 : vector<2x1xf32>
      %186 = vector.broadcast %185 : vector<2x1xf32> to vector<2x256xf32>
      %187 = arith.mulf %177, %186 : vector<2x256xf32>
      %188 = vector.broadcast %170 : vector<1x256xf32> to vector<2x256xf32>
      %189 = arith.mulf %187, %188 : vector<2x256xf32>
      %190 = vector.broadcast %171 : vector<1x256xf32> to vector<2x256xf32>
      %191 = arith.addf %189, %190 : vector<2x256xf32>
      %192 = arith.truncf %191 : vector<2x256xf32> to vector<2x256xbf16>
      %c0_83 = arith.constant 0 : index
      %c0_84 = arith.constant 0 : index
      %193 = vector.load %arg18[%c0_83, %c0_84] : memref<256x256xbf16, #tpu.memory_space<vmem>>, vector<256x256xbf16>
      %cst_85 = arith.constant dense<0.000000e+00> : vector<2x256xf32>
      %194 = tpu.matmul %192, %193, %cst_85 {dimension_numbers = #tpu.dot_dimension_numbers<[1], [0], [0], [1], [0, 0, 1, 1], [], []>} : vector<2x256xbf16>, vector<256x256xbf16>, vector<2x256xf32> -> vector<2x256xf32>
      %195 = arith.mulf %194, %194 : vector<2x256xf32>
      %cst_86 = arith.constant dense<0.000000e+00> : vector<2xf32>
      %196 = vector.multi_reduction <add>, %195, %cst_86 [1] : vector<2x256xf32> to vector<2xf32>
      %197 = vector.shape_cast %196 : vector<2xf32> to vector<2x1xf32>
      %cst_87 = arith.constant 9.99999996E-13 : f32
      %198 = vector.broadcast %cst_87 : f32 to vector<2x1xf32>
      %199 = arith.addf %197, %198 : vector<2x1xf32>
      %200 = math.rsqrt %199 : vector<2x1xf32>
      %201 = vector.broadcast %200 : vector<2x1xf32> to vector<2x256xf32>
      %202 = arith.mulf %194, %201 : vector<2x256xf32>
      %c0_88 = arith.constant 0 : index
      %c0_89 = arith.constant 0 : index
      %203 = vector.load %arg19[%c0_88, %c0_89] : memref<2x256xf32, #tpu.memory_space<vmem>>, vector<2x256xf32>
      tpu.vector_store %arg19[%c0_88, %c0_89], %202 {strides = array<i32>} : memref<2x256xf32, #tpu.memory_space<vmem>>, vector<2x256xf32>,
    } else {
    }
    return
  }
  func.func @transform_0(%arg0: i32) -> (i32, i32, i32) {
    %c0_i32 = arith.constant 0 : i32
    %c0_i32_0 = arith.constant 0 : i32
    %c0_i32_1 = arith.constant 0 : i32
    %c0_i32_2 = arith.constant 0 : i32
    return %c0_i32, %c0_i32_0, %c0_i32_1 : i32, i32, i32
  }
  func.func @transform_1(%arg0: i32) -> (i32, i32) {
    %c0_i32 = arith.constant 0 : i32
    %c0_i32_0 = arith.constant 0 : i32
    %c0_i32_1 = arith.constant 0 : i32
    return %c0_i32, %c0_i32_0 : i32, i32
  }
  func.func @transform_2(%arg0: i32) -> (i32, i32) {
    %c0_i32 = arith.constant 0 : i32
    %c0_i32_0 = arith.constant 0 : i32
    %c0_i32_1 = arith.constant 0 : i32
    return %c0_i32, %c0_i32_0 : i32, i32
  }
  func.func @transform_3(%arg0: i32) -> (i32, i32, i32) {
    %c0_i32 = arith.constant 0 : i32
    %c0_i32_0 = arith.constant 0 : i32
    %c0_i32_1 = arith.constant 0 : i32
    return %arg0, %c0_i32, %c0_i32_0 : i32, i32, i32
  }
  func.func @transform_4(%arg0: i32) -> (i32, i32, i32) {
    %c0_i32 = arith.constant 0 : i32
    %c0_i32_0 = arith.constant 0 : i32
    %c0_i32_1 = arith.constant 0 : i32
    return %arg0, %c0_i32, %c0_i32_0 : i32, i32, i32
  }
  func.func @transform_5(%arg0: i32) -> (i32, i32, i32) {
    %c0_i32 = arith.constant 0 : i32
    %c0_i32_0 = arith.constant 0 : i32
    %c0_i32_1 = arith.constant 0 : i32
    return %arg0, %c0_i32, %c0_i32_0 : i32, i32, i32
  }
  func.func @transform_6(%arg0: i32) -> (i32, i32, i32) {
    %c0_i32 = arith.constant 0 : i32
    %c0_i32_0 = arith.constant 0 : i32
    %c0_i32_1 = arith.constant 0 : i32
    return %arg0, %c0_i32, %c0_i32_0 : i32, i32, i32
  }
  func.func @transform_7(%arg0: i32) -> (i32, i32, i32) {
    %c0_i32 = arith.constant 0 : i32
    %c0_i32_0 = arith.constant 0 : i32
    %c0_i32_1 = arith.constant 0 : i32
    return %arg0, %c0_i32, %c0_i32_0 : i32, i32, i32
  }
  func.func @transform_8(%arg0: i32) -> (i32, i32, i32) {
    %c0_i32 = arith.constant 0 : i32
    %c0_i32_0 = arith.constant 0 : i32
    %c0_i32_1 = arith.constant 0 : i32
    return %arg0, %c0_i32, %c0_i32_0 : i32, i32, i32
  }
  func.func @transform_9(%arg0: i32) -> (i32, i32, i32) {
    %c0_i32 = arith.constant 0 : i32
    %c0_i32_0 = arith.constant 0 : i32
    %c0_i32_1 = arith.constant 0 : i32
    return %arg0, %c0_i32, %c0_i32_0 : i32, i32, i32
  }
  func.func @transform_10(%arg0: i32) -> (i32, i32, i32) {
    %c0_i32 = arith.constant 0 : i32
    %c0_i32_0 = arith.constant 0 : i32
    %c0_i32_1 = arith.constant 0 : i32
    return %arg0, %c0_i32, %c0_i32_0 : i32, i32, i32
  }
  func.func @transform_11(%arg0: i32) -> (i32, i32, i32) {
    %c0_i32 = arith.constant 0 : i32
    %c0_i32_0 = arith.constant 0 : i32
    %c0_i32_1 = arith.constant 0 : i32
    return %arg0, %c0_i32, %c0_i32_0 : i32, i32, i32
  }
  func.func @transform_12(%arg0: i32) -> (i32, i32, i32) {
    %c0_i32 = arith.constant 0 : i32
    %c0_i32_0 = arith.constant 0 : i32
    %c0_i32_1 = arith.constant 0 : i32
    return %arg0, %c0_i32, %c0_i32_0 : i32, i32, i32
  }
  func.func @transform_13(%arg0: i32) -> (i32, i32, i32) {
    %c0_i32 = arith.constant 0 : i32
    %c0_i32_0 = arith.constant 0 : i32
    %c0_i32_1 = arith.constant 0 : i32
    return %arg0, %c0_i32, %c0_i32_0 : i32, i32, i32
  }
  func.func @transform_14(%arg0: i32) -> (i32, i32, i32) {
    %c0_i32 = arith.constant 0 : i32
    %c0_i32_0 = arith.constant 0 : i32
    %c0_i32_1 = arith.constant 0 : i32
    return %arg0, %c0_i32, %c0_i32_0 : i32, i32, i32
  }
  func.func @transform_15(%arg0: i32) -> (i32, i32) {
    %c0_i32 = arith.constant 0 : i32
    %c0_i32_0 = arith.constant 0 : i32
    %c0_i32_1 = arith.constant 0 : i32
    return %c0_i32, %c0_i32_0 : i32, i32
  }
  func.func @transform_16(%arg0: i32) -> (i32, i32) {
    %c0_i32 = arith.constant 0 : i32
    %c0_i32_0 = arith.constant 0 : i32
    %c0_i32_1 = arith.constant 0 : i32
    return %c0_i32, %c0_i32_0 : i32, i32
  }
  func.func @transform_17(%arg0: i32) -> (i32, i32) {
    %c0_i32 = arith.constant 0 : i32
    %c0_i32_0 = arith.constant 0 : i32
    %c0_i32_1 = arith.constant 0 : i32
    return %c0_i32, %c0_i32_0 : i32, i32
  }
  func.func @transform_18(%arg0: i32) -> (i32, i32) {
    %c0_i32 = arith.constant 0 : i32
    %c0_i32_0 = arith.constant 0 : i32
    %c0_i32_1 = arith.constant 0 : i32
    return %c0_i32, %c0_i32_0 : i32, i32
  }
}

</mosaic_0001>

<bundles_post_ra>
// kernel: tpu_custom_call.1
= control target key start
LH: loop header
LB: loop body
LE: loop exit
PB: predicated region body
PF: predicated region fallthrough
CT: control target
= control target key end

     0   :  { %s10789_s0 = inlined_call_operand.hbm [shape: f32[2,24,256], index: 0, kind: input, shape index: {}]   ;;  %s10790_s1 = inlined_call_operand.hbm [shape: bf16[256,256], index: 1, kind: input, shape index: {}]   ;;  %s10791_s2 = inlined_call_operand.hbm [shape: f32[24,256], index: 2, kind: input, shape index: {}]   ;;  %s10792_s3 = inlined_call_operand.hbm [shape: f32[2,1,256], index: 3, kind: input, shape index: {}]   ;;  %s10793_s4 = inlined_call_operand.hbm [shape: f32[2,1,256], index: 4, kind: input, shape index: {}]   ;;  %s10794_s5 = inlined_call_operand.hbm [shape: bf16[2,256,768], index: 5, kind: input, shape index: {}]   ;;  %s10795_s6 = inlined_call_operand.vmem [shape: f32[2,1,768], index: 6, kind: input, shape index: {}]   ;;  %s10796_s7 = inlined_call_operand.hbm [shape: bf16[2,256,256], index: 7, kind: input, shape index: {}]   ;;  %s10797_s8 = inlined_call_operand.hbm [shape: f32[2,1,256], index: 8, kind: input, shape index: {}]   ;;  %s10798_s9 = inlined_call_operand.vmem [shape: f32[2,1,256], index: 9, kind: input, shape index: {}]   ;;  %s10799_s10 = inlined_call_operand.vmem [shape: f32[2,1,256], index: 10, kind: input, shape index: {}]   ;;  %s10800_s11 = inlined_call_operand.hbm [shape: bf16[2,256,1024], index: 11, kind: input, shape index: {}]   ;;  %s10801_s12 = inlined_call_operand.vmem [shape: f32[2,1,1024], index: 12, kind: input, shape index: {}]   ;;  %s10802_s13 = inlined_call_operand.hbm [shape: bf16[2,1024,256], index: 13, kind: input, shape index: {}]   ;;  %s10803_s14 = inlined_call_operand.vmem [shape: f32[2,1,256], index: 14, kind: input, shape index: {}]   ;;  %s10804_s15 = inlined_call_operand.vmem [shape: f32[1,256], index: 15, kind: input, shape index: {}]   ;;  %s10805_s16 = inlined_call_operand.vmem [shape: f32[1,256], index: 16, kind: input, shape index: {}]   ;;  %s10806_s17 = inlined_call_operand.hbm [shape: bf16[256,256], index: 17, kind: input, shape index: {}]   ;;  %s10807_s18 = inlined_call_operand.hbm [shape: f32[2,256], index: 18, kind: output, shape index: {}]  }
   0x1   :  { %10860 = sst [smem:[#allocation52_spill]] %s10789_s0 }
   0x2   :  { %10861 = sst [smem:[#allocation53_spill]] %s10790_s1 }
   0x3   :  { %10862 = sst [smem:[#allocation54_spill]] %s10791_s2 }
   0x4   :  { %10863 = sst [smem:[#allocation55_spill]] %s10792_s3 }
   0x5   :  { %10864 = sst [smem:[#allocation56_spill]] %s10793_s4 }
   0x6   :  { %10865 = sst [smem:[#allocation57_spill]] %s10794_s5 }
   0x7   :  { %10866 = sst [smem:[#allocation58_spill]] %s10795_s6 }
   0x8   :  { %10867 = sst [smem:[#allocation59_spill]] %s10796_s7 }
   0x9   :  { %10868 = sst [smem:[#allocation60_spill]] %s10797_s8 }
   0xa   :  { %10869 = sst [smem:[#allocation61_spill]] %s10798_s9 }
   0xb   :  { %10870 = sst [smem:[#allocation62_spill]] %s10799_s10 }
   0xc   :  { %10871 = sst [smem:[#allocation63_spill]] %s10801_s12 }
   0xd   :  { %10872 = sst [smem:[#allocation64_spill]] %s10803_s14 }
   0xe   :  { %10873 = sst [smem:[#allocation65_spill]] %s10804_s15 }
   0xf   :  { %10874 = sst [smem:[#allocation66_spill]] %s10805_s16 }
  0x10   :  { %10875 = sst [smem:[#allocation67_spill]] %s10806_s17 }
  0x11   :  { %10876 = sst [smem:[#allocation68_spill]] %s10807_s18 }
  0x12   :  { %23 = vsyncpa [#allocation4], 0 }
  0x13   :  { %24 = vsyncpa [#allocation7], 0 }
  0x14   :  { %25 = vsyncpa [#allocation10], 0 }
  0x15   :  { %27 = vsyncpa [#allocation10 + $0x1], 0 }
  0x16   :  { %28 = vsyncpa [#allocation13], 0 }
  0x17   :  { %30 = vsyncpa [#allocation13 + $0x1], 0 }
  0x18   :  { %31 = vsyncpa [#allocation16], 0 }
  0x19   :  { %33 = vsyncpa [#allocation16 + $0x1], 0 }
  0x1a   :  { %34 = vsyncpa [#allocation19], 0 }
  0x1b   :  { %36 = vsyncpa [#allocation19 + $0x1], 0 }
  0x1c   :  { %37 = vsyncpa [#allocation5], 0  ;;  %s8596_s27 = smov 0   ;;  %s8598_s28 = smov 0  }
  0x1d   :  { %s8600_s29 = smov 0   ;;  %s8602_s30 = smov 0  }
  0x1e LB: > { %10877 = sst [smem:[#allocation30_spill]] %s8469_s28  ;;  %s8615_s0 = sadd.s32 4294967295, %s8477_s30   ;;  %s8477_s30 = sphi %s8602_s30, %s10980_s30   ;;  %s8473_s29 = sphi %s8600_s29, %s10983_s29   ;;  %s8469_s28 = sphi %s8598_s28, %s10982_s28   ;;  %s8465_s27 = sphi %s8596_s27, %s10981_s27  }
  0x1f   : > { %10878 = sst [smem:[#allocation31_spill]] %s8473_s29  ;;  %p126_p0 = scmp.ne.s32.totalorder %s8469_s28, %s8465_s27 }
  0x20   : > { %10879 = sst [smem:[#allocation32_spill]] %s8615_s0  ;;  %p10812_p1 = scmp.eq.s32.totalorder %s8615_s0, 0 }
  0x21   : > { %p6571_p2 = scmp.ge.s32.totalorder %s8477_s30, 1  ;;  %p507_p3 = scmp.lt.s32.totalorder %s8477_s30, 3 }
  0x22   : > { %p8624_p5 = por %p10812_p1, %p126_p0  ;;  %s8479_s20 = smov [#allocation6]  }
  0x23   : > { %p8628_p6 = pnand %p6571_p2, %p507_p3  ;;  %s532_s21 = sshll.u32 %s8479_s20, 4  ;;  %s533_s21 = int_to_ptr.vmem [resolvable:$true] %s532_s21 }
  0x24   : > { %s10880_s19 = scalar_select %p8624_p5, 1, 0 }
  0x25   : > { %s10882_s1 = scalar_select %p8628_p6, 1, 0 }
  0x26   : > { %10881 = sst [smem:[#allocation33_spill]] %s10880_s19  ;;  %p7310_p7 = pneg %p8628_p6 }
  0x27   : > { %s8480_s2 = smov [#allocation20]   ;;  %s10884_s26 = sld [smem:[#allocation53_spill]] }
  0x28   : > { %p8636_p8 = pnand %p7310_p7, %p10812_p1  ;;  %s564_s23 = sshll.u32 %s8480_s2, 4  ;;  %s8640_s23 = int_to_ptr.vmem [resolvable:$true] %s564_s23 }
  0x2a   : > { %s10883_s22 = scalar_select %p8636_p8, 1, 0 }
  0x2b   : > { %p8650_p10 = pneg %p8636_p8 }
  0x2d   : > { %s8067_s27 = scalar_lea.hbm %s10884_s26, 4096 }
  0x2e   : > { %p8068_p9 = scmp.ne.s32.totalorder %s10884_s26, %s8067_s27  ;;  %p8074_p13 = scmp.lt.u32.totalorder %s8067_s27, %s10884_s26 }
  0x2f   : > { %s10885_s20 = scalar_select %p8650_p10, 1, 0 }
  0x30   : > { %p8070_p11 = pnand %p8650_p10, %p8068_p9 }
  0x32   : > { %p8071_p12 = pneg %p8070_p11 }
  0x34   : > { %p8076_p0 = pnand %p8074_p13, %p8071_p12 }
  0x36   : > { %8079 = shalt.err (!%p8076_p0)
}
  0x37   : > { %s8080_s24 = scalar_lea.vmem %s533_s21, 4096  ;;  %p8088_p4 = scmp.lt.s32.totalorder %s533_s21, %s533_s21 }
  0x38   : > { %p8081_p2 = scmp.ne.s32.totalorder %s533_s21, %s8080_s24  ;;  %p8089_p1 = scmp.lt.s32.totalorder %s8080_s24, %s8080_s24 }
  0x3a   : > { %p8083_p3 = pnand %p8081_p2, %p8650_p10  ;;  %p8090_p5 = por %p8089_p1, %p8088_p4 }
  0x3c   : > { %p8084_p7 = pneg %p8083_p3 }
  0x3e   : > { %p8091_p6 = pnand %p8090_p5, %p8084_p7 }
  0x40   : > { %8094 = shalt.err (!%p8091_p6)
}
  0x41   : > { %s10815_s16 = smov 128   ;;  %s10817_s18 = smov 8  }
  0x42   : > { %7316 = dma.hbm_to_vmem [thread:$0]  (!%p8636_p8), %s10884_s26, 4096, %s533_s21, [#allocation7], %s10815_s16, %s10815_s16, %s10817_s18  }
  0x43   : > { %s10886_s17 = sld [smem:[#allocation67_spill]] }
  0x49   : > { %s8095_s14 = scalar_lea.hbm %s10886_s17, 4096 }
  0x4a   : > { %p8096_p1 = scmp.ne.s32.totalorder %s10886_s17, %s8095_s14  ;;  %p8102_p6 = scmp.lt.u32.totalorder %s8095_s14, %s10886_s17 }
  0x4c   : > { %p8098_p4 = pnand %p8096_p1, %p8650_p10 }
  0x4e   : > { %p8099_p5 = pneg %p8098_p4 }
  0x50   : > { %p8104_p9 = pnand %p8102_p6, %p8099_p5 }
  0x52   : > { %8107 = shalt.err (!%p8104_p9)
}
  0x53   : > { %s8108_s21 = scalar_lea.vmem %s8640_s23, 4096  ;;  %p8116_p0 = scmp.lt.s32.totalorder %s8640_s23, %s8640_s23 }
  0x54   : > { %p8109_p11 = scmp.ne.s32.totalorder %s8640_s23, %s8108_s21  ;;  %p8117_p2 = scmp.lt.s32.totalorder %s8108_s21, %s8108_s21 }
  0x56   : > { %p8111_p12 = pnand %p8109_p11, %p8650_p10  ;;  %p8118_p3 = por %p8117_p2, %p8116_p0 }
  0x58   : > { %p8112_p13 = pneg %p8111_p12 }
  0x5a   : > { %p8119_p7 = pnand %p8118_p3, %p8112_p13 }
  0x5c   : > { %8122 = shalt.err (!%p8119_p7)
}
  0x5d   : > { %7322 = dma.hbm_to_vmem [thread:$0]  (!%p8636_p8), %s10886_s17, 4096, %s8640_s23, [#allocation19], %s10815_s16, %s10815_s16, %s10817_s18  }
  0x5e   : > { %s8696_s12 = sadd.s32 1, %s8477_s30   ;;  %s113_s14 = sadd.s32 1, %s8473_s29 }
  0x5f   : > { %10887 = sst [smem:[#allocation34_spill]] %s8696_s12  ;;  %s110_s15 = ssub.s32 %s8477_s30, %s8696_s12 }
  0x60   : > { %p120_p1 = scmp.ne.s32.totalorder %s8473_s29, %s8469_s28  ;;  %p111_p4 = scmp.eq.s32.totalorder %s110_s15, 0 }
  0x61   : > { %p121_p5 = scmp.eq.s32.totalorder %s8477_s30, 0  ;;  %p7349_p6 = scmp.lt.s32.totalorder %s8477_s30, 2 }
  0x62   : > { %s8706_s25 = sand.u32 1, %s8477_s30   ;;  %s8712_s2 = sand.u32 1, %s8473_s29  }
  0x63   : > { %s8709_s27 = scalar_select %p111_p4, %s8473_s29, %s113_s14  }
  0x64   : > { %p122_p9 = por %p121_p5, %p120_p1  ;;  %s8715_s24 = sshll.u32 %s8477_s30, 5 }
  0x65   : > { %10888 = sst [smem:[#allocation35_spill]] %s8709_s27  ;;  %s8718_s23 = sshll.u32 %s8712_s2, 1 }
  0x66   : > { %s10889_s3 = sld [smem:[#allocation55_spill]]  ;;  %p8726_p11 = pnand %p7349_p6, %p122_p9 }
  0x67   : > { %s582_s15 = scalar_lea.vmem [#allocation9], %s8718_s23 }
  0x68   : > { %s10890_s14 = scalar_select %p8726_p11, 1, 0 }
  0x69   : > { %s590_s16 = sshll.u32 %s582_s15, 4  ;;  %p8738_p13 = pneg %p8726_p11  ;;  %s8731_s16 = int_to_ptr.vmem [resolvable:$true] %s590_s16 }
  0x6b   : > { %s10891_s21 = scalar_select %p8738_p13, 1, 0 }
  0x6c   : > { %s8724_s10 = scalar_lea.hbm %s10889_s3, %s8715_s24  ;;  %s8128_s27 = scalar_lea.hbm %s10889_s3, 64 }
  0x6d   : > { %s8123_s17 = scalar_lea.hbm %s8724_s10, 32  ;;  %p8129_p3 = scmp.lt.u32.totalorder %s8724_s10, %s10889_s3 }
  0x6e   : > { %p8124_p12 = scmp.ne.s32.totalorder %s8724_s10, %s8123_s17  ;;  %p8130_p7 = scmp.lt.u32.totalorder %s8128_s27, %s8123_s17 }
  0x6f   : > { %p8132_p4 = scmp.lt.u32.totalorder %s8123_s17, %s8724_s10 }
  0x70   : > { %p8126_p0 = pnand %p8738_p13, %p8124_p12  ;;  %p8131_p1 = por %p8130_p7, %p8129_p3 }
  0x72   : > { %p8127_p2 = pneg %p8126_p0  ;;  %p8133_p5 = por %p8132_p4, %p8131_p1 }
  0x74   : > { %p8134_p6 = pnand %p8133_p5, %p8127_p2 }
  0x76   : > { %8137 = shalt.err (!%p8134_p6)
}
  0x77   : > { %s8138_s18 = scalar_lea.vmem %s8731_s16, 32  ;;  %s8483_s26 = smov [#allocation9]  }
  0x78   : > { %p8139_p9 = scmp.ne.s32.totalorder %s8731_s16, %s8138_s18  ;;  %s8143_s6 = sshll.u32 %s8483_s26, 4  ;;  %s8144_s6 = int_to_ptr.vmem [resolvable:$false] %s8143_s6 }
  0x79   : > { %s8145_s29 = scalar_lea.vmem %s8144_s6, 64  ;;  %p8146_p8 = scmp.lt.s32.totalorder %s8731_s16, %s8144_s6 }
  0x7a   : > { %p8141_p12 = pnand %p8139_p9, %p8738_p13  ;;  %p8147_p10 = scmp.lt.s32.totalorder %s8145_s29, %s8138_s18 }
  0x7c   : > { %p8142_p0 = pneg %p8141_p12  ;;  %p8148_p3 = por %p8147_p10, %p8146_p8 }
  0x7e   : > { %p8149_p7 = pnand %p8148_p3, %p8142_p0 }
  0x80   : > { %8152 = shalt.err (!%p8149_p7)
}
  0x81   : > { %s10892_s17 = scalar_lea.sflag [#allocation10], %s8706_s25  ;;  %s7272_s27 = smul.u32 768, %s8712_s2 }
  0x82   : > { %7326 = dma.hbm_to_vmem [thread:$0]  (!%p8726_p11), %s8724_s10, 32, %s8731_s16, %s10892_s17  }
  0x83   : > { %s7273_s15 = smul.u32 12288, %s8477_s30  ;;  %s10893_s5 = sld [smem:[#allocation57_spill]] }
  0x84   : > { %s620_s6 = scalar_lea.vmem [#allocation12], %s7272_s27  ;;  %s10832_s12 = scalar_lea.sflag [#allocation13], %s8706_s25 }
  0x85   : > { %s627_s29 = sshll.u32 %s620_s6, 4  ;;  %s8770_s29 = int_to_ptr.vmem [resolvable:$true] %s627_s29 }
  0x89   : > { %s8768_s18 = scalar_lea.hbm %s10893_s5, %s7273_s15  ;;  %s8158_s3 = scalar_lea.hbm %s10893_s5, 24576 }
  0x8a   : > { %s8153_s9 = scalar_lea.hbm %s8768_s18, 12288  ;;  %p8159_p1 = scmp.lt.u32.totalorder %s8768_s18, %s10893_s5 }
  0x8b   : > { %p8154_p8 = scmp.ne.s32.totalorder %s8768_s18, %s8153_s9  ;;  %p8160_p4 = scmp.lt.u32.totalorder %s8158_s3, %s8153_s9 }
  0x8c   : > { %p8162_p6 = scmp.lt.u32.totalorder %s8153_s9, %s8768_s18 }
  0x8d   : > { %p8156_p10 = pnand %p8154_p8, %p8738_p13  ;;  %p8161_p5 = por %p8160_p4, %p8159_p1 }
  0x8f   : > { %p8157_p2 = pneg %p8156_p10  ;;  %p8163_p9 = por %p8162_p6, %p8161_p5 }
  0x91   : > { %p8164_p12 = pnand %p8163_p9, %p8157_p2 }
  0x93   : > { %8167 = shalt.err (!%p8164_p12)
}
  0x94   : > { %s8168_s27 = scalar_lea.vmem %s8770_s29, 12288  ;;  %s8484_s26 = smov [#allocation12]  }
  0x95   : > { %p8169_p0 = scmp.ne.s32.totalorder %s8770_s29, %s8168_s27  ;;  %s8173_s6 = sshll.u32 %s8484_s26, 4  ;;  %s8174_s6 = int_to_ptr.vmem [resolvable:$false] %s8173_s6 }
  0x96   : > { %s8175_s16 = scalar_lea.vmem %s8174_s6, 24576  ;;  %p8176_p8 = scmp.lt.s32.totalorder %s8770_s29, %s8174_s6 }
  0x97   : > { %p8171_p3 = pnand %p8169_p0, %p8738_p13  ;;  %p8177_p10 = scmp.lt.s32.totalorder %s8175_s16, %s8168_s27 }
  0x99   : > { %p8172_p7 = pneg %p8171_p3  ;;  %p8178_p1 = por %p8177_p10, %p8176_p8 }
  0x9b   : > { %p8179_p4 = pnand %p8178_p1, %p8172_p7 }
  0x9d   : > { %8182 = shalt.err (!%p8179_p4)
}
  0x9e   : > { %s8485_s9 = smov 384   ;;  %s8486_s10 = smov 24  }
  0x9f   : > { %7332 = dma.hbm_to_vmem [thread:$0]  (!%p8726_p11), %s8768_s18, 12288, %s8770_s29, %s10832_s12, %s8485_s9, %s8485_s9, %s8486_s10  }
  0xa0   : > { %s10894_s8 = sld [smem:[#allocation60_spill]]  ;;  %s669_s27 = scalar_lea.vmem [#allocation15], %s8718_s23 }
  0xa1   : > { %s677_s26 = sshll.u32 %s669_s27, 4  ;;  %s8487_s6 = smov [#allocation3]   ;;  %s8803_s26 = int_to_ptr.vmem [resolvable:$true] %s677_s26 }
  0xa2   : > { %s8805_s16 = sshll.u32 %s8487_s6, 4  ;;  %s10831_s5 = scalar_lea.sflag [#allocation16], %s8706_s25  ;;  %s520_s16 = int_to_ptr.vmem [resolvable:$true] %s8805_s16 }
  0xa6   : > { %s8800_s15 = scalar_lea.hbm %s10894_s8, %s8715_s24  ;;  %s8188_s9 = scalar_lea.hbm %s10894_s8, 64 }
  0xa7   : > { %s8183_s19 = scalar_lea.hbm %s8800_s15, 32  ;;  %p8189_p9 = scmp.lt.u32.totalorder %s8800_s15, %s10894_s8 }
  0xa8   : > { %p8184_p2 = scmp.ne.s32.totalorder %s8800_s15, %s8183_s19  ;;  %p8190_p12 = scmp.lt.u32.totalorder %s8188_s9, %s8183_s19 }
  0xa9   : > { %p8192_p3 = scmp.lt.u32.totalorder %s8183_s19, %s8800_s15 }
  0xaa   : > { %p8186_p5 = pnand %p8184_p2, %p8738_p13  ;;  %p8191_p0 = por %p8190_p12, %p8189_p9 }
  0xac   : > { %p8187_p6 = pneg %p8186_p5  ;;  %p8193_p7 = por %p8192_p3, %p8191_p0 }
  0xae   : > { %p8194_p8 = pnand %p8193_p7, %p8187_p6 }
  0xb0   : > { %8197 = shalt.err (!%p8194_p8)
}
  0xb1   : > { %s8198_s17 = scalar_lea.vmem %s8803_s26, 32  ;;  %s8488_s27 = smov [#allocation15]  }
  0xb2   : > { %p8199_p10 = scmp.ne.s32.totalorder %s8803_s26, %s8198_s17  ;;  %s8203_s6 = sshll.u32 %s8488_s27, 4  ;;  %s8204_s6 = int_to_ptr.vmem [resolvable:$false] %s8203_s6 }
  0xb3   : > { %s8205_s18 = scalar_lea.vmem %s8204_s6, 64  ;;  %p8206_p2 = scmp.lt.s32.totalorder %s8803_s26, %s8204_s6 }
  0xb4   : > { %p8201_p1 = pnand %p8199_p10, %p8738_p13  ;;  %p8207_p5 = scmp.lt.s32.totalorder %s8205_s18, %s8198_s17 }
  0xb6   : > { %p8202_p4 = pneg %p8201_p1  ;;  %p8208_p9 = por %p8207_p5, %p8206_p2 }
  0xb8   : > { %p8209_p12 = pnand %p8208_p9, %p8202_p4 }
  0xba   : > { %8212 = shalt.err (!%p8209_p12)
}
  0xbb   : > { %7338 = dma.hbm_to_vmem [thread:$0]  (!%p8726_p11), %s8800_s15, 32, %s8803_s26, %s10831_s5  }
  0xbc   : > { %s10895_s9 = sld [smem:[#allocation52_spill]]  ;;  %p10896_p0 = scmp.ne.s32.totalorder %s10885_s20, 0 }
  0xc2   : > { %s8213_s10 = scalar_lea.hbm %s10895_s9, 1536 }
  0xc3   : > { %p8214_p6 = scmp.ne.s32.totalorder %s10895_s9, %s8213_s10  ;;  %p8220_p8 = scmp.lt.u32.totalorder %s8213_s10, %s10895_s9 }
  0xc5   : > { %p8216_p3 = pnand %p8214_p6, %p10896_p0 }
  0xc7   : > { %p8217_p7 = pneg %p8216_p3 }
  0xc9   : > { %p8222_p10 = pnand %p8220_p8, %p8217_p7 }
  0xcb   : > { %8225 = shalt.err (!%p8222_p10)
}
  0xcc   : > { %s8226_s18 = scalar_lea.vmem %s520_s16, 1536  ;;  %p8234_p5 = scmp.lt.s32.totalorder %s520_s16, %s520_s16 }
  0xcd   : > { %p8227_p1 = scmp.ne.s32.totalorder %s520_s16, %s8226_s18  ;;  %p8235_p9 = scmp.lt.s32.totalorder %s8226_s18, %s8226_s18 }
  0xcf   : > { %p8229_p4 = pnand %p8227_p1, %p10896_p0  ;;  %p8236_p12 = por %p8235_p9, %p8234_p5 }
  0xd1   : > { %p8230_p2 = pneg %p8229_p4 }
  0xd3   : > { %p8237_p11 = pnand %p8236_p12, %p8230_p2 }
  0xd5   : > { %8240 = shalt.err (!%p8237_p11)
}
  0xd6   : > { %s8489_s15 = smov 256   ;;  %s8490_s26 = smov 16  }
  0xd7   : > { %p10897_p6 = scmp.ne.s32.totalorder %s10883_s22, 0  ;;  %s8491_s10 = smov [#allocation8]  }
  0xd8   : > { %s545_s3 = sshll.u32 %s8491_s10, 4  ;;  %s10898_s4 = sld [smem:[#allocation56_spill]]  ;;  %s546_s3 = int_to_ptr.vmem [resolvable:$true] %s545_s3 }
  0xd9   : > { %7313 = dma.hbm_to_vmem [thread:$0]  (!%p10897_p6), %s10895_s9, 1536, %s520_s16, [#allocation4], %s8489_s15, %s8489_s15, %s8490_s26  }
  0xda   : > { %s10899_s12 = sld [smem:[#allocation54_spill]] }
  0xde   : > { %s8854_s6 = scalar_lea.hbm %s10898_s4, %s8715_s24 }
  0xe0   : > { %s8241_s8 = scalar_lea.hbm %s10899_s12, 768 }
  0xe1   : > { %p8242_p11 = scmp.ne.s32.totalorder %s10899_s12, %s8241_s8  ;;  %p8248_p8 = scmp.lt.u32.totalorder %s8241_s8, %s10899_s12 }
  0xe3   : > { %p8244_p3 = pnand %p8242_p11, %p10896_p0 }
  0xe5   : > { %p8245_p7 = pneg %p8244_p3 }
  0xe7   : > { %p8250_p10 = pnand %p8248_p8, %p8245_p7 }
  0xe9   : > { %8253 = shalt.err (!%p8250_p10)
}
  0xea   : > { %s8254_s29 = scalar_lea.vmem %s546_s3, 768  ;;  %p8262_p5 = scmp.lt.s32.totalorder %s546_s3, %s546_s3 }
  0xeb   : > { %p8255_p1 = scmp.ne.s32.totalorder %s546_s3, %s8254_s29  ;;  %p8263_p9 = scmp.lt.s32.totalorder %s8254_s29, %s8254_s29 }
  0xed   : > { %p8257_p4 = pnand %p8255_p1, %p10896_p0  ;;  %p8264_p12 = por %p8263_p9, %p8262_p5 }
  0xef   : > { %p8258_p2 = pneg %p8257_p4 }
  0xf1   : > { %p8265_p13 = pnand %p8264_p12, %p8258_p2 }
  0xf3   : > { %8268 = shalt.err (!%p8265_p13)
}
  0xf4   : > { %7319 = dma.hbm_to_vmem [thread:$0]  (!%p10897_p6), %s10899_s12, 768, %s546_s3, [#allocation7], %s8489_s15, %s8489_s15, %s8490_s26  }
  0xf5   : > { %s601_s8 = scalar_lea.vmem [#allocation11], %s8718_s23  ;;  %s6584_s20 = sshll.u32 %s8712_s2, 8 }
  0xf6   : > { %s609_s0 = sshll.u32 %s601_s8, 4  ;;  %s8269_s24 = scalar_lea.hbm %s8854_s6, 32  ;;  %s610_s0 = int_to_ptr.vmem [resolvable:$true] %s609_s0 }
  0xf7   : > { %p8270_p0 = scmp.ne.s32.totalorder %s8854_s6, %s8269_s24  ;;  %p10900_p13 = scmp.ne.s32.totalorder %s10891_s21, 0 }
  0xf8   : > { %s8274_s27 = scalar_lea.hbm %s10898_s4, 64  ;;  %p8275_p7 = scmp.lt.u32.totalorder %s8854_s6, %s10898_s4 }
  0xf9   : > { %p8272_p11 = pnand %p8270_p0, %p10900_p13  ;;  %p8276_p8 = scmp.lt.u32.totalorder %s8274_s27, %s8269_s24 }
  0xfa   : > { %p8278_p6 = scmp.lt.u32.totalorder %s8269_s24, %s8854_s6 }
  0xfb   : > { %p8273_p3 = pneg %p8272_p11  ;;  %p8277_p10 = por %p8276_p8, %p8275_p7 }
  0xfd   : > { %p8279_p1 = por %p8278_p6, %p8277_p10 }
  0xff   : > { %p8280_p4 = pnand %p8279_p1, %p8273_p3 }
 0x101   : > { %8283 = shalt.err (!%p8280_p4)
}
 0x102   : > { %s8284_s23 = scalar_lea.vmem %s610_s0, 32  ;;  %s8492_s15 = smov [#allocation11]  }
 0x103   : > { %p8285_p2 = scmp.ne.s32.totalorder %s610_s0, %s8284_s23  ;;  %s8289_s26 = sshll.u32 %s8492_s15, 4  ;;  %s8290_s26 = int_to_ptr.vmem [resolvable:$false] %s8289_s26 }
 0x104   : > { %s8291_s3 = scalar_lea.vmem %s8290_s26, 64  ;;  %p8292_p12 = scmp.lt.s32.totalorder %s610_s0, %s8290_s26 }
 0x105   : > { %p8287_p5 = pnand %p8285_p2, %p10900_p13  ;;  %p8293_p0 = scmp.lt.s32.totalorder %s8291_s3, %s8284_s23 }
 0x107   : > { %p8288_p9 = pneg %p8287_p5  ;;  %p8294_p11 = por %p8293_p0, %p8292_p12 }
 0x109   : > { %p8295_p7 = pnand %p8294_p11, %p8288_p9 }
 0x10b   : > { %8298 = shalt.err (!%p8295_p7)
}
 0x10c   : > { %p10901_p8 = scmp.ne.s32.totalorder %s10890_s14, 0  ;;  %s10902_s16 = scalar_lea.sflag [#allocation10], %s8706_s25 }
 0x10d   : > { %s7076_s19 = sshll.u32 %s8477_s30, 12  ;;  %s648_s29 = scalar_lea.vmem [#allocation14], %s6584_s20 }
 0x10e   : > { %7329 = dma.hbm_to_vmem [thread:$0]  (!%p10901_p8), %s8854_s6, 32, %s610_s0, %s10902_s16  }
 0x10f   : > { %s655_s5 = sshll.u32 %s648_s29, 4  ;;  %s10903_s7 = sld [smem:[#allocation59_spill]]  ;;  %s8903_s5 = int_to_ptr.vmem [resolvable:$true] %s655_s5 }
 0x115   : > { %s8901_s24 = scalar_lea.hbm %s10903_s7, %s7076_s19  ;;  %s8304_s20 = scalar_lea.hbm %s10903_s7, 8192 }
 0x116   : > { %s8299_s22 = scalar_lea.hbm %s8901_s24, 4096  ;;  %p8305_p1 = scmp.lt.u32.totalorder %s8901_s24, %s10903_s7 }
 0x117   : > { %p8300_p3 = scmp.ne.s32.totalorder %s8901_s24, %s8299_s22  ;;  %p8306_p4 = scmp.lt.u32.totalorder %s8304_s20, %s8299_s22 }
 0x118   : > { %p8308_p5 = scmp.lt.u32.totalorder %s8299_s22, %s8901_s24 }
 0x119   : > { %p8302_p10 = pnand %p8300_p3, %p10900_p13  ;;  %p8307_p2 = por %p8306_p4, %p8305_p1 }
 0x11b   : > { %p8303_p6 = pneg %p8302_p10  ;;  %p8309_p9 = por %p8308_p5, %p8307_p2 }
 0x11d   : > { %p8310_p12 = pnand %p8309_p9, %p8303_p6 }
 0x11f   : > { %8313 = shalt.err (!%p8310_p12)
}
 0x120   : > { %s8314_s17 = scalar_lea.vmem %s8903_s5, 4096  ;;  %s8493_s18 = smov [#allocation14]  }
 0x121   : > { %p8315_p0 = scmp.ne.s32.totalorder %s8903_s5, %s8314_s17  ;;  %s8319_s23 = sshll.u32 %s8493_s18, 4  ;;  %s8320_s23 = int_to_ptr.vmem [resolvable:$false] %s8319_s23 }
 0x122   : > { %s8321_s15 = scalar_lea.vmem %s8320_s23, 8192  ;;  %p8322_p3 = scmp.lt.s32.totalorder %s8903_s5, %s8320_s23 }
 0x123   : > { %p8317_p11 = pnand %p8315_p0, %p10900_p13  ;;  %p8323_p10 = scmp.lt.s32.totalorder %s8321_s15, %s8314_s17 }
 0x125   : > { %p8318_p7 = pneg %p8317_p11  ;;  %p8324_p1 = por %p8323_p10, %p8322_p3 }
 0x127   : > { %p8325_p4 = pnand %p8324_p1, %p8318_p7 }
 0x129   : > { %8328 = shalt.err (!%p8325_p4)
}
 0x12a   : > { %s10904_s26 = smov 8   ;;  %s10905_s3 = smov 128  }
 0x12b   : > { %s10906_s16 = scalar_lea.sflag [#allocation13], %s8706_s25  ;;  %s6590_s19 = sshll.u32 %s8712_s2, 10 }
 0x12c   : > { %7335 = dma.hbm_to_vmem [thread:$0]  (!%p10901_p8), %s8901_s24, 4096, %s8903_s5, %s10906_s16, %s10905_s3, %s10905_s3, %s10904_s26  }
 0x12d   : > { %s7078_s29 = sshll.u32 %s8477_s30, 14  ;;  %s702_s6 = scalar_lea.vmem [#allocation17], %s6590_s19 }
 0x12e   : > { %s8938_s22 = scalar_lea.hbm %s10800_s11, %s7078_s29  ;;  %s709_s0 = sshll.u32 %s702_s6, 4  ;;  %s8942_s0 = int_to_ptr.vmem [resolvable:$true] %s709_s0 }
 0x12f   : > { %s8329_s20 = scalar_lea.hbm %s8938_s22, 16384  ;;  %s8334_s10 = scalar_lea.hbm %s10800_s11, 32768 }
 0x130   : > { %p8330_p6 = scmp.ne.s32.totalorder %s8938_s22, %s8329_s20  ;;  %p8335_p9 = scmp.lt.u32.totalorder %s8938_s22, %s10800_s11 }
 0x131   : > { %p8336_p12 = scmp.lt.u32.totalorder %s8334_s10, %s8329_s20  ;;  %p8338_p11 = scmp.lt.u32.totalorder %s8329_s20, %s8938_s22 }
 0x132   : > { %p8332_p2 = pnand %p8330_p6, %p10900_p13 }
 0x133   : > { %p8337_p0 = por %p8336_p12, %p8335_p9 }
 0x134   : > { %p8333_p5 = pneg %p8332_p2 }
 0x135   : > { %p8339_p7 = por %p8338_p11, %p8337_p0 }
 0x137   : > { %p8340_p3 = pnand %p8339_p7, %p8333_p5 }
 0x139   : > { %8343 = shalt.err (!%p8340_p3)
}
 0x13a   : > { %s8344_s18 = scalar_lea.vmem %s8942_s0, 16384  ;;  %s8494_s23 = smov [#allocation17]  }
 0x13b   : > { %p8345_p10 = scmp.ne.s32.totalorder %s8942_s0, %s8344_s18  ;;  %s8349_s15 = sshll.u32 %s8494_s23, 4  ;;  %s8350_s15 = int_to_ptr.vmem [resolvable:$false] %s8349_s15 }
 0x13c   : > { %s8351_s16 = scalar_lea.vmem %s8350_s15, 32768  ;;  %p8352_p6 = scmp.lt.s32.totalorder %s8942_s0, %s8350_s15 }
 0x13d   : > { %p8347_p1 = pnand %p8345_p10, %p10900_p13  ;;  %p8353_p2 = scmp.lt.s32.totalorder %s8351_s16, %s8344_s18 }
 0x13f   : > { %p8348_p4 = pneg %p8347_p1  ;;  %p8354_p9 = por %p8353_p2, %p8352_p6 }
 0x141   : > { %p8355_p12 = pnand %p8354_p9, %p8348_p4 }
 0x143   : > { %8358 = shalt.err (!%p8355_p12)
}
 0x144   : > { %s8495_s28 = smov 512   ;;  %s8496_s8 = smov 32  }
 0x145   : > { %s10907_s6 = scalar_lea.sflag [#allocation16], %s8706_s25  ;;  %s8972_s24 = scalar_lea.hbm %s10802_s13, %s7078_s29 }
 0x146   : > { %7341 = dma.hbm_to_vmem [thread:$0]  (!%p10901_p8), %s8938_s22, 16384, %s8942_s0, %s10907_s6, %s8495_s28, %s8495_s28, %s8496_s8  }
 0x147   : > { %s730_s10 = scalar_lea.vmem [#allocation18], %s6590_s19  ;;  %s727_s17 = scalar_lea.sflag [#allocation19], %s8706_s25 }
 0x148   : > { %s737_s27 = sshll.u32 %s730_s10, 4  ;;  %s8359_s18 = scalar_lea.hbm %s8972_s24, 16384  ;;  %s8976_s27 = int_to_ptr.vmem [resolvable:$true] %s737_s27 }
 0x149   : > { %p8360_p5 = scmp.ne.s32.totalorder %s8972_s24, %s8359_s18  ;;  %s8364_s29 = scalar_lea.hbm %s10802_s13, 32768 }
 0x14a   : > { %p8365_p7 = scmp.lt.u32.totalorder %s8972_s24, %s10802_s13  ;;  %p8366_p3 = scmp.lt.u32.totalorder %s8364_s29, %s8359_s18 }
 0x14b   : > { %p8362_p0 = pnand %p8360_p5, %p10900_p13  ;;  %p8368_p1 = scmp.lt.u32.totalorder %s8359_s18, %s8972_s24 }
 0x14c   : > { %p8367_p10 = por %p8366_p3, %p8365_p7 }
 0x14d   : > { %p8363_p11 = pneg %p8362_p0 }
 0x14e   : > { %p8369_p4 = por %p8368_p1, %p8367_p10 }
 0x150   : > { %p8370_p6 = pnand %p8369_p4, %p8363_p11 }
 0x152   : > { %8373 = shalt.err (!%p8370_p6)
}
 0x153   : > { %s8374_s19 = scalar_lea.vmem %s8976_s27, 16384  ;;  %s8497_s23 = smov [#allocation18]  }
 0x154   : > { %p8375_p2 = scmp.ne.s32.totalorder %s8976_s27, %s8374_s19  ;;  %s8379_s15 = sshll.u32 %s8497_s23, 4  ;;  %s8380_s15 = int_to_ptr.vmem [resolvable:$false] %s8379_s15 }
 0x155   : > { %s8381_s16 = scalar_lea.vmem %s8380_s15, 32768  ;;  %p8382_p5 = scmp.lt.s32.totalorder %s8976_s27, %s8380_s15 }
 0x156   : > { %p8377_p9 = pnand %p8375_p2, %p10900_p13  ;;  %p8383_p0 = scmp.lt.s32.totalorder %s8381_s16, %s8374_s19 }
 0x158   : > { %p8378_p12 = pneg %p8377_p9  ;;  %p8384_p7 = por %p8383_p0, %p8382_p5 }
 0x15a   : > { %p8385_p3 = pnand %p8384_p7, %p8378_p12 }
 0x15c   : > { %8388 = shalt.err (!%p8385_p3)
}
 0x15d   : > { %7344 = dma.hbm_to_vmem [thread:$0]  (!%p10901_p8), %s8972_s24, 16384, %s8976_s27, %s727_s17, %s10905_s3, %s10905_s3, %s10904_s26  }
 0x15e   : > { %p10908_p13 = scmp.ne.s32.totalorder %s10882_s1, 0 }
 0x160   : > { %756 = sbr.rel (%p10908_p13) target bundleno = 4644 (0x1224), region = 92 }
 0x167   : > { %s10909_s21 = sld [smem:[#allocation32_spill]] }
 0x16d   : > { %p10910_p11 = scmp.eq.s32.totalorder %s10909_s21, 0 }
 0x16f   : > { %8432 = dma.done.wait (%p10910_p11), [#allocation4], 1536   ;;  %p10911_p10 = pmov %p10910_p11 }
 0x171   : > { %8434 = vsyncadd (%p10911_p10), [#allocation4], 4294965760  ;;  %p10912_p1 = pmov %p10911_p10 }
 0x173   : > { %8436 = dma.done.wait (%p10912_p1), [#allocation7], 4864   ;;  %p10913_p4 = pmov %p10912_p1 }
 0x174   : > { %s10914_s25 = sld [smem:[#allocation30_spill]]  ;;  %s10915_s14 = sld [smem:[#allocation33_spill]] }
 0x175   : > { %8438 = vsyncadd (%p10913_p4), [#allocation7], 4294962432  ;;  %s770_s28 = sand.u32 1, %s10909_s21  }
 0x176   : > { %s771_s1 = scalar_lea.sflag [#allocation10], %s770_s28 }
 0x17a   : > { %s772_s26 = sand.u32 1, %s10914_s25   ;;  %p10916_p8 = scmp.ne.s32.totalorder %s10915_s14, 0 }
 0x17b   : > { %s9017_s3 = sshll.u32 %s772_s26, 1 }
 0x17c   : > { %8440 = dma.done.wait (%p10916_p8), %s771_s1, 64  }
 0x17d   : > { %8442 = vsyncadd (%p10916_p8), %s771_s1, 4294967232  ;;  %s7274_s6 = smul.u32 768, %s772_s26  ;;  %s789_s5 = scalar_lea.sflag [#allocation13], %s770_s28 }
 0x17f   : > { %s9025_s24 = scalar_lea.vmem [#allocation12], %s7274_s6 }
 0x180   : > { %8444 = dma.done.wait (%p10916_p8), %s789_s5, 16384  }
 0x181   : > { %8446 = vsyncadd (%p10916_p8), %s789_s5, 4294950912  ;;  %s6602_s10 = sshll.u32 %s772_s26, 8  ;;  %s807_s17 = scalar_lea.sflag [#allocation16], %s770_s28 }
 0x182   : > { %s9031_s27 = scalar_lea.vmem [#allocation14], %s6602_s10 }
 0x183   : > { %8448 = dma.done.wait (%p10916_p8), %s807_s17, 16416  }
 0x184   : > { %8450 = vsyncadd (%p10916_p8), %s807_s17, 4294950880  ;;  %s6604_s30 = sshll.u32 %s772_s26, 10  ;;  %s825_s29 = scalar_lea.sflag [#allocation19], %s770_s28 }
 0x185   : > { %s9038_s22 = scalar_lea.vmem [#allocation17], %s6604_s30  ;;  %s9040_s0 = scalar_lea.vmem [#allocation18], %s6604_s30 }
 0x186   : > { %8452 = dma.done.wait (%p10916_p8), %s825_s29, 16384  }
 0x187   : > { %8454 = vsyncadd (%p10916_p8), %s825_s29, 4294950912  ;;  %p10917_p6 = pmov %p10912_p1 }
 0x188   : > { %p10918_p2 = pmov %p10912_p1 }
 0x189   : > { %8456 = dma.done.wait (%p10917_p6), [#allocation19], 4096  }
 0x18a   : > { %8458 = vsyncadd (%p10918_p2), [#allocation19], 4294963200  ;;  %p930_p9 = scmp.lt.s32.totalorder %s10909_s21, 1  ;;  %s10919_s25 = sld [smem:[#allocation61_spill]] }
 0x18b   : > { %s10920_s1 = sld [smem:[#allocation62_spill]]  ;;  %s10921_s17 = sld [smem:[#allocation58_spill]] }
 0x18c   : > { %s931_s2 = scalar_select %p930_p9, %s10909_s21, 1 }
 0x18d   : > { %s10922_s8 = sld [smem:[#allocation63_spill]]  ;;  %s10923_s16 = sld [smem:[#allocation64_spill]] }
 0x18e   : > { %s7275_s19 = smul.u32 6, %s931_s2  ;;  %s9052_s23 = sshll.u32 %s931_s2, 1 }
 0x18f   : > { %s6609_s29 = sshll.u32 %s931_s2, 3  ;;  %p10924_p12 = scmp.ne.s32.totalorder %s10909_s21, 0 }
 0x190   : > { %s937_s14 = scalar_lea.vmem %s10919_s25, %s9052_s23  ;;  %v7403_v0 = vld [vmem:[#allocation6 + $0x4] ss:$8 sps:$4 sm:$0xff] (!%p10924_p12)   ;;  %v7405_v1 = vld [vmem:[#allocation6] ss:$8 sps:$4 sm:$0xff] (!%p10924_p12)   ;;  %v7406_v2 = vld [vmem:[#allocation6 + $0x14] ss:$8 sps:$4 sm:$0xff] (!%p10924_p12)  }
 0x191   : > { %s941_s6 = scalar_lea.vmem %s10920_s1, %s9052_s23  ;;  %s9065_s30 = scalar_lea.vmem %s10921_s17, %s7275_s19  ;;  %7176 = vmatprep.subr.bf16.mxu1 (!%p10924_p12), %v7403_v0  ;;  %1165 = vmatprep.subr.bf16.mxu0 (!%p10924_p12), %v7403_v0  ;;  %v7408_v3 = vld [vmem:[#allocation6 + $0x10] ss:$8 sps:$4 sm:$0xff] (!%p10924_p12)   ;;  %v7409_v4 = vld [vmem:[#allocation6 + $0x24] ss:$8 sps:$4 sm:$0xff] (!%p10924_p12)   ;;  %v7411_v5 = vld [vmem:[#allocation6 + $0x20] ss:$8 sps:$4 sm:$0xff] (!%p10924_p12)  }
 0x192   : > { %954 = sbr.rel (%p10924_p12) target bundleno = 691 (0x2b3), region = 140  ;;  %7192 = vmatpush1.bf16.msra.mxu1 (!%p10924_p12), %v7405_v1  ;;  %1166 = vmatpush1.bf16.msra.mxu0 (!%p10924_p12), %v7405_v1  ;;  %v7412_v6 = vld [vmem:[#allocation6 + $0x34] ss:$8 sps:$4 sm:$0xff] (!%p10924_p12)   ;;  %v7414_v7 = vld [vmem:[#allocation6 + $0x30] ss:$8 sps:$4 sm:$0xff] (!%p10924_p12)   ;;  %v960_v13 = vld [vmem:[#allocation3 + $0x28] sm:$0xff] (!%p10924_p12) }
 0x193   : > { %s9070_s4 = scalar_lea.vmem %s10922_s8, %s6609_s29  ;;  %s949_s9 = scalar_lea.vmem %s10923_s16, %s9052_s23  ;;  %7177 = vmatprep.subr.bf16.mxu1 (!%p10924_p12), %v7406_v2  ;;  %1167 = vmatprep.subr.bf16.mxu0 (!%p10924_p12), %v7406_v2  ;;  %v7415_v8 = vld [vmem:[#allocation6 + $0x44] ss:$8 sps:$4 sm:$0xff] (!%p10924_p12)   ;;  %v7417_v9 = vld [vmem:[#allocation6 + $0x40] ss:$8 sps:$4 sm:$0xff] (!%p10924_p12)   ;;  %v7418_v10 = vld [vmem:[#allocation6 + $0x54] ss:$8 sps:$4 sm:$0xff] (!%p10924_p12)  }
 0x194   : > { %v7420_v11 = vld [vmem:[#allocation6 + $0x50] ss:$8 sps:$4 sm:$0xff] (!%p10924_p12)   ;;  %v7421_v12 = vld [vmem:[#allocation6 + $0x64] ss:$8 sps:$4 sm:$0xff] (!%p10924_p12)   ;;  %v7423_v17 = vld [vmem:[#allocation6 + $0x60] ss:$8 sps:$4 sm:$0xff] (!%p10924_p12)  }
 0x195   : > { %v962_v14 = vld [vmem:[#allocation3 + $0x38] sm:$0xff] (!%p10924_p12)  ;;  %v956_v16 = vld [vmem:[#allocation3 + $0x8] sm:$0xff] (!%p10924_p12)  ;;  %v959_v38 = vld [vmem:[#allocation3 + $0x20] sm:$0xff] (!%p10924_p12) }
 0x196   : > { %7193 = vmatpush1.bf16.msra.mxu1 (!%p10924_p12), %v7408_v3  ;;  %1168 = vmatpush1.bf16.msra.mxu0 (!%p10924_p12), %v7408_v3  ;;  %v970_v15 = vpack.c.bf16 (!%p10924_p12), %v962_v14, %v960_v13  ;;  %v958_v18 = vld [vmem:[#allocation3 + $0x18] sm:$0xff] (!%p10924_p12)  ;;  %v7427_v22 = vld [vmem:[#allocation6 + $0x84] ss:$8 sps:$4 sm:$0xff] (!%p10924_p12)   ;;  %v7429_v23 = vld [vmem:[#allocation6 + $0x80] ss:$8 sps:$4 sm:$0xff] (!%p10924_p12)  }
 0x197   : > { %7178 = vmatprep.subr.bf16.mxu1 (!%p10924_p12), %v7409_v4  ;;  %1169 = vmatprep.subr.bf16.mxu0 (!%p10924_p12), %v7409_v4  ;;  %v7424_v19 = vld [vmem:[#allocation6 + $0x74] ss:$8 sps:$4 sm:$0xff] (!%p10924_p12)   ;;  %v968_v20 = vpack.c.bf16 (!%p10924_p12), %v958_v18, %v956_v16  ;;  %v7426_v21 = vld [vmem:[#allocation6 + $0x70] ss:$8 sps:$4 sm:$0xff] (!%p10924_p12)   ;;  %v7433_v26 = vld [vmem:[#allocation6 + $0xa4] ss:$8 sps:$4 sm:$0xff] (!%p10924_p12)  }
 0x198   : > { %1207 = vmatprep.mubr.bf16.mxu1 (!%p10924_p12), %v970_v15  ;;  %v7430_v24 = vld [vmem:[#allocation6 + $0x94] ss:$8 sps:$4 sm:$0xff] (!%p10924_p12)   ;;  %v7432_v25 = vld [vmem:[#allocation6 + $0x90] ss:$8 sps:$4 sm:$0xff] (!%p10924_p12)   ;;  %v7435_v27 = vld [vmem:[#allocation6 + $0xa0] ss:$8 sps:$4 sm:$0xff] (!%p10924_p12)  }
 0x199   : > { %1197 = vmatprep.mubr.bf16.mxu0 %v968_v20  ;;  %v7436_v28 = vld [vmem:[#allocation6 + $0xb4] ss:$8 sps:$4 sm:$0xff]   ;;  %v7438_v29 = vld [vmem:[#allocation6 + $0xb0] ss:$8 sps:$4 sm:$0xff]   ;;  %v7439_v30 = vld [vmem:[#allocation6 + $0xc4] ss:$8 sps:$4 sm:$0xff]  }
 0x19a   : > { %7194 = vmatpush1.bf16.msra.mxu1 %v7411_v5  ;;  %1170 = vmatpush1.bf16.msra.mxu0 %v7411_v5  ;;  %v7441_v31 = vld [vmem:[#allocation6 + $0xc0] ss:$8 sps:$4 sm:$0xff]   ;;  %v7442_v32 = vld [vmem:[#allocation6 + $0xd4] ss:$8 sps:$4 sm:$0xff]   ;;  %v7444_v33 = vld [vmem:[#allocation6 + $0xd0] ss:$8 sps:$4 sm:$0xff]  }
 0x19b   : > { %7179 = vmatprep.subr.bf16.mxu1 %v7412_v6  ;;  %1171 = vmatprep.subr.bf16.mxu0 %v7412_v6  ;;  %v7445_v34 = vld [vmem:[#allocation6 + $0xe4] ss:$8 sps:$4 sm:$0xff]   ;;  %v7447_v35 = vld [vmem:[#allocation6 + $0xe0] ss:$8 sps:$4 sm:$0xff]   ;;  %v7448_v36 = vld [vmem:[#allocation6 + $0xf4] ss:$8 sps:$4 sm:$0xff]  }
 0x19c   : > { %v7450_v37 = vld [vmem:[#allocation6 + $0xf0] ss:$8 sps:$4 sm:$0xff]   ;;  %v955_v40 = vld [vmem:[#allocation3] sm:$0xff]  ;;  %v964_v42 = vld [vmem:[#allocation3 + $0x48] sm:$0xff] }
 0x19d   : > { %v961_v39 = vld [vmem:[#allocation3 + $0x30] sm:$0xff]  ;;  %v966_v43 = vld [vmem:[#allocation3 + $0x58] sm:$0xff]  ;;  %v963_v47 = vld [vmem:[#allocation3 + $0x40] sm:$0xff] }
 0x19e   : > { %7195 = vmatpush1.bf16.msra.mxu1 %v7414_v7  ;;  %1172 = vmatpush1.bf16.msra.mxu0 %v7414_v7  ;;  %v957_v41 = vld [vmem:[#allocation3 + $0x10] sm:$0xff]  ;;  %v969_v44 = vpack.c.bf16 %v961_v39, %v959_v38  ;;  %v972_v46 = vpack.c.bf16 %v966_v43, %v964_v42  ;;  %v1232_v50 = vld [vmem:[#allocation8 + $0x20] sm:$0xff]  ;;  %v1233_v51 = vld [vmem:[#allocation8 + $0x28] sm:$0xff] }
 0x19f   : > { %7180 = vmatprep.subr.bf16.mxu1 %v7415_v8  ;;  %1173 = vmatprep.subr.bf16.mxu0 %v7415_v8  ;;  %v967_v45 = vpack.c.bf16 %v957_v41, %v955_v40  ;;  %v965_v48 = vld [vmem:[#allocation3 + $0x50] sm:$0xff]  ;;  %v1228_v53 = vld [vmem:[#allocation8] sm:$0xff]  ;;  %v1229_v58 = vld [vmem:[#allocation8 + $0x8] sm:$0xff] }
 0x1a0   : > { %v971_v49 = vpack.c.bf16 %v965_v48, %v963_v47  ;;  %v1230_v55 = vld [vmem:[#allocation8 + $0x10] sm:$0xff]  ;;  %v1231_v61 = vld [vmem:[#allocation8 + $0x18] sm:$0xff] }
 0x1a2   : > { %7196 = vmatpush1.bf16.msra.mxu1 %v7417_v9  ;;  %1174 = vmatpush1.bf16.msra.mxu0 %v7417_v9 }
 0x1a3   : > { %7181 = vmatprep.subr.bf16.mxu1 %v7418_v10  ;;  %1175 = vmatprep.subr.bf16.mxu0 %v7418_v10 }
 0x1a6   : > { %7197 = vmatpush1.bf16.msra.mxu1 %v7420_v11  ;;  %1176 = vmatpush1.bf16.msra.mxu0 %v7420_v11 }
 0x1a7   : > { %7182 = vmatprep.subr.bf16.mxu1 %v7421_v12  ;;  %1177 = vmatprep.subr.bf16.mxu0 %v7421_v12 }
 0x1aa   : > { %7198 = vmatpush1.bf16.msra.mxu1 %v7423_v17  ;;  %1178 = vmatpush1.bf16.msra.mxu0 %v7423_v17 }
 0x1ab   : > { %7183 = vmatprep.subr.bf16.mxu1 %v7424_v19  ;;  %1179 = vmatprep.subr.bf16.mxu0 %v7424_v19 }
 0x1ae   : > { %7199 = vmatpush1.bf16.msra.mxu1 %v7426_v21  ;;  %1180 = vmatpush1.bf16.msra.mxu0 %v7426_v21 }
 0x1af   : > { %7184 = vmatprep.subr.bf16.mxu1 %v7427_v22  ;;  %1181 = vmatprep.subr.bf16.mxu0 %v7427_v22 }
 0x1b2   : > { %7200 = vmatpush1.bf16.msra.mxu1 %v7429_v23  ;;  %1182 = vmatpush1.bf16.msra.mxu0 %v7429_v23 }
 0x1b3   : > { %7185 = vmatprep.subr.bf16.mxu1 %v7430_v24  ;;  %1183 = vmatprep.subr.bf16.mxu0 %v7430_v24 }
 0x1b6   : > { %7201 = vmatpush1.bf16.msra.mxu1 %v7432_v25  ;;  %1184 = vmatpush1.bf16.msra.mxu0 %v7432_v25 }
 0x1b7   : > { %7186 = vmatprep.subr.bf16.mxu1 %v7433_v26  ;;  %1185 = vmatprep.subr.bf16.mxu0 %v7433_v26 }
 0x1ba   : > { %7202 = vmatpush1.bf16.msra.mxu1 %v7435_v27  ;;  %1186 = vmatpush1.bf16.msra.mxu0 %v7435_v27 }
 0x1bb   : > { %7187 = vmatprep.subr.bf16.mxu1 %v7436_v28  ;;  %1187 = vmatprep.subr.bf16.mxu0 %v7436_v28 }
 0x1be   : > { %7203 = vmatpush1.bf16.msra.mxu1 %v7438_v29  ;;  %1188 = vmatpush1.bf16.msra.mxu0 %v7438_v29 }
 0x1bf   : > { %7188 = vmatprep.subr.bf16.mxu1 %v7439_v30  ;;  %1189 = vmatprep.subr.bf16.mxu0 %v7439_v30 }
 0x1c2   : > { %7204 = vmatpush1.bf16.msra.mxu1 %v7441_v31  ;;  %1190 = vmatpush1.bf16.msra.mxu0 %v7441_v31 }
 0x1c3   : > { %7189 = vmatprep.subr.bf16.mxu1 %v7442_v32  ;;  %1191 = vmatprep.subr.bf16.mxu0 %v7442_v32 }
 0x1c6   : > { %7205 = vmatpush1.bf16.msra.mxu1 %v7444_v33  ;;  %1192 = vmatpush1.bf16.msra.mxu0 %v7444_v33 }
 0x1c7   : > { %7190 = vmatprep.subr.bf16.mxu1 %v7445_v34  ;;  %1193 = vmatprep.subr.bf16.mxu0 %v7445_v34 }
 0x1ca   : > { %7206 = vmatpush1.bf16.msra.mxu1 %v7447_v35  ;;  %1194 = vmatpush1.bf16.msra.mxu0 %v7447_v35 }
 0x1cb   : > { %7191 = vmatprep.subr.bf16.mxu1 %v7448_v36  ;;  %1195 = vmatprep.subr.bf16.mxu0 %v7448_v36 }
 0x1ce   : > { %7207 = vmatpush1.bf16.msra.mxu1 %v7450_v37  ;;  %1196 = vmatpush1.bf16.msra.mxu0 %v7450_v37 }
 0x1d1   : > { %1208 = vmatmul.mubr.bf16.vlgmr.msra.gmra.mrb[0].mxu1 %v969_v44  ;;  %1198 = vmatmul.mubr.bf16.vlgmr.msra.gmra.mrb[0].mxu0 %v967_v45 }
 0x1d2   : > { %1217 = vmatprep.mubr.bf16.mxu1 %v972_v46 }
 0x1d9   : > { %1218 = vmatmul.mubr.bf16.gmra.mrb[4].mxu1 %v971_v49 }
 0x2a4   : > { %v1209_v52 = vpop.f32.mrb[0].mxu1  ;;  %v1199_v54 = vpop.f32.mrb[0].mxu0 }
 0x2a5   : > { %v1238_v56 = vadd.f32 %v1232_v50, %v1209_v52  ;;  %v1211_v57 = vpop.f32.mrb[1].mxu1  ;;  %v1234_v59 = vadd.f32 %v1228_v53, %v1199_v54  ;;  %v1201_v60 = vpop.f32.mrb[1].mxu0 }
 0x2a6   : > { %v1239_v62 = vadd.f32 %v1233_v51, %v1211_v57  ;;  %v1213_v63 = vpop.f32.mrb[2].mxu1  ;;  %v1235_v0 = vadd.f32 %v1229_v58, %v1201_v60  ;;  %v1203_v1 = vpop.f32.mrb[2].mxu0 }
 0x2a7   : > { %1250 = vst [vmem:[#allocation2 + $0x20] sm:$0xff] %v1238_v56  ;;  %v1240_v2 = vadd.f32 %v1228_v53, %v1213_v63  ;;  %v1215_v3 = vpop.f32.mrb[3].mxu1  ;;  %1246 = vst [vmem:[#allocation2] sm:$0xff] %v1234_v59  ;;  %v1236_v4 = vadd.f32 %v1230_v55, %v1203_v1  ;;  %v1205_v5 = vpop.f32.mrb[3].mxu0 }
 0x2a8   : > { %1251 = vst [vmem:[#allocation2 + $0x28] sm:$0xff] %v1239_v62  ;;  %v1241_v6 = vadd.f32 %v1229_v58, %v1215_v3  ;;  %1247 = vst [vmem:[#allocation2 + $0x8] sm:$0xff] %v1235_v0  ;;  %v1237_v7 = vadd.f32 %v1231_v61, %v1205_v5 }
 0x2a9   : > { %1252 = vst [vmem:[#allocation2 + $0x30] sm:$0xff] %v1240_v2  ;;  %1248 = vst [vmem:[#allocation2 + $0x10] sm:$0xff] %v1236_v4 }
 0x2aa   : > { %1253 = vst [vmem:[#allocation2 + $0x38] sm:$0xff] %v1241_v6  ;;  %1249 = vst [vmem:[#allocation2 + $0x18] sm:$0xff] %v1237_v7 }
 0x2ac   : > { %v1219_v8 = vpop.f32.mrb[4].mxu1 }
 0x2ad   : > { %v1242_v9 = vadd.f32 %v1230_v55, %v1219_v8  ;;  %v1221_v10 = vpop.f32.mrb[5].mxu1 }
 0x2ae   : > { %v1243_v11 = vadd.f32 %v1231_v61, %v1221_v10  ;;  %v1223_v12 = vpop.f32.mrb[6].mxu1 }
 0x2af   : > { %1254 = vst [vmem:[#allocation2 + $0x40] sm:$0xff] %v1242_v9  ;;  %v1244_v13 = vadd.f32 %v1232_v50, %v1223_v12  ;;  %v1225_v14 = vpop.f32.mrb[7].mxu1 }
 0x2b0   : > { %1255 = vst [vmem:[#allocation2 + $0x48] sm:$0xff] %v1243_v11  ;;  %v1245_v15 = vadd.f32 %v1233_v51, %v1225_v14 }
 0x2b1   : > { %1256 = vst [vmem:[#allocation2 + $0x50] sm:$0xff] %v1244_v13 }
 0x2b2   : > { %1257 = vst [vmem:[#allocation2 + $0x58] sm:$0xff] %v1245_v15 }
 0x2b3 PF: > { %v9078_v16 = vld [vmem:[#allocation2] sm:$0xff]  ;;  %v9080_v17 = vld [vmem:[#allocation2 + $0x8] sm:$0xff]  ;;  %v9088_v21 = vld [vmem:[#allocation2 + $0x10] sm:$0xff]  ;;  %s10927_s7 = scalar_lea.vmem [#allocation9], %s9017_s3  ;;  %s10928_s21 = scalar_lea.vmem [#allocation11], %s9017_s3  ;;  %vm2451_vm0 = vcmask 1043456  }
 0x2b4   : > { %v9082_v18 = vld [vmem:[#allocation2 + $0x20] sm:$0xff]  ;;  %v1272_v19 = vadd.f32 %v9080_v17, %v9078_v16  ;;  %v9086_v20 = vld [vmem:[#allocation2 + $0x28] sm:$0xff]  ;;  %v9090_v22 = vld [vmem:[#allocation2 + $0x18] sm:$0xff]  ;;  %vm2374_vm2 = vcmask 195584   ;;  %s10929_s8 = scalar_lea.vmem [#allocation15], %s9017_s3 }
 0x2b5   : > { %v1278_v23 = vadd.f32 %v9086_v20, %v9082_v18  ;;  %v9094_v24 = vld [vmem:[#allocation2 + $0x30] sm:$0xff]  ;;  %v9096_v25 = vld [vmem:[#allocation2 + $0x38] sm:$0xff]  ;;  %v1275_v27 = vadd.f32 %v9090_v22, %v9088_v21  ;;  %v7454_v36 = vld [vmem:[%s9025_s24 + $0x34] ss:$24 sps:$4 sm:$0xff]  }
 0x2b6   : > { %v9098_v26 = vld [vmem:[#allocation2 + $0x40] sm:$0xff]  ;;  %1273 = vadd.xlane.f32.xlu0 %v1272_v19  ;;  %v1281_v31 = vadd.f32 %v9096_v25, %v9094_v24  ;;  %v7451_v34 = vld [vmem:[%s9025_s24 + $0x4] ss:$24 sps:$4 sm:$0xff]   ;;  %v7453_v35 = vld [vmem:[%s9025_s24] ss:$24 sps:$4 sm:$0xff]  }
 0x2b7   : > { %v9102_v28 = vld [vmem:[#allocation2 + $0x48] sm:$0xff]  ;;  %1279 = vadd.xlane.f32.xlu1 %v1278_v23  ;;  %2029 = vmatprep.subr.bf16.mxu0 %v7451_v34  ;;  %v7457_v38 = vld [vmem:[%s9025_s24 + $0x64] ss:$24 sps:$4 sm:$0xff]   ;;  %v7459_v39 = vld [vmem:[%s9025_s24 + $0x60] ss:$24 sps:$4 sm:$0xff]  }
 0x2b8   : > { %v9104_v29 = vld [vmem:[#allocation2 + $0x50] sm:$0xff]  ;;  %v1284_v32 = vadd.f32 %v9102_v28, %v9098_v26  ;;  %2030 = vmatpush1.bf16.msra.mxu0 %v7453_v35  ;;  %v7456_v37 = vld [vmem:[%s9025_s24 + $0x30] ss:$24 sps:$4 sm:$0xff]   ;;  %v7460_v40 = vld [vmem:[%s9025_s24 + $0x94] ss:$24 sps:$4 sm:$0xff]  }
 0x2b9   : > { %v9106_v30 = vld [vmem:[#allocation2 + $0x58] sm:$0xff]  ;;  %2031 = vmatprep.subr.bf16.mxu0 %v7454_v36  ;;  %v7462_v41 = vld [vmem:[%s9025_s24 + $0x90] ss:$24 sps:$4 sm:$0xff]   ;;  %v7466_v44 = vld [vmem:[%s9025_s24 + $0xf4] ss:$24 sps:$4 sm:$0xff]  }
 0x2ba   : > { %1276 = vadd.xlane.f32.xlu0 %v1275_v27  ;;  %v1287_v33 = vadd.f32 %v9106_v30, %v9104_v29  ;;  %v7463_v42 = vld [vmem:[%s9025_s24 + $0xc4] ss:$24 sps:$4 sm:$0xff]   ;;  %v7465_v43 = vld [vmem:[%s9025_s24 + $0xc0] ss:$24 sps:$4 sm:$0xff]   ;;  %v7468_v45 = vld [vmem:[%s9025_s24 + $0xf0] ss:$24 sps:$4 sm:$0xff]  }
 0x2bb   : > { %1282 = vadd.xlane.f32.xlu1 %v1281_v31  ;;  %v7469_v46 = vld [vmem:[%s9025_s24 + $0x124] ss:$24 sps:$4 sm:$0xff]   ;;  %v7471_v47 = vld [vmem:[%s9025_s24 + $0x120] ss:$24 sps:$4 sm:$0xff]   ;;  %v7472_v48 = vld [vmem:[%s9025_s24 + $0x154] ss:$24 sps:$4 sm:$0xff]  }
 0x2bc   : > { %2032 = vmatpush1.bf16.msra.mxu0 %v7456_v37  ;;  %v7474_v49 = vld [vmem:[%s9025_s24 + $0x150] ss:$24 sps:$4 sm:$0xff]   ;;  %v7475_v50 = vld [vmem:[%s9025_s24 + $0x184] ss:$24 sps:$4 sm:$0xff]   ;;  %v7477_v51 = vld [vmem:[%s9025_s24 + $0x180] ss:$24 sps:$4 sm:$0xff]  }
 0x2bd   : > { %2033 = vmatprep.subr.bf16.mxu0 %v7457_v38  ;;  %v7478_v52 = vld [vmem:[%s9025_s24 + $0x1b4] ss:$24 sps:$4 sm:$0xff]   ;;  %v7480_v31 = vld [vmem:[%s9025_s24 + $0x1b0] ss:$24 sps:$4 sm:$0xff]   ;;  %v7487_v36 = vld [vmem:[%s9025_s24 + $0x244] ss:$24 sps:$4 sm:$0xff]  }
 0x2be   : > { %1285 = vadd.xlane.f32.xlu0 %v1284_v32  ;;  %v7481_v32 = vld [vmem:[%s9025_s24 + $0x1e4] ss:$24 sps:$4 sm:$0xff]   ;;  %v7484_v34 = vld [vmem:[%s9025_s24 + $0x214] ss:$24 sps:$4 sm:$0xff]   ;;  %v7486_v35 = vld [vmem:[%s9025_s24 + $0x210] ss:$24 sps:$4 sm:$0xff]  }
 0x2bf   : > { %1288 = vadd.xlane.f32.xlu1 %v1287_v33  ;;  %v7483_v33 = vld [vmem:[%s9025_s24 + $0x1e0] ss:$24 sps:$4 sm:$0xff]   ;;  %v7490_v38 = vld [vmem:[%s9025_s24 + $0x274] ss:$24 sps:$4 sm:$0xff]  }
 0x2c0   : > { %2034 = vmatpush1.bf16.msra.mxu0 %v7459_v39  ;;  %v7489_v37 = vld [vmem:[%s9025_s24 + $0x240] ss:$24 sps:$4 sm:$0xff]   ;;  %v7492_v39 = vld [vmem:[%s9025_s24 + $0x270] ss:$24 sps:$4 sm:$0xff]  }
 0x2c1   : > { %2035 = vmatprep.subr.bf16.mxu0 %v7460_v40  ;;  %v7493_v40 = vld [vmem:[%s9025_s24 + $0x2a4] ss:$24 sps:$4 sm:$0xff]  }
 0x2c4   : > { %2036 = vmatpush1.bf16.msra.mxu0 %v7462_v41  ;;  %v7495_v41 = vld [vmem:[%s9025_s24 + $0x2a0] ss:$24 sps:$4 sm:$0xff]  }
 0x2c5   : > { %2037 = vmatprep.subr.bf16.mxu0 %v7463_v42  ;;  %v7496_v42 = vld [vmem:[%s9025_s24 + $0x2d4] ss:$24 sps:$4 sm:$0xff]  }
 0x2c8   : > { %2038 = vmatpush1.bf16.msra.mxu0 %v7465_v43  ;;  %v7498_v43 = vld [vmem:[%s9025_s24 + $0x2d0] ss:$24 sps:$4 sm:$0xff]  }
 0x2c9   : > { %2039 = vmatprep.subr.bf16.mxu0 %v7466_v44  ;;  %v7501_v44 = vld [vmem:[%s9025_s24 + $0xc] ss:$24 sps:$4 sm:$0xff]  }
 0x2cc   : > { %2040 = vmatpush1.bf16.msra.mxu0 %v7468_v45 }
 0x2cd   : > { %2041 = vmatprep.subr.bf16.mxu0 %v7469_v46 }
 0x2d0   : > { %2042 = vmatpush1.bf16.msra.mxu0 %v7471_v47 }
 0x2d1   : > { %2043 = vmatprep.subr.bf16.mxu0 %v7472_v48  ;;  %v1370_v48 = vlaneseq }
 0x2d4   : > { %2044 = vmatpush1.bf16.msra.mxu0 %v7474_v49 }
 0x2d5   : > { %2045 = vmatprep.subr.bf16.mxu0 %v7475_v50 }
 0x2d8   : > { %2046 = vmatpush1.bf16.msra.mxu0 %v7477_v51 }
 0x2d9   : > { %2047 = vmatprep.subr.bf16.mxu0 %v7478_v52 }
 0x2dc   : > { %2048 = vmatpush1.bf16.msra.mxu0 %v7480_v31 }
 0x2dd   : > { %2049 = vmatprep.subr.bf16.mxu0 %v7481_v32 }
 0x2e0   : > { %2050 = vmatpush1.bf16.msra.mxu0 %v7483_v33 }
 0x2e1   : > { %2051 = vmatprep.subr.bf16.mxu0 %v7484_v34 }
 0x2e4   : > { %2052 = vmatpush1.bf16.msra.mxu0 %v7486_v35 }
 0x2e5   : > { %2053 = vmatprep.subr.bf16.mxu0 %v7487_v36 }
 0x2e8   : > { %2054 = vmatpush1.bf16.msra.mxu0 %v7489_v37 }
 0x2e9   : > { %2055 = vmatprep.subr.bf16.mxu0 %v7490_v38 }
 0x2ec   : > { %2056 = vmatpush1.bf16.msra.mxu0 %v7492_v39 }
 0x2ed   : > { %2057 = vmatprep.subr.bf16.mxu0 %v7493_v40 }
 0x2f0   : > { %2058 = vmatpush1.bf16.msra.mxu0 %v7495_v41 }
 0x2f1   : > { %2059 = vmatprep.subr.bf16.mxu0 %v7496_v42 }
 0x2f4   : > { %2060 = vmatpush1.bf16.msra.mxu0 %v7498_v43 }
 0x2f5   : > { %2092 = vmatprep.subr.bf16.mxu0 %v7501_v44  ;;  %v7504_v44 = vld [vmem:[%s9025_s24 + $0x3c] ss:$24 sps:$4 sm:$0xff]  }
 0x343   : > { %v1274_v53 = vpop.xlane.xlu0 %1273 }
 0x344   : > { %v1291_v54 = vmul.f32 0.00390625, %v1274_v53  ;;  %v1280_v55 = vpop.xlane.xlu1 %1279 }
 0x345   : > { %v1293_v56 = vmul.f32 0.00390625, %v1280_v55  ;;  %v9208_v55 = vshrl.u32 %v1370_v48, 7 }
 0x346   : > { %v9134_v57 = vsub.f32 %v9078_v16, %v1291_v54  ;;  %v9137_v58 = vsub.f32 %v9080_v17, %v1291_v54 }
 0x347   : > { %v9140_v59 = vsub.f32 %v9082_v18, %v1293_v56  ;;  %v9143_v60 = vsub.f32 %v9086_v20, %v1293_v56  ;;  %v1277_v61 = vpop.xlane.xlu0 %1276 }
 0x348   : > { %v1292_v62 = vmul.f32 0.00390625, %v1277_v61  ;;  %v1283_v63 = vpop.xlane.xlu1 %1282  ;;  %v1309_v0 = vmul.f32 %v9134_v57, %v9134_v57  ;;  %v1310_v1 = vmul.f32 %v9137_v58, %v9137_v58 }
 0x349   : > { %v1294_v2 = vmul.f32 0.00390625, %v1283_v63  ;;  %v1313_v3 = vmul.f32 %v9140_v59, %v9140_v59  ;;  %v1314_v4 = vmul.f32 %v9143_v60, %v9143_v60 }
 0x34a   : > { %v9154_v5 = vsub.f32 %v9088_v21, %v1292_v62  ;;  %v9157_v6 = vsub.f32 %v9090_v22, %v1292_v62  ;;  %v1321_v7 = vadd.f32 %v1310_v1, %v1309_v0 }
 0x34b   : > { %v9160_v8 = vsub.f32 %v9094_v24, %v1294_v2  ;;  %v9163_v9 = vsub.f32 %v9096_v25, %v1294_v2  ;;  %v1286_v10 = vpop.xlane.xlu0 %1285  ;;  %v1327_v13 = vadd.f32 %v1314_v4, %v1313_v3  ;;  %v9211_v2 = vsub.s32 1, %v9208_v55 }
 0x34c   : > { %v1295_v11 = vmul.f32 0.00390625, %v1286_v10  ;;  %1322 = vadd.xlane.f32.xlu0 %v1321_v7  ;;  %v1289_v12 = vpop.xlane.xlu1 %1288  ;;  %v1311_v14 = vmul.f32 %v9154_v5, %v9154_v5  ;;  %v1312_v15 = vmul.f32 %v9157_v6, %v9157_v6  ;;  %v9214_v3 = vsub.s32 0, %v9208_v55  ;;  %v1270_v7 = vld [vmem:[%s10927_s7] sm:$0x3] }
 0x34d   : > { %v1296_v16 = vmul.f32 0.00390625, %v1289_v12  ;;  %v1315_v17 = vmul.f32 %v9160_v8, %v9160_v8  ;;  %v1316_v18 = vmul.f32 %v9163_v9, %v9163_v9  ;;  %10925 = vst [vmem:[#allocation36_spill] sm:$0xff] %v9211_v2 }
 0x34e   : > { %v9174_v19 = vsub.f32 %v9098_v26, %v1295_v11  ;;  %v9177_v20 = vsub.f32 %v9102_v28, %v1295_v11  ;;  %v1324_v21 = vadd.f32 %v1312_v15, %v1311_v14  ;;  %10926 = vst [vmem:[#allocation37_spill] sm:$0xff] %v9214_v3  ;;  %v1373_v14 = vrot.slane %v1270_v7, %v9214_v3  ;;  %v1271_v15 = vld [vmem:[%s10928_s21] sm:$0x3] }
 0x34f   : > { %v9180_v22 = vsub.f32 %v9104_v29, %v1296_v16  ;;  %v9183_v23 = vsub.f32 %v9106_v30, %v1296_v16  ;;  %v1330_v24 = vadd.f32 %v1316_v18, %v1315_v17 }
 0x350   : > { %1328 = vadd.xlane.f32.xlu0 %v1327_v13  ;;  %1325 = vadd.xlane.f32.xlu1 %v1324_v21  ;;  %v1317_v25 = vmul.f32 %v9174_v19, %v9174_v19  ;;  %v1318_v26 = vmul.f32 %v9177_v20, %v9177_v20  ;;  %v1377_v13 = vrot.slane %v1270_v7, %v9211_v2  ;;  %v7513_v7 = vld [vmem:[%s9025_s24 + $0xcc] ss:$24 sps:$4 sm:$0xff]  }
 0x351   : > { %v1319_v27 = vmul.f32 %v9180_v22, %v9180_v22  ;;  %v1320_v28 = vmul.f32 %v9183_v23, %v9183_v23 }
 0x352   : > { %v1333_v29 = vadd.f32 %v1318_v26, %v1317_v25  ;;  %v1396_v26 = vrot.slane %v1271_v15, %v9214_v3 }
 0x353   : > { %v1336_v30 = vadd.f32 %v1320_v28, %v1319_v27 }
 0x354   : > { %1331 = vadd.xlane.f32.xlu1 %v1330_v24  ;;  %1334 = vadd.xlane.f32.xlu0 %v1333_v29  ;;  %v1400_v24 = vrot.slane %v1271_v15, %v9211_v2  ;;  %v7514_v15 = vld [vmem:[%s9025_s24 + $0xf8] ss:$24 sps:$4 sm:$0xff]  }
 0x358   : > { %1337 = vadd.xlane.f32.xlu1 %v1336_v30 }
 0x3d9   : > { %v1323_v45 = vpop.xlane.xlu0 %1322 }
 0x3da   : > { %v1339_v46 = vmul.f32 0.00390625, %v1323_v45 }
 0x3dc   : > { %v1345_v47 = vadd.f32 1e-06, %v1339_v46 }
 0x3dd   : > { %v1326_v49 = vpop.xlane.xlu1 %1325  ;;  %v1329_v50 = vpop.xlane.xlu0 %1328 }
 0x3de   : > { %7835 = vrsqrt.f32 %v1345_v47  ;;  %v1340_v51 = vmul.f32 0.00390625, %v1326_v49  ;;  %v1341_v52 = vmul.f32 0.00390625, %v1329_v50  ;;  %v7502_v49 = vld [vmem:[%s9025_s24 + $0x38] ss:$24 sps:$4 sm:$0xff]  }
 0x3e0   : > { %v1346_v53 = vadd.f32 1e-06, %v1340_v51  ;;  %v1347_v54 = vadd.f32 1e-06, %v1341_v52  ;;  %v7507_v51 = vld [vmem:[%s9025_s24 + $0x6c] ss:$24 sps:$4 sm:$0xff]  }
 0x3e1   : > { %v1332_v56 = vpop.xlane.xlu1 %1331  ;;  %v1335_v61 = vpop.xlane.xlu0 %1334 }
 0x3e2   : > { %7837 = vrsqrt.f32 %v1346_v53  ;;  %v1342_v62 = vmul.f32 0.00390625, %v1332_v56  ;;  %v1343_v63 = vmul.f32 0.00390625, %v1335_v61  ;;  %v7505_v61 = vld [vmem:[%s9025_s24 + $0x68] ss:$24 sps:$4 sm:$0xff]  }
 0x3e3   : > { %7839 = vrsqrt.f32 %v1347_v54 }
 0x3e4   : > { %v1348_v0 = vadd.f32 1e-06, %v1342_v62  ;;  %v1349_v1 = vadd.f32 1e-06, %v1343_v63 }
 0x3e5   : > { %v1338_v4 = vpop.xlane.xlu1 %1337 }
 0x3e6   : > { %7841 = vrsqrt.f32 %v1348_v0  ;;  %v1344_v10 = vmul.f32 0.00390625, %v1338_v4  ;;  %v7510_v0 = vld [vmem:[%s9025_s24 + $0x9c] ss:$24 sps:$4 sm:$0xff]  }
 0x3e7   : > { %7843 = vrsqrt.f32 %v1349_v1 }
 0x3e8   : > { %v7836_v11 = vpop.eup %7835  ;;  %v1350_v12 = vadd.f32 1e-06, %v1344_v10 }
 0x3e9   : > { %v1358_v16 = vmul.f32 %v7836_v11, %v9137_v58  ;;  %v1357_v17 = vmul.f32 %v7836_v11, %v9134_v57 }
 0x3ea   : > { %7845 = vrsqrt.f32 %v1350_v12  ;;  %v7511_v12 = vld [vmem:[%s9025_s24 + $0xc8] ss:$24 sps:$4 sm:$0xff]  }
 0x3eb   : > { %v1381_v21 = vmul.f32 %v1377_v13, %v1358_v16  ;;  %v1380_v25 = vmul.f32 %v1373_v14, %v1357_v17  ;;  %v7519_v16 = vld [vmem:[%s9025_s24 + $0x12c] ss:$24 sps:$4 sm:$0xff]   ;;  %v7517_v17 = vld [vmem:[%s9025_s24 + $0x128] ss:$24 sps:$4 sm:$0xff]  }
 0x3ec   : > { %v7838_v18 = vpop.eup %7837 }
 0x3ed   : > { %v7840_v27 = vpop.eup %7839  ;;  %v1360_v28 = vmul.f32 %v7838_v18, %v9157_v6  ;;  %v1359_v29 = vmul.f32 %v7838_v18, %v9154_v5  ;;  %v1404_v57 = vadd.f32 %v1400_v24, %v1381_v21  ;;  %v1403_v33 = vadd.f32 %v1396_v26, %v1380_v25  ;;  %v7522_v18 = vld [vmem:[%s9025_s24 + $0x15c] ss:$24 sps:$4 sm:$0xff]   ;;  %v7520_v21 = vld [vmem:[%s9025_s24 + $0x158] ss:$24 sps:$4 sm:$0xff]   ;;  %v7523_v25 = vld [vmem:[%s9025_s24 + $0x188] ss:$24 sps:$4 sm:$0xff]  }
 0x3ee   : > { %v1362_v30 = vmul.f32 %v7840_v27, %v9143_v60  ;;  %v1361_v6 = vmul.f32 %v7840_v27, %v9140_v59  ;;  %v7499_v60 = vld [vmem:[%s9025_s24 + $0x8] ss:$24 sps:$4 sm:$0xff]   ;;  %v7526_v27 = vld [vmem:[%s9025_s24 + $0x1b8] ss:$24 sps:$4 sm:$0xff]  }
 0x3ef   : > { %v1383_v31 = vmul.f32 %v1377_v13, %v1360_v28  ;;  %v1382_v58 = vmul.f32 %v1373_v14, %v1359_v29  ;;  %v7531_v28 = vld [vmem:[%s9025_s24 + $0x1ec] ss:$24 sps:$4 sm:$0xff]   ;;  %v7529_v29 = vld [vmem:[%s9025_s24 + $0x1e8] ss:$24 sps:$4 sm:$0xff]  }
 0x3f0   : > { %v7842_v32 = vpop.eup %7841  ;;  %v1385_v34 = vmul.f32 %v1377_v13, %v1362_v30  ;;  %v1384_v59 = vmul.f32 %v1373_v14, %v1361_v6  ;;  %v7534_v30 = vld [vmem:[%s9025_s24 + $0x21c] ss:$24 sps:$4 sm:$0xff]  }
 0x3f1   : > { %v7844_v35 = vpop.eup %7843  ;;  %v1406_v36 = vadd.f32 %v1400_v24, %v1383_v31  ;;  %v1405_v37 = vadd.f32 %v1396_v26, %v1382_v58  ;;  %v1364_v38 = vmul.f32 %v7842_v32, %v9163_v9  ;;  %v1363_v39 = vmul.f32 %v7842_v32, %v9160_v8  ;;  %v7532_v31 = vld [vmem:[%s9025_s24 + $0x218] ss:$24 sps:$4 sm:$0xff]   ;;  %v7537_v58 = vld [vmem:[%s9025_s24 + $0x24c] ss:$24 sps:$4 sm:$0xff]   ;;  %v7535_v32 = vld [vmem:[%s9025_s24 + $0x248] ss:$24 sps:$4 sm:$0xff]  }
 0x3f2   : > { %v1366_v42 = vmul.f32 %v7844_v35, %v9177_v20  ;;  %v1408_v9 = vadd.f32 %v1400_v24, %v1385_v34  ;;  %v1407_v54 = vadd.f32 %v1396_v26, %v1384_v59  ;;  %v1365_v56 = vmul.f32 %v7844_v35, %v9174_v19  ;;  %v7508_v19 = vld [vmem:[%s9025_s24 + $0x98] ss:$24 sps:$4 sm:$0xff]   ;;  %v7543_v34 = vld [vmem:[%s9025_s24 + $0x2ac] ss:$24 sps:$4 sm:$0xff]   ;;  %v7541_v35 = vld [vmem:[%s9025_s24 + $0x2a8] ss:$24 sps:$4 sm:$0xff]  }
 0x3f3   : > { %v9232_v40 = vpack.c.bf16 %v1406_v36, %v1404_v57  ;;  %v9235_v5 = vpack.c.bf16 %v1405_v37, %v1403_v33  ;;  %v1387_v41 = vmul.f32 %v1377_v13, %v1364_v38  ;;  %v1386_v45 = vmul.f32 %v1373_v14, %v1363_v39  ;;  %v7540_v57 = vld [vmem:[%s9025_s24 + $0x27c] ss:$24 sps:$4 sm:$0xff]   ;;  %v7538_v33 = vld [vmem:[%s9025_s24 + $0x278] ss:$24 sps:$4 sm:$0xff]  }
 0x3f4   : > { %v7846_v43 = vpop.eup %7845  ;;  %v1389_v20 = vmul.f32 %v1377_v13, %v1366_v42  ;;  %v7546_v36 = vld [vmem:[%s9025_s24 + $0x2dc] ss:$24 sps:$4 sm:$0xff]   ;;  %v7544_v37 = vld [vmem:[%s9025_s24 + $0x2d8] ss:$24 sps:$4 sm:$0xff]  }
 0x3f5   : > { %2061 = vmatprep.mubr.bf16.mxu0 %v9232_v40  ;;  %v1410_v46 = vadd.f32 %v1400_v24, %v1387_v41  ;;  %v1368_v8 = vmul.f32 %v7846_v43, %v9183_v23  ;;  %v1409_v52 = vadd.f32 %v1396_v26, %v1386_v45  ;;  %v1367_v53 = vmul.f32 %v7846_v43, %v9180_v22  ;;  %v7549_v38 = vld [vmem:[%s9025_s24 + $0x14] ss:$24 sps:$4 sm:$0xff]   ;;  %v7547_v39 = vld [vmem:[%s9025_s24 + $0x10] ss:$24 sps:$4 sm:$0xff]   ;;  %v7552_v6 = vld [vmem:[%s9025_s24 + $0x44] ss:$24 sps:$4 sm:$0xff]  }
 0x3f6   : > { %2062 = vmatmul.mubr.bf16.vlgmr.msra.gmra.mrb[0].mxu0 %v9235_v5  ;;  %v1412_v62 = vadd.f32 %v1400_v24, %v1389_v20  ;;  %v1388_v22 = vmul.f32 %v1373_v14, %v1365_v56  ;;  %v7555_v41 = vld [vmem:[%s9025_s24 + $0x74] ss:$24 sps:$4 sm:$0xff]   ;;  %v7553_v42 = vld [vmem:[%s9025_s24 + $0x70] ss:$24 sps:$4 sm:$0xff]   ;;  %v7558_v43 = vld [vmem:[%s9025_s24 + $0xa4] ss:$24 sps:$4 sm:$0xff]  }
 0x3f7   : > { %2093 = vmatpush1.bf16.msra.mxu0 %v7499_v60  ;;  %v9242_v47 = vpack.c.bf16 %v1410_v46, %v1408_v9  ;;  %v1391_v50 = vmul.f32 %v1377_v13, %v1368_v8  ;;  %v9250_v63 = vpack.c.bf16 %v1409_v52, %v1407_v54  ;;  %v1390_v1 = vmul.f32 %v1373_v14, %v1367_v53  ;;  %v7516_v14 = vld [vmem:[%s9025_s24 + $0xfc] ss:$24 sps:$4 sm:$0xff]   ;;  %v7550_v60 = vld [vmem:[%s9025_s24 + $0x40] ss:$24 sps:$4 sm:$0xff]   ;;  %v7559_v9 = vld [vmem:[%s9025_s24 + $0xd0] ss:$24 sps:$4 sm:$0xff]  }
 0x3f8   : > { %2094 = vmatprep.subr.bf16.mxu0 %v7504_v44  ;;  %v1411_v11 = vadd.f32 %v1396_v26, %v1388_v22  ;;  %v7556_v44 = vld [vmem:[%s9025_s24 + $0xa0] ss:$24 sps:$4 sm:$0xff]   ;;  %v7561_v45 = vld [vmem:[%s9025_s24 + $0xd4] ss:$24 sps:$4 sm:$0xff]   ;;  %v7564_v46 = vld [vmem:[%s9025_s24 + $0x104] ss:$24 sps:$4 sm:$0xff]  }
 0x3f9   : > { %2071 = vmatprep.mubr.bf16.mxu0 %v9242_v47  ;;  %v1414_v23 = vadd.f32 %v1400_v24, %v1391_v50  ;;  %v1413_v10 = vadd.f32 %v1396_v26, %v1390_v1  ;;  %v7525_v24 = vld [vmem:[%s9025_s24 + $0x18c] ss:$24 sps:$4 sm:$0xff]   ;;  %v7528_v26 = vld [vmem:[%s9025_s24 + $0x1bc] ss:$24 sps:$4 sm:$0xff]   ;;  %v7562_v8 = vld [vmem:[%s9025_s24 + $0x100] ss:$24 sps:$4 sm:$0xff]  }
 0x3fa   : > { %v7567_v59 = vld [vmem:[%s9025_s24 + $0x134] ss:$24 sps:$4 sm:$0xff]   ;;  %v7570_v20 = vld [vmem:[%s9025_s24 + $0x164] ss:$24 sps:$4 sm:$0xff]   ;;  %v7568_v50 = vld [vmem:[%s9025_s24 + $0x160] ss:$24 sps:$4 sm:$0xff]  }
 0x3fb   : > { %2095 = vmatpush1.bf16.msra.mxu0 %v7502_v49  ;;  %v9253_v4 = vpack.c.bf16 %v1414_v23, %v1412_v62  ;;  %v9260_v13 = vpack.c.bf16 %v1413_v10, %v1411_v11  ;;  %v7565_v49 = vld [vmem:[%s9025_s24 + $0x130] ss:$24 sps:$4 sm:$0xff]   ;;  %v7574_v53 = vld [vmem:[%s9025_s24 + $0x1c0] ss:$24 sps:$4 sm:$0xff]   ;;  %v7579_v23 = vld [vmem:[%s9025_s24 + $0x1f4] ss:$24 sps:$4 sm:$0xff]  }
 0x3fc   : > { %2096 = vmatprep.subr.bf16.mxu0 %v7507_v51  ;;  %v7573_v51 = vld [vmem:[%s9025_s24 + $0x194] ss:$24 sps:$4 sm:$0xff]   ;;  %v7571_v52 = vld [vmem:[%s9025_s24 + $0x190] ss:$24 sps:$4 sm:$0xff]   ;;  %v7582_v56 = vld [vmem:[%s9025_s24 + $0x224] ss:$24 sps:$4 sm:$0xff]  }
 0x3fd   : > { %v7577_v54 = vld [vmem:[%s9025_s24 + $0x1f0] ss:$24 sps:$4 sm:$0xff]   ;;  %v7585_v62 = vld [vmem:[%s9025_s24 + $0x254] ss:$24 sps:$4 sm:$0xff]   ;;  %v7588_v1 = vld [vmem:[%s9025_s24 + $0x284] ss:$24 sps:$4 sm:$0xff]  }
 0x3fe   : > { %2072 = vmatmul.mubr.bf16.gmra.mrb[4].mxu0 %v9250_v63  ;;  %v7586_v22 = vld [vmem:[%s9025_s24 + $0x280] ss:$24 sps:$4 sm:$0xff]   ;;  %v7594_v10 = vld [vmem:[%s9025_s24 + $0x2e4] ss:$24 sps:$4 sm:$0xff]  }
 0x3ff   : > { %2097 = vmatpush1.bf16.msra.mxu0 %v7505_v61  ;;  %2081 = vmatprep.mubr.bf16.mxu0 %v9253_v4  ;;  %v7580_v61 = vld [vmem:[%s9025_s24 + $0x220] ss:$24 sps:$4 sm:$0xff]  }
 0x400   : > { %2098 = vmatprep.subr.bf16.mxu0 %v7510_v0  ;;  %v7583_v0 = vld [vmem:[%s9025_s24 + $0x250] ss:$24 sps:$4 sm:$0xff]   ;;  %v7592_v11 = vld [vmem:[%s9025_s24 + $0x2e0] ss:$24 sps:$4 sm:$0xff]  }
 0x403   : > { %2099 = vmatpush1.bf16.msra.mxu0 %v7508_v19  ;;  %v7591_v19 = vld [vmem:[%s9025_s24 + $0x2b4] ss:$24 sps:$4 sm:$0xff]  }
 0x404   : > { %2100 = vmatprep.subr.bf16.mxu0 %v7513_v7  ;;  %v7589_v7 = vld [vmem:[%s9025_s24 + $0x2b0] ss:$24 sps:$4 sm:$0xff]  }
 0x406   : > { %2082 = vmatmul.mubr.bf16.gmra.mrb[8].mxu0 %v9260_v13 }
 0x407   : > { %2101 = vmatpush1.bf16.msra.mxu0 %v7511_v12  ;;  %2124 = vmatprep.mubr.bf16.mxu0 %v9232_v40  ;;  %v9330_v12 = vld [vmem:[%s9065_s30] sm:$0x3f] }
 0x408   : > { %2102 = vmatprep.subr.bf16.mxu0 %v7516_v14  ;;  %v9334_v14 = vrot.slane %v9330_v12, %v9211_v2 }
 0x40b   : > { %2103 = vmatpush1.bf16.msra.mxu0 %v7514_v15  ;;  %v1522_v15 = vrot.slane %v9330_v12, %v9214_v3 }
 0x40c   : > { %2104 = vmatprep.subr.bf16.mxu0 %v7519_v16 }
 0x40f   : > { %2105 = vmatpush1.bf16.msra.mxu0 %v7517_v17 }
 0x410   : > { %2106 = vmatprep.subr.bf16.mxu0 %v7522_v18 }
 0x413   : > { %2107 = vmatpush1.bf16.msra.mxu0 %v7520_v21 }
 0x414   : > { %2108 = vmatprep.subr.bf16.mxu0 %v7525_v24 }
 0x417   : > { %2109 = vmatpush1.bf16.msra.mxu0 %v7523_v25 }
 0x418   : > { %2110 = vmatprep.subr.bf16.mxu0 %v7528_v26 }
 0x41b   : > { %2111 = vmatpush1.bf16.msra.mxu0 %v7526_v27 }
 0x41c   : > { %2112 = vmatprep.subr.bf16.mxu0 %v7531_v28 }
 0x41f   : > { %2113 = vmatpush1.bf16.msra.mxu0 %v7529_v29 }
 0x420   : > { %2114 = vmatprep.subr.bf16.mxu0 %v7534_v30 }
 0x423   : > { %2115 = vmatpush1.bf16.msra.mxu0 %v7532_v31 }
 0x424   : > { %2116 = vmatprep.subr.bf16.mxu0 %v7537_v58 }
 0x427   : > { %2117 = vmatpush1.bf16.msra.mxu0 %v7535_v32 }
 0x428   : > { %2118 = vmatprep.subr.bf16.mxu0 %v7540_v57 }
 0x42b   : > { %2119 = vmatpush1.bf16.msra.mxu0 %v7538_v33 }
 0x42c   : > { %2120 = vmatprep.subr.bf16.mxu0 %v7543_v34 }
 0x42f   : > { %2121 = vmatpush1.bf16.msra.mxu0 %v7541_v35 }
 0x430   : > { %2122 = vmatprep.subr.bf16.mxu0 %v7546_v36 }
 0x433   : > { %2123 = vmatpush1.bf16.msra.mxu0 %v7544_v37 }
 0x434   : > { %2155 = vmatprep.subr.bf16.mxu0 %v7549_v38 }
 0x436   : > { %2125 = vmatmul.mubr.bf16.vlgmr.msra.gmra.mrb[12].mxu0 %v9235_v5 }
 0x437   : > { %2134 = vmatprep.mubr.bf16.mxu0 %v9242_v47  ;;  %2156 = vmatpush1.bf16.msra.mxu0 %v7547_v39 }
 0x438   : > { %2157 = vmatprep.subr.bf16.mxu0 %v7552_v6  ;;  %v1533_v6 = vsub.s32 3, %v9208_v55 }
 0x43b   : > { %2158 = vmatpush1.bf16.msra.mxu0 %v7550_v60  ;;  %v1529_v60 = vsub.s32 2, %v9208_v55 }
 0x43c   : > { %2159 = vmatprep.subr.bf16.mxu0 %v7555_v41  ;;  %v1534_v41 = vrot.slane %v9330_v12, %v1533_v6 }
 0x43e   : > { %2135 = vmatmul.mubr.bf16.gmra.mrb[16].mxu0 %v9250_v63 }
 0x43f   : > { %2144 = vmatprep.mubr.bf16.mxu0 %v9253_v4  ;;  %2160 = vmatpush1.bf16.msra.mxu0 %v7553_v42  ;;  %v1530_v42 = vrot.slane %v9330_v12, %v1529_v60 }
 0x440   : > { %2161 = vmatprep.subr.bf16.mxu0 %v7558_v43 }
 0x443   : > { %2162 = vmatpush1.bf16.msra.mxu0 %v7556_v44 }
 0x444   : > { %2163 = vmatprep.subr.bf16.mxu0 %v7561_v45 }
 0x446   : > { %2145 = vmatmul.mubr.bf16.gmra.mrb[20].mxu0 %v9260_v13 }
 0x447   : > { %2164 = vmatpush1.bf16.msra.mxu0 %v7559_v9  ;;  %2187 = vmatprep.mubr.bf16.mxu0 %v9232_v40  ;;  %v7576_v40 = vld [vmem:[%s9025_s24 + $0x1c4] ss:$24 sps:$4 sm:$0xff]  }
 0x448   : > { %2165 = vmatprep.subr.bf16.mxu0 %v7564_v46 }
 0x44b   : > { %2166 = vmatpush1.bf16.msra.mxu0 %v7562_v8 }
 0x44c   : > { %2167 = vmatprep.subr.bf16.mxu0 %v7567_v59 }
 0x44f   : > { %2168 = vmatpush1.bf16.msra.mxu0 %v7565_v49 }
 0x450   : > { %2169 = vmatprep.subr.bf16.mxu0 %v7570_v20 }
 0x453   : > { %2170 = vmatpush1.bf16.msra.mxu0 %v7568_v50 }
 0x454   : > { %2171 = vmatprep.subr.bf16.mxu0 %v7573_v51 }
 0x457   : > { %2172 = vmatpush1.bf16.msra.mxu0 %v7571_v52 }
 0x458   : > { %2173 = vmatprep.subr.bf16.mxu0 %v7576_v40 }
 0x45b   : > { %2174 = vmatpush1.bf16.msra.mxu0 %v7574_v53 }
 0x45c   : > { %2175 = vmatprep.subr.bf16.mxu0 %v7579_v23 }
 0x45f   : > { %2176 = vmatpush1.bf16.msra.mxu0 %v7577_v54 }
 0x460   : > { %2177 = vmatprep.subr.bf16.mxu0 %v7582_v56 }
 0x463   : > { %2178 = vmatpush1.bf16.msra.mxu0 %v7580_v61 }
 0x464   : > { %2179 = vmatprep.subr.bf16.mxu0 %v7585_v62 }
 0x467   : > { %2180 = vmatpush1.bf16.msra.mxu0 %v7583_v0 }
 0x468   : > { %2181 = vmatprep.subr.bf16.mxu0 %v7588_v1 }
 0x46b   : > { %2182 = vmatpush1.bf16.msra.mxu0 %v7586_v22 }
 0x46c   : > { %2183 = vmatprep.subr.bf16.mxu0 %v7591_v19 }
 0x46f   : > { %2184 = vmatpush1.bf16.msra.mxu0 %v7589_v7 }
 0x470   : > { %2185 = vmatprep.subr.bf16.mxu0 %v7594_v10 }
 0x473   : > { %2186 = vmatpush1.bf16.msra.mxu0 %v7592_v11 }
 0x476   : > { %2188 = vmatmul.mubr.bf16.vlgmr.msra.gmra.mrb[24].mxu0 %v9235_v5 }
 0x477   : > { %2197 = vmatprep.mubr.bf16.mxu0 %v9242_v47 }
 0x47e   : > { %2198 = vmatmul.mubr.bf16.gmra.mrb[28].mxu0 %v9250_v63 }
 0x47f   : > { %2207 = vmatprep.mubr.bf16.mxu0 %v9253_v4 }
 0x486   : > { %2208 = vmatmul.mubr.bf16.gmra.mrb[32].mxu0 %v9260_v13 }
 0x4c9   : > { %v2063_v16 = vpop.f32.mrb[0].mxu0 }
 0x4ca   : > { %v2065_v17 = vpop.f32.mrb[1].mxu0  ;;  %v2064_v63 = vadd.f32 %v2063_v16, %v1522_v15 }
 0x4cb   : > { %v9339_v5 = vadd.f32 %v2065_v17, %v9334_v14  ;;  %v2067_v47 = vpop.f32.mrb[2].mxu0 }
 0x4cc   : > { %v2068_v18 = vadd.f32 %v2067_v47, %v1522_v15  ;;  %v2069_v4 = vpop.f32.mrb[3].mxu0 }
 0x4cd   : > { %v9342_v13 = vadd.f32 %v2069_v4, %v9334_v14 }
 0x4ce   : > { %v2254_v21 = vpack.c.bf16 %v2068_v18, %v2064_v63 }
 0x4cf   : > { %v2563_v24 = vpack.c.bf16 %v9342_v13, %v9339_v5 }
 0x4d0   : > { %7116 = vmatprep.mubr.bf16.mxu0 %v2254_v21 }
 0x4d1   : > { %v2073_v25 = vpop.f32.mrb[4].mxu0 }
 0x4d2   : > { %v2074_v26 = vadd.f32 %v2073_v25, %v1522_v15  ;;  %v2075_v27 = vpop.f32.mrb[5].mxu0 }
 0x4d3   : > { %v9347_v28 = vadd.f32 %v2075_v27, %v9334_v14  ;;  %v2077_v29 = vpop.f32.mrb[6].mxu0  ;;  %v10840_v27 = vsub.s32 5, %v9208_v55 }
 0x4d4   : > { %v2078_v30 = vadd.f32 %v2077_v29, %v1522_v15  ;;  %v2079_v31 = vpop.f32.mrb[7].mxu0  ;;  %v2255_v17 = vpack.c.bf16 %v2074_v26, %v2074_v26  ;;  %v10841_v26 = vsub.s32 4, %v9208_v55 }
 0x4d5   : > { %v2080_v33 = vadd.f32 %v2079_v31, %v9334_v14  ;;  %v9372_v31 = vrot.slane %v9330_v12, %v10840_v27 }
 0x4d6   : > { %v1538_v29 = vrot.slane %v9330_v12, %v10841_v26 }
 0x4d9   : > { %v2083_v58 = vpop.f32.mrb[8].mxu0 }
 0x4da   : > { %v2084_v32 = vadd.f32 %v2083_v58, %v1522_v15  ;;  %v2085_v57 = vpop.f32.mrb[9].mxu0 }
 0x4db   : > { %v2086_v34 = vadd.f32 %v2085_v57, %v9334_v14  ;;  %v2087_v35 = vpop.f32.mrb[10].mxu0 }
 0x4dc   : > { %v2256_v36 = vpack.c.bf16 %v2084_v32, %v2078_v30  ;;  %v2088_v37 = vadd.f32 %v2087_v35, %v1522_v15  ;;  %v2089_v38 = vpop.f32.mrb[11].mxu0 }
 0x4dd   : > { %v2565_v39 = vpack.c.bf16 %v2086_v34, %v2080_v33  ;;  %v2090_v21 = vadd.f32 %v2089_v38, %v9334_v14 }
 0x4de   : > { %v2257_v18 = vpack.c.bf16 %v2088_v37, %v2088_v37 }
 0x4df   : > { %v2566_v25 = vpack.c.bf16 %v2090_v21, %v2090_v21 }
 0x509   : > { %v2126_v43 = vpop.f32.mrb[12].mxu0 }
 0x50a   : > { %v2128_v44 = vpop.f32.mrb[13].mxu0  ;;  %v2127_v46 = vadd.f32 %v2126_v43, %v1530_v42 }
 0x50b   : > { %v2129_v45 = vadd.f32 %v2128_v44, %v1534_v41  ;;  %v2130_v9 = vpop.f32.mrb[14].mxu0 }
 0x50c   : > { %v2131_v8 = vadd.f32 %v2130_v9, %v1530_v42  ;;  %v2132_v59 = vpop.f32.mrb[15].mxu0 }
 0x50d   : > { %v2133_v49 = vadd.f32 %v2132_v59, %v1534_v41 }
 0x50e   : > { %v2258_v20 = vpack.c.bf16 %v2131_v8, %v2127_v46 }
 0x50f   : > { %v9359_v50 = vpack.c.bf16 %v2133_v49, %v2129_v45 }
 0x510   : > { %7112 = vmatprep.subr.bf16.mxu0 %v2258_v20 }
 0x511   : > { %v2136_v51 = vpop.f32.mrb[16].mxu0  ;;  %7113 = vmatpush3.bf16.xpose.msra.mxu0 %v2258_v20 }
 0x512   : > { %v2137_v52 = vadd.f32 %v2136_v51, %v1530_v42  ;;  %v2138_v40 = vpop.f32.mrb[17].mxu0 }
 0x513   : > { %v9361_v53 = vadd.f32 %v2138_v40, %v1534_v41  ;;  %v2140_v23 = vpop.f32.mrb[18].mxu0 }
 0x514   : > { %v2259_v54 = vpack.c.bf16 %v2137_v52, %v2137_v52  ;;  %v2142_v56 = vpop.f32.mrb[19].mxu0  ;;  %v2141_v62 = vadd.f32 %v2140_v23, %v1530_v42 }
 0x515   : > { %v2143_v22 = vadd.f32 %v2142_v56, %v1534_v41  ;;  %v2219_v56 = vand.u32 127, %v1370_v48 }
 0x516   : > { %7114 = vmatprep.subr.bf16.mxu0 %v2259_v54 }
 0x517   : > { %vm2220_vm1 = vcmp.lt.s32.totalorder %v2219_v56, 17 }
 0x519   : > { %v2146_v61 = vpop.f32.mrb[20].mxu0  ;;  %7115 = vmatpush3.bf16.xpose.msra.mxu0 %v2259_v54 }
 0x51a   : > { %v2147_v0 = vadd.f32 %v2146_v61, %v1530_v42  ;;  %v2148_v1 = vpop.f32.mrb[21].mxu0 }
 0x51b   : > { %v2149_v19 = vadd.f32 %v2148_v1, %v1534_v41  ;;  %v2150_v7 = vpop.f32.mrb[22].mxu0 }
 0x51c   : > { %v2260_v10 = vpack.c.bf16 %v2147_v0, %v2141_v62  ;;  %v2151_v11 = vadd.f32 %v2150_v7, %v1530_v42  ;;  %v2152_v15 = vpop.f32.mrb[23].mxu0  ;;  %v8498_v0 = vmov -1e+30  }
 0x51d   : > { %v2569_v16 = vpack.c.bf16 %v2149_v19, %v2143_v22  ;;  %v2153_v63 = vadd.f32 %v2152_v15, %v1534_v41  ;;  %v9395_v1 = vsel %vm2220_vm1, 0.0, %v8498_v0 }
 0x51e   : > { %7120 = vmatprep.subr.bf16.mxu0 %v2260_v10  ;;  %v2261_v47 = vpack.c.bf16 %v2151_v11, %v2151_v11 }
 0x51f   : > { %v2570_v4 = vpack.c.bf16 %v2153_v63, %v2153_v63 }
 0x520   : > { %7117 = vmatmul.mubr.bf16.vlgmr.msra.gmra.mrb[36].mxu0 %v2255_v17 }
 0x521   : > { %7121 = vmatpush3.bf16.xpose.msra.mxu0 %v2260_v10  ;;  %7124 = vmatprep.mubr.bf16.mxu0 %v2256_v36 }
 0x522   : > { %7122 = vmatprep.subr.bf16.mxu0 %v2261_v47 }
 0x529   : > { %7123 = vmatpush3.bf16.xpose.msra.mxu0 %v2261_v47 }
 0x52a   : > { %7152 = vmatprep.subr.bf16.mxu0 %v2569_v16 }
 0x530   : > { %7125 = vmatmul.mubr.bf16.vlgmr.msra.gmra.mrb[40].mxu0 %v2257_v18 }
 0x531   : > { %7153 = vmatpush3.bf16.xpose.msra.mxu0 %v2569_v16  ;;  %7156 = vmatprep.mubr.bf16.mxu0 %v2565_v39 }
 0x532   : > { %7154 = vmatprep.subr.bf16.mxu0 %v2570_v4 }
 0x539   : > { %7155 = vmatpush3.bf16.xpose.msra.mxu0 %v2570_v4 }
 0x540   : > { %7157 = vmatmul.mubr.bf16.vlgmr.msra.gmra.mrb[44].mxu0 %v2566_v25 }
 0x549   : > { %v2189_v30 = vpop.f32.mrb[24].mxu0 }
 0x54a   : > { %v2191_v58 = vpop.f32.mrb[25].mxu0  ;;  %v2190_v57 = vadd.f32 %v2189_v30, %v1538_v29 }
 0x54b   : > { %v2193_v32 = vpop.f32.mrb[26].mxu0  ;;  %v2192_v34 = vadd.f32 %v2191_v58, %v9372_v31 }
 0x54c   : > { %v2194_v14 = vadd.f32 %v2193_v32, %v1538_v29  ;;  %v2195_v33 = vpop.f32.mrb[27].mxu0 }
 0x54d   : > { %v2196_v35 = vadd.f32 %v2195_v33, %v9372_v31 }
 0x54e   : > { %v2262_v36 = vpack.c.bf16 %v2194_v14, %v2190_v57 }
 0x54f   : > { %v9376_v37 = vpack.c.bf16 %v2196_v35, %v2192_v34 }
 0x550   : > { %7128 = vmatprep.subr.bf16.mxu1 %v2262_v36 }
 0x551   : > { %v2199_v38 = vpop.f32.mrb[28].mxu0  ;;  %7129 = vmatpush3.bf16.msra.mxu1 %v2262_v36 }
 0x552   : > { %v2200_v39 = vadd.f32 %v2199_v38, %v1538_v29  ;;  %v9378_v41 = vpop.f32.mrb[29].mxu0 }
 0x553   : > { %v2203_v12 = vpop.f32.mrb[30].mxu0 }
 0x554   : > { %v2263_v42 = vpack.c.bf16 %v2200_v39, %v2200_v39  ;;  %v2205_v43 = vpop.f32.mrb[31].mxu0  ;;  %v2204_v9 = vadd.f32 %v2203_v12, %v1538_v29 }
 0x555   : > { %v2206_v59 = vadd.f32 %v2205_v43, %v9372_v31 }
 0x556   : > { %7268 = vmatprep.subr.msk.bf16.mxu1 %vm2451_vm0, %v2263_v42  ;;  %v2453_v44 = vsel %vm2451_vm0, %v2263_v42, 0 }
 0x557   : > { %7131 = vmatpush3.bf16.msra.mxu1 %v2453_v44 }
 0x559   : > { %v2209_v45 = vpop.f32.mrb[32].mxu0 }
 0x55a   : > { %v2210_v46 = vadd.f32 %v2209_v45, %v1538_v29  ;;  %v2211_v8 = vpop.f32.mrb[33].mxu0 }
 0x55b   : > { %v2212_v49 = vadd.f32 %v2211_v8, %v9372_v31  ;;  %v2213_v20 = vpop.f32.mrb[34].mxu0 }
 0x55c   : > { %v9384_v51 = vpack.c.bf16 %v2210_v46, %v2204_v9  ;;  %v9386_v52 = vadd.f32 %v2213_v20, %v1538_v29  ;;  %v2215_v40 = vpop.f32.mrb[35].mxu0 }
 0x55d   : > { %v9388_v23 = vpack.c.bf16 %v2212_v49, %v2206_v59  ;;  %v9391_v54 = vadd.f32 %v2215_v40, %v9372_v31 }
 0x55e   : > { %7136 = vmatprep.subr.bf16.mxu1 %v9384_v51 }
 0x5f3   : > { %v7118_v61 = vpop.f32.mrb[36].mxu0 }
 0x5f4   : > { %v2300_v62 = vpop.f32.mrb[37].mxu0  ;;  %v2364_v22 = vmul.f32 0.088388346, %v7118_v61 }
 0x5f5   : > { %v2362_v19 = vmul.f32 0.088388346, %v2300_v62  ;;  %v7119_v7 = vpop.f32.mrb[38].mxu0 }
 0x5f6   : > { %v2303_v10 = vpop.f32.mrb[39].mxu0  ;;  %v2370_v48 = vadd.f32 %v2364_v22, %v9395_v1 }
 0x5f7   : > { %v2363_v11 = vmul.f32 0.088388346, %v2303_v10  ;;  %v2368_v15 = vadd.f32 %v2362_v19, %v9395_v1 }
 0x5f8   : > { %v2381_v63 = vsel %vm2374_vm2, %v2370_v48, -inf }
 0x5f9   : > { %v2375_v16 = vsel %vm2374_vm2, %v2368_v15, -inf  ;;  %v2369_v17 = vadd.f32 %v2363_v11, %v9395_v1 }
 0x5fa   : > { %2376 = vmax.xlane.f32.xlu0 %v2375_v16 }
 0x5fb   : > { %v2378_v47 = vsel %vm2374_vm2, %v2369_v17, -inf }
 0x5fc   : > { %2379 = vmax.xlane.f32.xlu1 %v2378_v47 }
 0x5fe   : > { %2382 = vmax.xlane.f32.xlu0 %v2381_v63 }
 0x603   : > { %v7126_v18 = vpop.f32.mrb[40].mxu0 }
 0x604   : > { %v2348_v4 = vpop.f32.mrb[41].mxu0  ;;  %v2367_v21 = vmul.f32 0.088388346, %v7126_v18 }
 0x605   : > { %v2365_v25 = vmul.f32 0.088388346, %v2348_v4  ;;  %v7127_v29 = vpop.f32.mrb[42].mxu0 }
 0x606   : > { %v2351_v30 = vpop.f32.mrb[43].mxu0  ;;  %v2373_v33 = vadd.f32 %v2367_v21, %v9395_v1 }
 0x607   : > { %v2366_v58 = vmul.f32 0.088388346, %v2351_v30  ;;  %v2371_v32 = vadd.f32 %v2365_v25, %v9395_v1 }
 0x608   : > { %v2390_v35 = vsel %vm2374_vm2, %v2373_v33, -inf }
 0x609   : > { %v2384_v57 = vsel %vm2374_vm2, %v2371_v32, -inf  ;;  %v2372_v14 = vadd.f32 %v2366_v58, %v9395_v1 }
 0x60a   : > { %2385 = vmax.xlane.f32.xlu1 %v2384_v57 }
 0x60b   : > { %v2387_v34 = vsel %vm2374_vm2, %v2372_v14, -inf }
 0x60c   : > { %2388 = vmax.xlane.f32.xlu0 %v2387_v34 }
 0x60e   : > { %2391 = vmax.xlane.f32.xlu1 %v2390_v35 }
 0x613   : > { %v9409_v36 = vpop.f32.mrb[44].mxu0 }
 0x614   : > { %v9411_v38 = vpop.f32.mrb[45].mxu0 }
 0x615   : > { %v7159_v39 = vpop.f32.mrb[46].mxu0 }
 0x616   : > { %v9413_v12 = vpop.f32.mrb[47].mxu0 }
 0x687   : > { %v2377_v42 = vpop.xlane.xlu0 %2376 }
 0x688   : > { %v2393_v43 = vsub.f32 %v2368_v15, %v2377_v42 }
 0x689   : > { %v2380_v44 = vpop.xlane.xlu1 %2379 }
 0x68a   : > { %v2399_v45 = vmul.f32 1.442695, %v2393_v43  ;;  %v2394_v9 = vsub.f32 %v2369_v17, %v2380_v44 }
 0x68b   : > { %v2383_v46 = vpop.xlane.xlu0 %2382 }
 0x68c   : > { %7847 = vpow2.f32 %v2399_v45  ;;  %v2401_v8 = vmul.f32 1.442695, %v2394_v9  ;;  %v2395_v59 = vsub.f32 %v2370_v48, %v2383_v46  ;;  %v2265_v45 = vpack.c.bf16 %v9386_v52, %v9386_v52 }
 0x68e   : > { %7849 = vpow2.f32 %v2401_v8  ;;  %v2403_v49 = vmul.f32 1.442695, %v2395_v59  ;;  %v2510_v46 = vsel %vm2451_vm0, %v2265_v45, 0 }
 0x690   : > { %7851 = vpow2.f32 %v2403_v49 }
 0x696   : > { %v7848_v20 = vpop.eup %7847 }
 0x697   : > { %v2386_v40 = vpop.xlane.xlu1 %2385  ;;  %v2411_v56 = vsel %vm2374_vm2, %v7848_v20, 0.0 }
 0x698   : > { %v7850_v61 = vpop.eup %7849  ;;  %v2396_v62 = vsub.f32 %v2371_v32, %v2386_v40  ;;  %2412 = vadd.xlane.f32.xlu0 %v2411_v56 }
 0x699   : > { %v2389_v0 = vpop.xlane.xlu0 %2388  ;;  %v2414_v22 = vsel %vm2374_vm2, %v7850_v61, 0.0 }
 0x69a   : > { %v7852_v19 = vpop.eup %7851  ;;  %v2405_v7 = vmul.f32 1.442695, %v2396_v62  ;;  %v2397_v10 = vsub.f32 %v2372_v14, %v2389_v0  ;;  %2415 = vadd.xlane.f32.xlu1 %v2414_v22  ;;  %v2202_v62 = vadd.f32 %v9378_v41, %v9372_v31  ;;  %v2564_v0 = vpack.c.bf16 %v9347_v28, %v9347_v28 }
 0x69b   : > { %v2392_v11 = vpop.xlane.xlu1 %2391  ;;  %v2417_v15 = vsel %vm2374_vm2, %v7852_v19, 0.0 }
 0x69c   : > { %7853 = vpow2.f32 %v2405_v7  ;;  %v2407_v16 = vmul.f32 1.442695, %v2397_v10  ;;  %v2398_v17 = vsub.f32 %v2373_v33, %v2392_v11  ;;  %2418 = vadd.xlane.f32.xlu0 %v2417_v15  ;;  %v2572_v22 = vpack.c.bf16 %v2202_v62, %v2202_v62 }
 0x69e   : > { %7855 = vpow2.f32 %v2407_v16  ;;  %v2409_v48 = vmul.f32 1.442695, %v2398_v17 }
 0x6a0   : > { %7857 = vpow2.f32 %v2409_v48 }
 0x6a6   : > { %v7854_v47 = vpop.eup %7853 }
 0x6a7   : > { %v2420_v63 = vsel %vm2374_vm2, %v7854_v47, 0.0 }
 0x6a8   : > { %v7856_v18 = vpop.eup %7855  ;;  %2421 = vadd.xlane.f32.xlu1 %v2420_v63  ;;  %v2674_v63 = vmul.f32 0.088388346, %v9411_v38 }
 0x6a9   : > { %v2423_v4 = vsel %vm2374_vm2, %v7856_v18, 0.0 }
 0x6aa   : > { %v7858_v21 = vpop.eup %7857  ;;  %2424 = vadd.xlane.f32.xlu0 %v2423_v4 }
 0x6ab   : > { %v2426_v25 = vsel %vm2374_vm2, %v7858_v21, 0.0 }
 0x6ac   : > { %2427 = vadd.xlane.f32.xlu1 %v2426_v25 }
 0x725   : > { %v2413_v29 = vpop.xlane.xlu0 %2412 }
 0x726   : > { %7859 = vrcp.f32 %v2413_v29 }
 0x727   : > { %v2416_v30 = vpop.xlane.xlu1 %2415 }
 0x728   : > { %7861 = vrcp.f32 %v2416_v30 }
 0x729   : > { %v2419_v58 = vpop.xlane.xlu0 %2418 }
 0x72a   : > { %7863 = vrcp.f32 %v2419_v58  ;;  %v2676_v58 = vmul.f32 0.088388346, %v9409_v36 }
 0x730   : > { %v7860_v32 = vpop.eup %7859 }
 0x731   : > { %v2435_v14 = vmul.f32 %v7860_v32, %v7848_v20 }
 0x732   : > { %v7862_v57 = vpop.eup %7861 }
 0x733   : > { %v2436_v33 = vmul.f32 %v7862_v57, %v7850_v61  ;;  %v2680_v57 = vadd.f32 %v2674_v63, %v9395_v1  ;;  %v7595_v63 = vld [vmem:[%s9031_s27 + $0x80] ss:$8 sps:$4 sm:$0xff]  }
 0x734   : > { %v7864_v34 = vpop.eup %7863 }
 0x735   : > { %v2422_v35 = vpop.xlane.xlu1 %2421  ;;  %v2441_v39 = vpack.c.bf16 %v2436_v33, %v2435_v14  ;;  %v2437_v42 = vmul.f32 %v7864_v34, %v7852_v19  ;;  %v2682_v33 = vadd.f32 %v2676_v58, %v9395_v1  ;;  %v7604_v58 = vld [vmem:[%s9031_s27 + $0xb0] ss:$8 sps:$4 sm:$0xff]  }
 0x736   : > { %7865 = vrcp.f32 %v2422_v35 }
 0x737   : > { %7132 = vmatprep.mubr.msk.bf16.mxu1 %vm2374_vm2, %v2441_v39  ;;  %v2425_v43 = vpop.xlane.xlu0 %2424  ;;  %v2442_v44 = vpack.c.bf16 %v2437_v42, %v2437_v42  ;;  %v2698_v36 = vsel %vm2374_vm2, %v2682_v33, -inf }
 0x738   : > { %7867 = vrcp.f32 %v2425_v43 }
 0x739   : > { %v2428_v9 = vpop.xlane.xlu1 %2427  ;;  %7133 = vmatmul.mubr.msk.bf16.vlgmr.msra.gmra.mrb[0].mxu1 %vm2374_vm2, %v2442_v44 }
 0x73a   : > { %7869 = vrcp.f32 %v2428_v9  ;;  %7137 = vmatpush3.bf16.msra.mxu1 %v9384_v51  ;;  %v2568_v51 = vpack.c.bf16 %v9361_v53, %v9361_v53 }
 0x73b   : > { %7269 = vmatprep.subr.msk.bf16.mxu1 %vm2451_vm0, %v2265_v45 }
 0x73e   : > { %7139 = vmatpush3.bf16.msra.mxu1 %v2510_v46 }
 0x73f   : > { %7144 = vmatprep.subr.bf16.mxu1 %v9359_v50 }
 0x740   : > { %v7866_v8 = vpop.eup %7865 }
 0x741   : > { %v2438_v49 = vmul.f32 %v7866_v8, %v7854_v47 }
 0x742   : > { %v7868_v59 = vpop.eup %7867 }
 0x743   : > { %v2439_v20 = vmul.f32 %v7868_v59, %v7856_v18 }
 0x744   : > { %v7870_v40 = vpop.eup %7869 }
 0x745   : > { %v2440_v56 = vmul.f32 %v7870_v40, %v7858_v21  ;;  %v2443_v52 = vpack.c.bf16 %v2439_v20, %v2438_v49  ;;  %v2675_v21 = vmul.f32 0.088388346, %v9413_v12  ;;  %v2692_v12 = vsel %vm2374_vm2, %v2680_v57, -inf }
 0x747   : > { %7140 = vmatprep.mubr.msk.bf16.mxu1 %vm2374_vm2, %v2443_v52  ;;  %v2444_v61 = vpack.c.bf16 %v2440_v56, %v2440_v56  ;;  %v2681_v14 = vadd.f32 %v2675_v21, %v9395_v1  ;;  %v7598_v21 = vld [vmem:[%s9031_s27 + $0x90] ss:$8 sps:$4 sm:$0xff]  }
 0x749   : > { %7141 = vmatmul.mubr.msk.bf16.vlgmr.msra.gmra.mrb[4].mxu1 %vm2374_vm2, %v2444_v61  ;;  %v2695_v34 = vsel %vm2374_vm2, %v2681_v14, -inf }
 0x74a   : > { %7145 = vmatpush3.bf16.xpose.msra.mxu1 %v9359_v50  ;;  %7148 = vmatprep.mubr.bf16.mxu1 %v2563_v24  ;;  %v2760_v50 = vsel %vm2451_vm0, %v2572_v22, 0 }
 0x74b   : > { %7146 = vmatprep.subr.bf16.mxu1 %v2568_v51 }
 0x752   : > { %7147 = vmatpush3.bf16.xpose.msra.mxu1 %v2568_v51 }
 0x753   : > { %7160 = vmatprep.subr.bf16.mxu1 %v9376_v37 }
 0x759   : > { %7149 = vmatmul.mubr.bf16.vlgmr.msra.gmra.mrb[8].mxu1 %v2564_v0 }
 0x75a   : > { %7161 = vmatpush3.bf16.msra.mxu1 %v9376_v37 }
 0x75b   : > { %7270 = vmatprep.subr.msk.bf16.mxu1 %vm2451_vm0, %v2572_v22 }
 0x75e   : > { %7163 = vmatpush3.bf16.msra.mxu1 %v2760_v50 }
 0x75f   : > { %7168 = vmatprep.subr.bf16.mxu1 %v9388_v23 }
 0x80c   : > { %v9446_v5 = vpop.f32.mrb[0].mxu1 }
 0x80d   : > { %v9448_v13 = vpop.f32.mrb[1].mxu1 }
 0x80e   : > { %v7135_v24 = vpop.f32.mrb[2].mxu1 }
 0x80f   : > { %v9450_v53 = vpop.f32.mrb[3].mxu1 }
 0x810   : > { %v2560_v28 = vpack.c.bf16 %v9450_v53, %v9448_v13 }
 0x81c   : > { %v9454_v31 = vpop.f32.mrb[4].mxu1 }
 0x81d   : > { %v9456_v37 = vpop.f32.mrb[5].mxu1 }
 0x81e   : > { %v2561_v41 = vpack.c.bf16 %v9456_v37, %v9446_v5  ;;  %v7143_v19 = vpop.f32.mrb[6].mxu1  ;;  %v8005_v37 = vld [vmem:[#allocation2 + $0x10] sm:$0xff] }
 0x81f   : > { %v9460_v7 = vpop.f32.mrb[7].mxu1 }
 0x820   : > { %v2562_v10 = vpack.c.bf16 %v9454_v31, %v9460_v7  ;;  %v8006_v7 = vld [vmem:[#allocation2 + $0x18] sm:$0xff] }
 0x82c   : > { %v7150_v11 = vpop.f32.mrb[8].mxu1 }
 0x82d   : > { %v2609_v15 = vpop.f32.mrb[9].mxu1  ;;  %v2673_v16 = vmul.f32 0.088388346, %v7150_v11 }
 0x82e   : > { %v2671_v17 = vmul.f32 0.088388346, %v2609_v15  ;;  %v7151_v48 = vpop.f32.mrb[10].mxu1 }
 0x82f   : > { %v2612_v47 = vpop.f32.mrb[11].mxu1  ;;  %v2679_v30 = vadd.f32 %v2673_v16, %v9395_v1 }
 0x830   : > { %v2672_v18 = vmul.f32 0.088388346, %v2612_v47  ;;  %v2677_v4 = vadd.f32 %v2671_v17, %v9395_v1 }
 0x831   : > { %v2689_v38 = vsel %vm2374_vm2, %v2679_v30, -inf }
 0x832   : > { %v2683_v25 = vsel %vm2374_vm2, %v2677_v4, -inf  ;;  %v2678_v29 = vadd.f32 %v2672_v18, %v9395_v1  ;;  %v7597_v18 = vld [vmem:[%s9031_s27 + $0x84] ss:$8 sps:$4 sm:$0xff]  }
 0x833   : > { %2684 = vmax.xlane.f32.xlu0 %v2683_v25  ;;  %2950 = vmatprep.subr.bf16.mxu0 %v7597_v18  ;;  %v7603_v25 = vld [vmem:[%s9031_s27 + $0xa4] ss:$8 sps:$4 sm:$0xff]   ;;  %v7622_v18 = vld [vmem:[%s9031_s27 + $0x10] ss:$8 sps:$4 sm:$0xff]  }
 0x834   : > { %v2686_v32 = vsel %vm2374_vm2, %v2678_v29, -inf  ;;  %2951 = vmatpush1.bf16.msra.mxu0 %v7595_v63  ;;  %v7624_v63 = vld [vmem:[%s9031_s27 + $0x14] ss:$8 sps:$4 sm:$0xff]  }
 0x835   : > { %2687 = vmax.xlane.f32.xlu1 %v2686_v32  ;;  %v7609_v32 = vld [vmem:[%s9031_s27 + $0xc4] ss:$8 sps:$4 sm:$0xff]  }
 0x837   : > { %2690 = vmax.xlane.f32.xlu0 %v2689_v38  ;;  %v7612_v38 = vld [vmem:[%s9031_s27 + $0xd4] ss:$8 sps:$4 sm:$0xff]  }
 0x839   : > { %2693 = vmax.xlane.f32.xlu1 %v2692_v12  ;;  %v7615_v12 = vld [vmem:[%s9031_s27 + $0xe4] ss:$8 sps:$4 sm:$0xff]  }
 0x83b   : > { %2696 = vmax.xlane.f32.xlu0 %v2695_v34 }
 0x83d   : > { %2699 = vmax.xlane.f32.xlu1 %v2698_v36 }
 0x8c0   : > { %v2685_v35 = vpop.xlane.xlu0 %2684 }
 0x8c1   : > { %v2701_v39 = vsub.f32 %v2677_v4, %v2685_v35  ;;  %v7600_v4 = vld [vmem:[%s9031_s27 + $0x94] ss:$8 sps:$4 sm:$0xff]  }
 0x8c2   : > { %v2688_v42 = vpop.xlane.xlu1 %2687  ;;  %2952 = vmatprep.subr.bf16.mxu0 %v7600_v4 }
 0x8c3   : > { %v2707_v43 = vmul.f32 1.442695, %v2701_v39  ;;  %v2702_v44 = vsub.f32 %v2678_v29, %v2688_v42  ;;  %2953 = vmatpush1.bf16.msra.mxu0 %v7598_v21  ;;  %v7601_v29 = vld [vmem:[%s9031_s27 + $0xa0] ss:$8 sps:$4 sm:$0xff]   ;;  %v7627_v21 = vld [vmem:[%s9031_s27 + $0x24] ss:$8 sps:$4 sm:$0xff]  }
 0x8c4   : > { %v2691_v45 = vpop.xlane.xlu0 %2690  ;;  %2954 = vmatprep.subr.bf16.mxu0 %v7603_v25 }
 0x8c5   : > { %7871 = vpow2.f32 %v2707_v43  ;;  %v2709_v9 = vmul.f32 1.442695, %v2702_v44  ;;  %v2703_v46 = vsub.f32 %v2679_v30, %v2691_v45  ;;  %v7606_v30 = vld [vmem:[%s9031_s27 + $0xb4] ss:$8 sps:$4 sm:$0xff]  }
 0x8c6   : > { %v2694_v8 = vpop.xlane.xlu1 %2693 }
 0x8c7   : > { %7873 = vpow2.f32 %v2709_v9  ;;  %v2711_v59 = vmul.f32 1.442695, %v2703_v46  ;;  %v2704_v1 = vsub.f32 %v2680_v57, %v2694_v8  ;;  %2955 = vmatpush1.bf16.msra.mxu0 %v7601_v29  ;;  %v7607_v57 = vld [vmem:[%s9031_s27 + $0xc0] ss:$8 sps:$4 sm:$0xff]  }
 0x8c8   : > { %v2697_v49 = vpop.xlane.xlu0 %2696  ;;  %2956 = vmatprep.subr.bf16.mxu0 %v7606_v30 }
 0x8c9   : > { %7875 = vpow2.f32 %v2711_v59  ;;  %v2713_v20 = vmul.f32 1.442695, %v2704_v1  ;;  %v2705_v40 = vsub.f32 %v2681_v14, %v2697_v49  ;;  %v7610_v14 = vld [vmem:[%s9031_s27 + $0xd0] ss:$8 sps:$4 sm:$0xff]  }
 0x8ca   : > { %v2700_v56 = vpop.xlane.xlu1 %2699 }
 0x8cb   : > { %7877 = vpow2.f32 %v2713_v20  ;;  %v2715_v52 = vmul.f32 1.442695, %v2705_v40  ;;  %v2706_v61 = vsub.f32 %v2682_v33, %v2700_v56  ;;  %2957 = vmatpush1.bf16.msra.mxu0 %v7604_v58  ;;  %v7613_v33 = vld [vmem:[%s9031_s27 + $0xe0] ss:$8 sps:$4 sm:$0xff]   ;;  %v2574_v56 = vpack.c.bf16 %v9391_v54, %v9391_v54 }
 0x8cc   : > { %2958 = vmatprep.subr.bf16.mxu0 %v7609_v32  ;;  %v7625_v32 = vld [vmem:[%s9031_s27 + $0x20] ss:$8 sps:$4 sm:$0xff]  }
 0x8cd   : > { %7879 = vpow2.f32 %v2715_v52  ;;  %v2717_v51 = vmul.f32 1.442695, %v2706_v61 }
 0x8cf   : > { %v7872_v62 = vpop.eup %7871  ;;  %7881 = vpow2.f32 %v2717_v51  ;;  %2959 = vmatpush1.bf16.msra.mxu0 %v7607_v57 }
 0x8d0   : > { %v2719_v0 = vsel %vm2374_vm2, %v7872_v62, 0.0  ;;  %2960 = vmatprep.subr.bf16.mxu0 %v7612_v38  ;;  %v7630_v38 = vld [vmem:[%s9031_s27 + $0x34] ss:$8 sps:$4 sm:$0xff]  }
 0x8d1   : > { %v7874_v22 = vpop.eup %7873  ;;  %2720 = vadd.xlane.f32.xlu0 %v2719_v0 }
 0x8d2   : > { %v2722_v50 = vsel %vm2374_vm2, %v7874_v22, 0.0 }
 0x8d3   : > { %v7876_v24 = vpop.eup %7875  ;;  %2723 = vadd.xlane.f32.xlu1 %v2722_v50  ;;  %2961 = vmatpush1.bf16.msra.mxu0 %v7610_v14  ;;  %v7618_v50 = vld [vmem:[%s9031_s27 + $0xf4] ss:$8 sps:$4 sm:$0xff]   ;;  %v7628_v14 = vld [vmem:[%s9031_s27 + $0x30] ss:$8 sps:$4 sm:$0xff]  }
 0x8d4   : > { %v2725_v19 = vsel %vm2374_vm2, %v7876_v24, 0.0  ;;  %2962 = vmatprep.subr.bf16.mxu0 %v7615_v12  ;;  %v7633_v12 = vld [vmem:[%s9031_s27 + $0x44] ss:$8 sps:$4 sm:$0xff]  }
 0x8d5   : > { %v9482_v11 = vpop.eup %7877  ;;  %2726 = vadd.xlane.f32.xlu0 %v2725_v19  ;;  %v8499_v19 = vmov 0  }
 0x8d6   : > { %v2728_v15 = vsel %vm2374_vm2, %v9482_v11, 0.0  ;;  %2982 = vmatprep.mubr.bf16.mxu0 %v8499_v19 }
 0x8d7   : > { %v7880_v16 = vpop.eup %7879  ;;  %2729 = vadd.xlane.f32.xlu1 %v2728_v15  ;;  %2963 = vmatpush1.bf16.msra.mxu0 %v7613_v33  ;;  %v7631_v33 = vld [vmem:[%s9031_s27 + $0x40] ss:$8 sps:$4 sm:$0xff]  }
 0x8d8   : > { %v2731_v17 = vsel %vm2374_vm2, %v7880_v16, 0.0  ;;  %2964 = vmatprep.subr.bf16.mxu0 %v7618_v50 }
 0x8d9   : > { %v7882_v48 = vpop.eup %7881  ;;  %2732 = vadd.xlane.f32.xlu0 %v2731_v17 }
 0x8da   : > { %v2734_v47 = vsel %vm2374_vm2, %v7882_v48, 0.0 }
 0x8db   : > { %2735 = vadd.xlane.f32.xlu1 %v2734_v47 }
 0x95e   : > { %v2721_v34 = vpop.xlane.xlu0 %2720 }
 0x95f   : > { %7883 = vrcp.f32 %v2721_v34  ;;  %v7636_v34 = vld [vmem:[%s9031_s27 + $0x54] ss:$8 sps:$4 sm:$0xff]  }
 0x960   : > { %v2724_v36 = vpop.xlane.xlu1 %2723 }
 0x961   : > { %7885 = vrcp.f32 %v2724_v36  ;;  %v7634_v36 = vld [vmem:[%s9031_s27 + $0x50] ss:$8 sps:$4 sm:$0xff]  }
 0x962   : > { %v2727_v35 = vpop.xlane.xlu0 %2726 }
 0x963   : > { %7887 = vrcp.f32 %v2727_v35  ;;  %v7639_v35 = vld [vmem:[%s9031_s27 + $0x64] ss:$8 sps:$4 sm:$0xff]  }
 0x964   : > { %v2730_v39 = vpop.xlane.xlu1 %2729 }
 0x965   : > { %7889 = vrcp.f32 %v2730_v39  ;;  %v7637_v39 = vld [vmem:[%s9031_s27 + $0x60] ss:$8 sps:$4 sm:$0xff]  }
 0x966   : > { %v2733_v42 = vpop.xlane.xlu0 %2732 }
 0x967   : > { %7891 = vrcp.f32 %v2733_v42  ;;  %v7642_v42 = vld [vmem:[%s9031_s27 + $0x74] ss:$8 sps:$4 sm:$0xff]  }
 0x968   : > { %v2736_v43 = vpop.xlane.xlu1 %2735 }
 0x969   : > { %v7884_v44 = vpop.eup %7883  ;;  %7893 = vrcp.f32 %v2736_v43  ;;  %v7640_v43 = vld [vmem:[%s9031_s27 + $0x70] ss:$8 sps:$4 sm:$0xff]  }
 0x96a   : > { %v2743_v9 = vmul.f32 %v7884_v44, %v7872_v62  ;;  %v3168_v44 = vld [vmem:[%s10929_s8] sm:$0x3] }
 0x96b   : > { %v7886_v45 = vpop.eup %7885 }
 0x96c   : > { %v2744_v46 = vmul.f32 %v7886_v45, %v7874_v22  ;;  %v2817_v22 = vsel %vm2451_vm0, %v2574_v56, 0  ;;  %v3173_v45 = vrot.slane %v3168_v44, %v9214_v3 }
 0x96d   : > { %v7888_v8 = vpop.eup %7887 }
 0x96e   : > { %v2745_v59 = vmul.f32 %v7888_v8, %v7876_v24  ;;  %v2749_v1 = vpack.c.bf16 %v2744_v46, %v2743_v9  ;;  %v7616_v24 = vld [vmem:[%s9031_s27 + $0xf0] ss:$8 sps:$4 sm:$0xff]   ;;  %v3177_v46 = vrot.slane %v3168_v44, %v9211_v2  ;;  %v8003_v8 = vld [vmem:[#allocation2] sm:$0xff] }
 0x96f   : > { %v7890_v49 = vpop.eup %7889  ;;  %2965 = vmatpush1.bf16.msra.mxu0 %v7616_v24  ;;  %v3342_v44 = vld [vmem:[%s9038_s22] sm:$0xff] }
 0x970   : > { %7164 = vmatprep.mubr.msk.bf16.mxu1 %vm2374_vm2, %v2749_v1  ;;  %v2750_v20 = vpack.c.bf16 %v2745_v59, %v2745_v59  ;;  %v2746_v52 = vmul.f32 %v7890_v49, %v9482_v11 }
 0x971   : > { %v7892_v40 = vpop.eup %7891 }
 0x972   : > { %7165 = vmatmul.mubr.msk.bf16.vlgmr.msra.gmra.mrb[12].mxu1 %vm2374_vm2, %v2750_v20  ;;  %v2747_v61 = vmul.f32 %v7892_v40, %v7880_v16 }
 0x973   : > { %v7894_v51 = vpop.eup %7893  ;;  %7169 = vmatpush3.bf16.msra.mxu1 %v9388_v23  ;;  %v7621_v23 = vld [vmem:[%s9031_s27 + $0x4] ss:$8 sps:$4 sm:$0xff]  }
 0x974   : > { %v2748_v62 = vmul.f32 %v7894_v51, %v7882_v48  ;;  %7271 = vmatprep.subr.msk.bf16.mxu1 %vm2451_vm0, %v2574_v56  ;;  %v2751_v0 = vpack.c.bf16 %v2747_v61, %v2746_v52  ;;  %3093 = vmatprep.subr.bf16.mxu0 %v7621_v23  ;;  %v7619_v48 = vld [vmem:[%s9031_s27] ss:$8 sps:$4 sm:$0xff]   ;;  %v8009_v23 = vld [vmem:[#allocation2 + $0x30] sm:$0xff] }
 0x975   : > { %v8007_v51 = vld [vmem:[#allocation2 + $0x20] sm:$0xff] }
 0x976   : > { %7172 = vmatprep.mubr.msk.bf16.mxu1 %vm2374_vm2, %v2751_v0  ;;  %v2752_v54 = vpack.c.bf16 %v2748_v62, %v2748_v62 }
 0x977   : > { %7171 = vmatpush3.bf16.msra.mxu1 %v2817_v22  ;;  %v8008_v22 = vld [vmem:[#allocation2 + $0x28] sm:$0xff] }
 0x97a   : > { %7173 = vmatmul.mubr.msk.bf16.vlgmr.msra.gmra.mrb[16].mxu1 %vm2374_vm2, %v2752_v54 }
 0xa45   : > { %v7166_v11 = vpop.f32.mrb[12].mxu1 }
 0xa46   : > { %v2796_v15 = vpop.f32.mrb[13].mxu1 }
 0xa47   : > { %v7167_v16 = vpop.f32.mrb[14].mxu1 }
 0xa48   : > { %v2799_v17 = vpop.f32.mrb[15].mxu1  ;;  %v8010_v16 = vld [vmem:[#allocation2 + $0x38] sm:$0xff] }
 0xa49   : > { %v2867_v47 = vpack.c.bf16 %v2799_v17, %v2796_v15 }
 0xa4b   : > { %2983 = vmatmul.mubr.bf16.vlgmr.msra.gmra.mrb[48].mxu0 %v2867_v47 }
 0xa4c   : > { %3094 = vmatpush1.bf16.msra.mxu0 %v7619_v48  ;;  %2992 = vmatprep.mubr.bf16.mxu0 %v8499_v19 }
 0xa4d   : > { %v7174_v4 = vpop.f32.mrb[16].mxu1  ;;  %3095 = vmatprep.subr.bf16.mxu0 %v7624_v63 }
 0xa4e   : > { %v2853_v25 = vpop.f32.mrb[17].mxu1 }
 0xa4f   : > { %v2868_v29 = vpack.c.bf16 %v2853_v25, %v7166_v11  ;;  %v7175_v30 = vpop.f32.mrb[18].mxu1 }
 0xa50   : > { %3096 = vmatpush1.bf16.msra.mxu0 %v7622_v18  ;;  %v2856_v58 = vpop.f32.mrb[19].mxu1  ;;  %v8012_v30 = vld [vmem:[#allocation2 + $0x48] sm:$0xff] }
 0xa51   : > { %v2869_v57 = vpack.c.bf16 %v7174_v4, %v2856_v58  ;;  %3097 = vmatprep.subr.bf16.mxu0 %v7627_v21  ;;  %v8011_v21 = vld [vmem:[#allocation2 + $0x40] sm:$0xff] }
 0xa53   : > { %2993 = vmatmul.mubr.bf16.gmra.mrb[52].mxu0 %v2868_v29 }
 0xa54   : > { %3098 = vmatpush1.bf16.msra.mxu0 %v7625_v32  ;;  %3002 = vmatprep.mubr.bf16.mxu0 %v8499_v19 }
 0xa55   : > { %3099 = vmatprep.subr.bf16.mxu0 %v7630_v38  ;;  %v8013_v38 = vld [vmem:[#allocation2 + $0x50] sm:$0xff] }
 0xa58   : > { %3100 = vmatpush1.bf16.msra.mxu0 %v7628_v14 }
 0xa59   : > { %3101 = vmatprep.subr.bf16.mxu0 %v7633_v12 }
 0xa5b   : > { %3003 = vmatmul.mubr.bf16.gmra.mrb[56].mxu0 %v2869_v57 }
 0xa5c   : > { %3102 = vmatpush1.bf16.msra.mxu0 %v7631_v33  ;;  %3125 = vmatprep.mubr.bf16.mxu0 %v8499_v19 }
 0xa5d   : > { %3103 = vmatprep.subr.bf16.mxu0 %v7636_v34  ;;  %v8014_v34 = vld [vmem:[#allocation2 + $0x58] sm:$0xff] }
 0xa60   : > { %3104 = vmatpush1.bf16.msra.mxu0 %v7634_v36 }
 0xa61   : > { %3105 = vmatprep.subr.bf16.mxu0 %v7639_v35 }
 0xa64   : > { %3106 = vmatpush1.bf16.msra.mxu0 %v7637_v39 }
 0xa65   : > { %3107 = vmatprep.subr.bf16.mxu0 %v7642_v42 }
 0xa68   : > { %3108 = vmatpush1.bf16.msra.mxu0 %v7640_v43 }
 0xa6b   : > { %3126 = vmatmul.mubr.bf16.vlgmr.msra.gmra.mrb[48].mxu0 %v2560_v28  ;;  %v8004_v28 = vld [vmem:[#allocation2 + $0x8] sm:$0xff] }
 0xa6c   : > { %3135 = vmatprep.mubr.bf16.mxu0 %v8499_v19 }
 0xa73   : > { %3136 = vmatmul.mubr.bf16.gmra.mrb[52].mxu0 %v2561_v41 }
 0xa74   : > { %3145 = vmatprep.mubr.bf16.mxu0 %v8499_v19 }
 0xa7b   : > { %3146 = vmatmul.mubr.bf16.gmra.mrb[56].mxu0 %v2562_v10 }
 0xb3e   : > { %v3127_v9 = vpop.f32.mrb[48].mxu0 }
 0xb3f   : > { %v3156_v13 = vadd.f32 %v8003_v8, %v3127_v9  ;;  %v3129_v53 = vpop.f32.mrb[49].mxu0  ;;  %v3346_v9 = vld [vmem:[%s9038_s22 + $0x20] sm:$0xff]  ;;  %v3343_v8 = vld [vmem:[%s9038_s22 + $0x8] sm:$0xff] }
 0xb40   : > { %v3157_v59 = vadd.f32 %v8004_v28, %v3129_v53  ;;  %v3131_v1 = vpop.f32.mrb[50].mxu0  ;;  %v3350_v53 = vld [vmem:[%s9038_s22 + $0x40] sm:$0xff] }
 0xb41   : > { %v9543_v5 = vadd.f32 %v3173_v45, %v3156_v13  ;;  %v3158_v41 = vadd.f32 %v8005_v37, %v3131_v1  ;;  %v3133_v49 = vpop.f32.mrb[51].mxu0  ;;  %v3347_v13 = vld [vmem:[%s9038_s22 + $0x28] sm:$0xff]  ;;  %v3354_v28 = vld [vmem:[%s9038_s22 + $0x60] sm:$0xff] }
 0xb42   : > { %v9545_v31 = vadd.f32 %v3177_v46, %v3157_v59  ;;  %v3159_v10 = vadd.f32 %v8006_v7, %v3133_v49  ;;  %v6782_v59 = vcombine.low %v3343_v8, %v3347_v13  ;;  %v6783_v1 = vcombine.high %v3343_v8, %v3347_v13  ;;  %v3355_v49 = vld [vmem:[%s9038_s22 + $0x68] sm:$0xff]  ;;  %v3358_v7 = vld [vmem:[%s9038_s22 + $0x80] sm:$0xff] }
 0xb43   : > { %10930 = vst [vmem:[#allocation38_spill] sm:$0xff] %v9543_v5  ;;  %v9547_v20 = vadd.f32 %v3173_v45, %v3158_v41  ;;  %v6789_v37 = vcombine.high %v3350_v53, %v3354_v28  ;;  %v3351_v41 = vld [vmem:[%s9038_s22 + $0x48] sm:$0xff]  ;;  %v3394_v8 = vld [vmem:[%s9038_s22 + $0x1a0] sm:$0xff] }
 0xb44   : > { %10931 = vst [vmem:[#allocation39_spill] sm:$0xff] %v9545_v31  ;;  %v9549_v40 = vadd.f32 %v3177_v46, %v3159_v10  ;;  %v3194_v56 = vadd.f32 %v9545_v31, %v9543_v5  ;;  %v6791_v10 = vcombine.high %v3351_v41, %v3355_v49  ;;  %4215 = vmatprep.subr.bf16.mxu0 %v6783_v1  ;;  %v3398_v1 = vld [vmem:[%s9038_s22 + $0x1c0] sm:$0xff] }
 0xb45   : > { %10932 = vst [vmem:[#allocation40_spill] sm:$0xff] %v9547_v20  ;;  %4216 = vmatpush1.bf16.msra.mxu0 %v6782_v59 }
 0xb46   : > { %10933 = vst [vmem:[#allocation41_spill] sm:$0xff] %v9549_v40  ;;  %3195 = vadd.xlane.f32.xlu0 %v3194_v56  ;;  %v3137_v52 = vpop.f32.mrb[52].mxu0  ;;  %v3197_v61 = vadd.f32 %v9549_v40, %v9547_v20  ;;  %v3362_v56 = vld [vmem:[%s9038_s22 + $0xa0] sm:$0xff]  ;;  %4217 = vmatprep.subr.bf16.mxu0 %v6791_v10 }
 0xb47   : > { %v3160_v62 = vadd.f32 %v8007_v51, %v3137_v52  ;;  %v3139_v0 = vpop.f32.mrb[53].mxu0  ;;  %v3359_v52 = vld [vmem:[%s9038_s22 + $0x88] sm:$0xff]  ;;  %v6788_v51 = vcombine.low %v3350_v53, %v3354_v28 }
 0xb48   : > { %v3161_v54 = vadd.f32 %v8008_v22, %v3139_v0  ;;  %3198 = vadd.xlane.f32.xlu1 %v3197_v61  ;;  %v3141_v50 = vpop.f32.mrb[54].mxu0  ;;  %v3363_v61 = vld [vmem:[%s9038_s22 + $0xa8] sm:$0xff]  ;;  %v6797_v0 = vcombine.high %v3358_v7, %v3362_v56 }
 0xb49   : > { %v9555_v24 = vadd.f32 %v3173_v45, %v3160_v62  ;;  %v3162_v19 = vadd.f32 %v8009_v23, %v3141_v50  ;;  %v3143_v11 = vpop.f32.mrb[55].mxu0  ;;  %v6790_v62 = vcombine.low %v3351_v41, %v3355_v49  ;;  %v6799_v22 = vcombine.high %v3359_v52, %v3363_v61  ;;  %v3370_v50 = vld [vmem:[%s9038_s22 + $0xe0] sm:$0xff]  ;;  %v3367_v23 = vld [vmem:[%s9038_s22 + $0xc8] sm:$0xff] }
 0xb4a   : > { %v9557_v15 = vadd.f32 %v3177_v46, %v3161_v54  ;;  %v3163_v17 = vadd.f32 %v8010_v16, %v3143_v11  ;;  %v3366_v54 = vld [vmem:[%s9038_s22 + $0xc0] sm:$0xff]  ;;  %v6796_v11 = vcombine.low %v3358_v7, %v3362_v56  ;;  %v6798_v16 = vcombine.low %v3359_v52, %v3363_v61  ;;  %v3399_v41 = vld [vmem:[%s9038_s22 + $0x1c8] sm:$0xff] }
 0xb4b   : > { %10934 = vst [vmem:[#allocation42_spill] sm:$0xff] %v9555_v24  ;;  %v9559_v48 = vadd.f32 %v3173_v45, %v3162_v19  ;;  %v3371_v19 = vld [vmem:[%s9038_s22 + $0xe8] sm:$0xff]  ;;  %4218 = vmatpush1.bf16.msra.mxu0 %v6790_v62  ;;  %v3406_v61 = vld [vmem:[%s9038_s22 + $0x200] sm:$0xff] }
 0xb4c   : > { %10935 = vst [vmem:[#allocation43_spill] sm:$0xff] %v9557_v15  ;;  %v9561_v47 = vadd.f32 %v3177_v46, %v3163_v17  ;;  %v3200_v63 = vadd.f32 %v9557_v15, %v9555_v24  ;;  %v6805_v17 = vcombine.high %v3366_v54, %v3370_v50  ;;  %4219 = vmatprep.subr.bf16.mxu0 %v6799_v22  ;;  %v3403_v49 = vld [vmem:[%s9038_s22 + $0x1e8] sm:$0xff] }
 0xb4d   : > { %10936 = vst [vmem:[#allocation44_spill] sm:$0xff] %v9559_v48  ;;  %v6839_v52 = vcombine.high %v3399_v41, %v3403_v49  ;;  %v3407_v62 = vld [vmem:[%s9038_s22 + $0x208] sm:$0xff] }
 0xb4e   : > { %10937 = vst [vmem:[#allocation45_spill] sm:$0xff] %v9561_v47  ;;  %3201 = vadd.xlane.f32.xlu0 %v3200_v63  ;;  %v3147_v18 = vpop.f32.mrb[56].mxu0  ;;  %v3203_v4 = vadd.f32 %v9561_v47, %v9559_v48  ;;  %v6807_v63 = vcombine.high %v3367_v23, %v3371_v19 }
 0xb4f   : > { %v3164_v25 = vadd.f32 %v8011_v21, %v3147_v18  ;;  %v3149_v29 = vpop.f32.mrb[57].mxu0  ;;  %v3374_v18 = vld [vmem:[%s9038_s22 + $0x100] sm:$0xff]  ;;  %v3375_v21 = vld [vmem:[%s9038_s22 + $0x108] sm:$0xff]  ;;  %4220 = vmatpush1.bf16.msra.mxu0 %v6798_v16 }
 0xb50   : > { %v3165_v58 = vadd.f32 %v8012_v30, %v3149_v29  ;;  %3204 = vadd.xlane.f32.xlu1 %v3203_v4  ;;  %v3151_v32 = vpop.f32.mrb[58].mxu0  ;;  %v3378_v4 = vld [vmem:[%s9038_s22 + $0x120] sm:$0xff]  ;;  %v6804_v29 = vcombine.low %v3366_v54, %v3370_v50  ;;  %v6806_v30 = vcombine.low %v3367_v23, %v3371_v19  ;;  %4221 = vmatprep.subr.bf16.mxu0 %v6807_v63  ;;  %v3415_v16 = vld [vmem:[%s9038_s22 + $0x248] sm:$0xff] }
 0xb51   : > { %v9567_v57 = vadd.f32 %v3173_v45, %v3164_v25  ;;  %v3166_v14 = vadd.f32 %v8013_v38, %v3151_v32  ;;  %v3153_v12 = vpop.f32.mrb[59].mxu0  ;;  %v3379_v25 = vld [vmem:[%s9038_s22 + $0x128] sm:$0xff]  ;;  %v3382_v38 = vld [vmem:[%s9038_s22 + $0x140] sm:$0xff]  ;;  %v6838_v54 = vcombine.low %v3399_v41, %v3403_v49 }
 0xb52   : > { %v9569_v33 = vadd.f32 %v3177_v46, %v3165_v58  ;;  %v3167_v36 = vadd.f32 %v8014_v34, %v3153_v12  ;;  %v6813_v58 = vcombine.high %v3374_v18, %v3378_v4  ;;  %v6815_v32 = vcombine.high %v3375_v21, %v3379_v25  ;;  %v3383_v12 = vld [vmem:[%s9038_s22 + $0x148] sm:$0xff]  ;;  %v3414_v19 = vld [vmem:[%s9038_s22 + $0x240] sm:$0xff] }
 0xb53   : > { %10938 = vst [vmem:[#allocation46_spill] sm:$0xff] %v9567_v57  ;;  %v9571_v35 = vadd.f32 %v3173_v45, %v3166_v14  ;;  %v6780_v45 = vcombine.low %v3342_v44, %v3346_v9  ;;  %v3386_v14 = vld [vmem:[%s9038_s22 + $0x160] sm:$0xff]  ;;  %v3387_v34 = vld [vmem:[%s9038_s22 + $0x168] sm:$0xff]  ;;  %4222 = vmatpush1.bf16.msra.mxu0 %v6806_v30 }
 0xb54   : > { %10939 = vst [vmem:[#allocation47_spill] sm:$0xff] %v9569_v33  ;;  %v9573_v39 = vadd.f32 %v3177_v46, %v3167_v36  ;;  %v3206_v42 = vadd.f32 %v9569_v33, %v9567_v57  ;;  %v6781_v46 = vcombine.high %v3342_v44, %v3346_v9  ;;  %v6812_v36 = vcombine.low %v3374_v18, %v3378_v4  ;;  %v3390_v9 = vld [vmem:[%s9038_s22 + $0x180] sm:$0xff] }
 0xb55   : > { %10940 = vst [vmem:[#allocation48_spill] sm:$0xff] %v9571_v35  ;;  %4223 = vmatprep.subr.bf16.mxu0 %v6815_v32  ;;  %v6823_v44 = vcombine.high %v3383_v12, %v3387_v34  ;;  %v6820_v13 = vcombine.low %v3382_v38, %v3386_v14  ;;  %v6822_v53 = vcombine.low %v3383_v12, %v3387_v34 }
 0xb56   : > { %10941 = vst [vmem:[#allocation49_spill] sm:$0xff] %v9573_v39  ;;  %3207 = vadd.xlane.f32.xlu0 %v3206_v42  ;;  %v3209_v43 = vadd.f32 %v9573_v39, %v9571_v35  ;;  %4152 = vmatprep.subr.bf16.mxu1 %v6781_v46  ;;  %v6814_v42 = vcombine.low %v3375_v21, %v3379_v25  ;;  %v3395_v46 = vld [vmem:[%s9038_s22 + $0x1a8] sm:$0xff] }
 0xb57   : > { %4153 = vmatpush1.bf16.msra.mxu1 %v6780_v45  ;;  %v3391_v45 = vld [vmem:[%s9038_s22 + $0x188] sm:$0xff]  ;;  %v6829_v28 = vcombine.high %v3390_v9, %v3394_v8  ;;  %v6828_v7 = vcombine.low %v3390_v9, %v3394_v8 }
 0xb58   : > { %3210 = vadd.xlane.f32.xlu1 %v3209_v43  ;;  %4154 = vmatprep.subr.bf16.mxu1 %v6789_v37  ;;  %v6821_v43 = vcombine.high %v3382_v38, %v3386_v14  ;;  %v6831_v59 = vcombine.high %v3391_v45, %v3395_v46  ;;  %v3402_v37 = vld [vmem:[%s9038_s22 + $0x1e0] sm:$0xff]  ;;  %v6830_v10 = vcombine.low %v3391_v45, %v3395_v46 }
 0xb59   : > { %4224 = vmatpush1.bf16.msra.mxu0 %v6814_v42  ;;  %v6837_v56 = vcombine.high %v3398_v1, %v3402_v37  ;;  %v6836_v22 = vcombine.low %v3398_v1, %v3402_v37 }
 0xb5a   : > { %4225 = vmatprep.subr.bf16.mxu0 %v6823_v44 }
 0xb5b   : > { %4155 = vmatpush1.bf16.msra.mxu1 %v6788_v51  ;;  %v3410_v51 = vld [vmem:[%s9038_s22 + $0x220] sm:$0xff] }
 0xb5c   : > { %4156 = vmatprep.subr.bf16.mxu1 %v6797_v0  ;;  %v3411_v0 = vld [vmem:[%s9038_s22 + $0x228] sm:$0xff]  ;;  %v6845_v50 = vcombine.high %v3406_v61, %v3410_v51  ;;  %v6844_v63 = vcombine.low %v3406_v61, %v3410_v51 }
 0xb5d   : > { %4226 = vmatpush1.bf16.msra.mxu0 %v6822_v53  ;;  %v6847_v23 = vcombine.high %v3407_v62, %v3411_v0  ;;  %v6846_v18 = vcombine.low %v3407_v62, %v3411_v0 }
 0xb5e   : > { %4227 = vmatprep.subr.bf16.mxu0 %v6831_v59 }
 0xb5f   : > { %4157 = vmatpush1.bf16.msra.mxu1 %v6796_v11  ;;  %v3418_v11 = vld [vmem:[%s9038_s22 + $0x260] sm:$0xff] }
 0xb60   : > { %4158 = vmatprep.subr.bf16.mxu1 %v6805_v17  ;;  %v3419_v17 = vld [vmem:[%s9038_s22 + $0x268] sm:$0xff]  ;;  %v6853_v4 = vcombine.high %v3414_v19, %v3418_v11  ;;  %v6852_v25 = vcombine.low %v3414_v19, %v3418_v11 }
 0xb61   : > { %4228 = vmatpush1.bf16.msra.mxu0 %v6830_v10  ;;  %v6855_v21 = vcombine.high %v3415_v16, %v3419_v17 }
 0xb62   : > { %4229 = vmatprep.subr.bf16.mxu0 %v6839_v52 }
 0xb63   : > { %4159 = vmatpush1.bf16.msra.mxu1 %v6804_v29  ;;  %v6854_v29 = vcombine.low %v3415_v16, %v3419_v17  ;;  %v3422_v17 = vld [vmem:[%s9038_s22 + $0x280] sm:$0xff] }
 0xb64   : > { %4160 = vmatprep.subr.bf16.mxu1 %v6813_v58 }
 0xb65   : > { %4230 = vmatpush1.bf16.msra.mxu0 %v6838_v54 }
 0xb66   : > { %4231 = vmatprep.subr.bf16.mxu0 %v6847_v23 }
 0xb67   : > { %4161 = vmatpush1.bf16.msra.mxu1 %v6812_v36 }
 0xb68   : > { %4162 = vmatprep.subr.bf16.mxu1 %v6821_v43 }
 0xb69   : > { %4232 = vmatpush1.bf16.msra.mxu0 %v6846_v18  ;;  %v3423_v18 = vld [vmem:[%s9038_s22 + $0x288] sm:$0xff] }
 0xb6a   : > { %4233 = vmatprep.subr.bf16.mxu0 %v6855_v21  ;;  %v3427_v21 = vld [vmem:[%s9038_s22 + $0x2a8] sm:$0xff] }
 0xb6b   : > { %4163 = vmatpush1.bf16.msra.mxu1 %v6820_v13 }
 0xb6c   : > { %4164 = vmatprep.subr.bf16.mxu1 %v6829_v28 }
 0xb6d   : > { %4234 = vmatpush1.bf16.msra.mxu0 %v6854_v29 }
 0xb6f   : > { %4165 = vmatpush1.bf16.msra.mxu1 %v6828_v7 }
 0xb70   : > { %4166 = vmatprep.subr.bf16.mxu1 %v6837_v56 }
 0xb73   : > { %4167 = vmatpush1.bf16.msra.mxu1 %v6836_v22 }
 0xb74   : > { %4168 = vmatprep.subr.bf16.mxu1 %v6845_v50 }
 0xb77   : > { %4169 = vmatpush1.bf16.msra.mxu1 %v6844_v63  ;;  %v3426_v63 = vld [vmem:[%s9038_s22 + $0x2a0] sm:$0xff] }
 0xb78   : > { %4170 = vmatprep.subr.bf16.mxu1 %v6853_v4  ;;  %v6861_v4 = vcombine.high %v3422_v17, %v3426_v63 }
 0xb7b   : > { %4171 = vmatpush1.bf16.msra.mxu1 %v6852_v25 }
 0xb7c   : > { %4172 = vmatprep.subr.bf16.mxu1 %v6861_v4  ;;  %v3454_v4 = vld [vmem:[%s9038_s22 + $0x380] sm:$0xff] }
 0xbd3   : > { %v3196_v30 = vpop.xlane.xlu0 %3195 }
 0xbd4   : > { %v3212_v58 = vmul.f32 0.00390625, %v3196_v30 }
 0xbd5   : > { %v3199_v32 = vpop.xlane.xlu1 %3198 }
 0xbd6   : > { %v9620_v38 = vsub.f32 %v9543_v5, %v3212_v58  ;;  %v9623_v14 = vsub.f32 %v9545_v31, %v3212_v58  ;;  %v3213_v12 = vmul.f32 0.00390625, %v3199_v32  ;;  %v6860_v58 = vcombine.low %v3422_v17, %v3426_v63 }
 0xbd7   : > { %v6862_v32 = vcombine.low %v3423_v18, %v3427_v21 }
 0xbd8   : > { %v9626_v34 = vsub.f32 %v9547_v20, %v3213_v12  ;;  %v9629_v36 = vsub.f32 %v9549_v40, %v3213_v12  ;;  %v3230_v42 = vmul.f32 %v9620_v38, %v9620_v38  ;;  %v3231_v43 = vmul.f32 %v9623_v14, %v9623_v14  ;;  %4173 = vmatpush1.bf16.msra.mxu1 %v6860_v58  ;;  %v7721_v40 = vld [vmem:[%s9040_s0 + $0x1a0] ss:$8 sps:$4 sm:$0xff]  }
 0xbd9   : > { %v6863_v12 = vcombine.high %v3423_v18, %v3427_v21  ;;  %v3458_v21 = vld [vmem:[%s9038_s22 + $0x3a0] sm:$0xff] }
 0xbda   : > { %v3242_v44 = vadd.f32 %v3231_v43, %v3230_v42  ;;  %v3232_v9 = vmul.f32 %v9626_v34, %v9626_v34  ;;  %v3233_v8 = vmul.f32 %v9629_v36, %v9629_v36  ;;  %v3430_v43 = vld [vmem:[%s9038_s22 + $0x2c0] sm:$0xff]  ;;  %v6892_v58 = vcombine.low %v3454_v4, %v3458_v21 }
 0xbdb   : > { %v3202_v45 = vpop.xlane.xlu0 %3201  ;;  %4235 = vmatprep.subr.bf16.mxu0 %v6863_v12 }
 0xbdc   : > { %v3214_v46 = vmul.f32 0.00390625, %v3202_v45  ;;  %3243 = vadd.xlane.f32.xlu0 %v3242_v44  ;;  %v3245_v13 = vadd.f32 %v3233_v8, %v3232_v9  ;;  %v3434_v44 = vld [vmem:[%s9038_s22 + $0x2e0] sm:$0xff]  ;;  %v3431_v9 = vld [vmem:[%s9038_s22 + $0x2c8] sm:$0xff]  ;;  %4236 = vmatpush1.bf16.msra.mxu0 %v6862_v32 }
 0xbdd   : > { %v3205_v53 = vpop.xlane.xlu1 %3204  ;;  %v6869_v8 = vcombine.high %v3430_v43, %v3434_v44  ;;  %v3435_v45 = vld [vmem:[%s9038_s22 + $0x2e8] sm:$0xff] }
 0xbde   : > { %v9640_v28 = vsub.f32 %v9555_v24, %v3214_v46  ;;  %v9643_v59 = vsub.f32 %v9557_v15, %v3214_v46  ;;  %v3215_v1 = vmul.f32 0.00390625, %v3205_v53  ;;  %3246 = vadd.xlane.f32.xlu1 %v3245_v13  ;;  %v6868_v46 = vcombine.low %v3430_v43, %v3434_v44  ;;  %v3466_v43 = vld [vmem:[%s9038_s22 + $0x3e0] sm:$0xff]  ;;  %v3463_v44 = vld [vmem:[%s9038_s22 + $0x3c8] sm:$0xff] }
 0xbdf   : > { %v6870_v13 = vcombine.low %v3431_v9, %v3435_v45  ;;  %v6871_v53 = vcombine.high %v3431_v9, %v3435_v45  ;;  %4174 = vmatprep.subr.bf16.mxu1 %v6869_v8  ;;  %v3467_v8 = vld [vmem:[%s9038_s22 + $0x3e8] sm:$0xff] }
 0xbe0   : > { %v9646_v37 = vsub.f32 %v9559_v48, %v3215_v1  ;;  %v9649_v41 = vsub.f32 %v9561_v47, %v3215_v1  ;;  %v3234_v49 = vmul.f32 %v9640_v28, %v9640_v28  ;;  %v3235_v7 = vmul.f32 %v9643_v59, %v9643_v59  ;;  %4175 = vmatpush1.bf16.msra.mxu1 %v6868_v46  ;;  %v3438_v1 = vld [vmem:[%s9038_s22 + $0x300] sm:$0xff] }
 0xbe1   : > { %4237 = vmatprep.subr.bf16.mxu0 %v6871_v53  ;;  %v6902_v46 = vcombine.low %v3463_v44, %v3467_v8  ;;  %v9704_v53 = vld [vmem:[%s9038_s22 + $0x10] sm:$0xff] }
 0xbe2   : > { %v3248_v10 = vadd.f32 %v3235_v7, %v3234_v49  ;;  %v3236_v56 = vmul.f32 %v9646_v37, %v9646_v37  ;;  %v3237_v52 = vmul.f32 %v9649_v41, %v9649_v41  ;;  %v3442_v49 = vld [vmem:[%s9038_s22 + $0x320] sm:$0xff]  ;;  %v3439_v7 = vld [vmem:[%s9038_s22 + $0x308] sm:$0xff]  ;;  %4238 = vmatpush1.bf16.msra.mxu0 %v6870_v13  ;;  %v6903_v13 = vcombine.high %v3463_v44, %v3467_v8 }
 0xbe3   : > { %v3208_v61 = vpop.xlane.xlu0 %3207 }
 0xbe4   : > { %v3216_v51 = vmul.f32 0.00390625, %v3208_v61  ;;  %3249 = vadd.xlane.f32.xlu0 %v3248_v10  ;;  %v3251_v62 = vadd.f32 %v3237_v52, %v3236_v56  ;;  %v6877_v10 = vcombine.high %v3438_v1, %v3442_v49  ;;  %v3443_v56 = vld [vmem:[%s9038_s22 + $0x328] sm:$0xff]  ;;  %v6876_v52 = vcombine.low %v3438_v1, %v3442_v49  ;;  %v9707_v1 = vld [vmem:[%s9038_s22 + $0x30] sm:$0xff]  ;;  %v9710_v49 = vld [vmem:[%s9038_s22 + $0x18] sm:$0xff] }
 0xbe5   : > { %v3211_v0 = vpop.xlane.xlu1 %3210  ;;  %v6878_v61 = vcombine.low %v3439_v7, %v3443_v56 }
 0xbe6   : > { %v9660_v22 = vsub.f32 %v9567_v57, %v3216_v51  ;;  %v9663_v54 = vsub.f32 %v9569_v33, %v3216_v51  ;;  %v3217_v50 = vmul.f32 0.00390625, %v3211_v0  ;;  %3252 = vadd.xlane.f32.xlu1 %v3251_v62  ;;  %v6879_v51 = vcombine.high %v3439_v7, %v3443_v56  ;;  %4176 = vmatprep.subr.bf16.mxu1 %v6877_v10  ;;  %v3446_v62 = vld [vmem:[%s9038_s22 + $0x340] sm:$0xff]  ;;  %v9715_v10 = vld [vmem:[%s9038_s22 + $0x38] sm:$0xff] }
 0xbe7   : > { %4177 = vmatpush1.bf16.msra.mxu1 %v6876_v52  ;;  %v3450_v0 = vld [vmem:[%s9038_s22 + $0x360] sm:$0xff]  ;;  %v6785_v7 = vcombine.high %v9704_v53, %v9707_v1  ;;  %v6784_v56 = vcombine.low %v9704_v53, %v9707_v1  ;;  %v6786_v52 = vcombine.low %v9710_v49, %v9715_v10 }
 0xbe8   : > { %v9666_v23 = vsub.f32 %v9571_v35, %v3217_v50  ;;  %v9669_v19 = vsub.f32 %v9573_v39, %v3217_v50  ;;  %v3238_v11 = vmul.f32 %v9660_v22, %v9660_v22  ;;  %v3239_v16 = vmul.f32 %v9663_v54, %v9663_v54  ;;  %4239 = vmatprep.subr.bf16.mxu0 %v6879_v51  ;;  %v3447_v50 = vld [vmem:[%s9038_s22 + $0x348] sm:$0xff] }
 0xbe9   : > { %4240 = vmatpush1.bf16.msra.mxu0 %v6878_v61  ;;  %v6884_v17 = vcombine.low %v3446_v62, %v3450_v0  ;;  %v6787_v61 = vcombine.high %v9710_v49, %v9715_v10  ;;  %v3373_v49 = vld [vmem:[%s9038_s22 + $0xf8] sm:$0xff] }
 0xbea   : > { %v3254_v25 = vadd.f32 %v3239_v16, %v3238_v11  ;;  %v3240_v29 = vmul.f32 %v9666_v23, %v9666_v23  ;;  %v3241_v30 = vmul.f32 %v9669_v19, %v9669_v19  ;;  %v6885_v11 = vcombine.high %v3446_v62, %v3450_v0  ;;  %v3451_v16 = vld [vmem:[%s9038_s22 + $0x368] sm:$0xff] }
 0xbeb   : > { %v6886_v63 = vcombine.low %v3447_v50, %v3451_v16  ;;  %v6887_v18 = vcombine.high %v3447_v50, %v3451_v16 }
 0xbec   : > { %3255 = vadd.xlane.f32.xlu0 %v3254_v25  ;;  %v3257_v42 = vadd.f32 %v3241_v30, %v3240_v29  ;;  %4178 = vmatprep.subr.bf16.mxu1 %v6885_v11  ;;  %v3455_v25 = vld [vmem:[%s9038_s22 + $0x388] sm:$0xff]  ;;  %v6893_v29 = vcombine.high %v3454_v4, %v3458_v21 }
 0xbed   : > { %4241 = vmatprep.subr.bf16.mxu0 %v6887_v18  ;;  %4179 = vmatpush1.bf16.msra.mxu1 %v6884_v17  ;;  %v3459_v30 = vld [vmem:[%s9038_s22 + $0x3a8] sm:$0xff] }
 0xbee   : > { %3258 = vadd.xlane.f32.xlu1 %v3257_v42  ;;  %4242 = vmatpush1.bf16.msra.mxu0 %v6886_v63  ;;  %v6894_v32 = vcombine.low %v3455_v25, %v3459_v30  ;;  %v6895_v12 = vcombine.high %v3455_v25, %v3459_v30  ;;  %v3462_v42 = vld [vmem:[%s9038_s22 + $0x3c0] sm:$0xff] }
 0xbef   : > { %4180 = vmatprep.subr.bf16.mxu1 %v6893_v29  ;;  %v6901_v9 = vcombine.high %v3462_v42, %v3466_v43  ;;  %v6900_v45 = vcombine.low %v3462_v42, %v3466_v43  ;;  %v3192_v25 = vld [vmem:[%s937_s14] sm:$0x3] }
 0xbf0   : > { %4243 = vmatprep.subr.bf16.mxu0 %v6895_v12  ;;  %v3193_v30 = vld [vmem:[%s941_s6] sm:$0x3] }
 0xbf1   : > { %4181 = vmatpush1.bf16.msra.mxu1 %v6892_v58  ;;  %v9734_v58 = vrot.slane %v3192_v25, %v9211_v2 }
 0xbf2   : > { %4244 = vmatpush1.bf16.msra.mxu0 %v6894_v32  ;;  %4182 = vmatprep.subr.bf16.mxu1 %v6901_v9  ;;  %v9737_v32 = vrot.slane %v3192_v25, %v9214_v3 }
 0xbf3   : > { %4245 = vmatprep.subr.bf16.mxu0 %v6903_v13 }
 0xbf5   : > { %4183 = vmatpush1.bf16.msra.mxu1 %v6900_v45  ;;  %v9742_v45 = vrot.slane %v3193_v30, %v9211_v2 }
 0xbf6   : > { %4246 = vmatpush1.bf16.msra.mxu0 %v6902_v46  ;;  %4278 = vmatprep.subr.bf16.mxu1 %v6785_v7  ;;  %v9745_v46 = vrot.slane %v3193_v30, %v9214_v3 }
 0xbf7   : > { %4341 = vmatprep.subr.bf16.mxu0 %v6787_v61 }
 0xc69   : > { %v3244_v51 = vpop.xlane.xlu0 %3243 }
 0xc6a   : > { %v3260_v62 = vmul.f32 0.00390625, %v3244_v51 }
 0xc6b   : > { %v3247_v0 = vpop.xlane.xlu1 %3246 }
 0xc6c   : > { %v3266_v50 = vadd.f32 1e-06, %v3260_v62  ;;  %v3261_v11 = vmul.f32 0.00390625, %v3247_v0 }
 0xc6e   : > { %7895 = vrsqrt.f32 %v3266_v50  ;;  %v3267_v16 = vadd.f32 1e-06, %v3261_v11 }
 0xc70   : > { %7897 = vrsqrt.f32 %v3267_v16  ;;  %v3352_v16 = vld [vmem:[%s9038_s22 + $0x50] sm:$0xff] }
 0xc71   : > { %v3250_v17 = vpop.xlane.xlu0 %3249 }
 0xc72   : > { %v3262_v63 = vmul.f32 0.00390625, %v3250_v17 }
 0xc73   : > { %v3253_v18 = vpop.xlane.xlu1 %3252 }
 0xc74   : > { %v3268_v4 = vadd.f32 1e-06, %v3262_v63  ;;  %v3263_v21 = vmul.f32 0.00390625, %v3253_v18  ;;  %v3356_v18 = vld [vmem:[%s9038_s22 + $0x70] sm:$0xff] }
 0xc76   : > { %7899 = vrsqrt.f32 %v3268_v4  ;;  %v3269_v29 = vadd.f32 1e-06, %v3263_v21  ;;  %v3353_v4 = vld [vmem:[%s9038_s22 + $0x58] sm:$0xff] }
 0xc77   : > { %v3357_v21 = vld [vmem:[%s9038_s22 + $0x78] sm:$0xff] }
 0xc78   : > { %v7896_v12 = vpop.eup %7895  ;;  %7901 = vrsqrt.f32 %v3269_v29 }
 0xc79   : > { %v3278_v42 = vmul.f32 %v7896_v12, %v9620_v38  ;;  %v3279_v43 = vmul.f32 %v7896_v12, %v9623_v14  ;;  %v3256_v44 = vpop.xlane.xlu0 %3255 }
 0xc7a   : > { %v7898_v9 = vpop.eup %7897  ;;  %v3264_v8 = vmul.f32 0.00390625, %v3256_v44  ;;  %v6793_v44 = vcombine.high %v3352_v16, %v3356_v18 }
 0xc7b   : > { %v3280_v13 = vmul.f32 %v7898_v9, %v9626_v34  ;;  %v3281_v7 = vmul.f32 %v7898_v9, %v9629_v36  ;;  %v3259_v61 = vpop.xlane.xlu1 %3258  ;;  %v3302_v38 = vmul.f32 %v9734_v58, %v3279_v43  ;;  %v3301_v14 = vmul.f32 %v9737_v32, %v3278_v42 }
 0xc7c   : > { %v3270_v51 = vadd.f32 1e-06, %v3264_v8  ;;  %v3265_v62 = vmul.f32 0.00390625, %v3259_v61  ;;  %v6795_v9 = vcombine.high %v3353_v4, %v3357_v21  ;;  %v3360_v8 = vld [vmem:[%s9038_s22 + $0x90] sm:$0xff] }
 0xc7d   : > { %v3304_v0 = vmul.f32 %v9734_v58, %v3281_v7  ;;  %v3303_v50 = vmul.f32 %v9737_v32, %v3280_v13  ;;  %v3325_v34 = vadd.f32 %v9742_v45, %v3302_v38  ;;  %v3324_v17 = vadd.f32 %v9745_v46, %v3301_v14  ;;  %v3364_v61 = vld [vmem:[%s9038_s22 + $0xb0] sm:$0xff]  ;;  %v3365_v38 = vld [vmem:[%s9038_s22 + $0xb8] sm:$0xff] }
 0xc7e   : > { %7903 = vrsqrt.f32 %v3270_v51  ;;  %v3271_v11 = vadd.f32 1e-06, %v3265_v62  ;;  %v6792_v14 = vcombine.low %v3352_v16, %v3356_v18 }
 0xc7f   : > { %v3327_v36 = vadd.f32 %v9742_v45, %v3304_v0  ;;  %v3326_v63 = vadd.f32 %v9745_v46, %v3303_v50  ;;  %v6801_v0 = vcombine.high %v3360_v8, %v3364_v61 }
 0xc80   : > { %v7900_v25 = vpop.eup %7899  ;;  %7905 = vrsqrt.f32 %v3271_v11  ;;  %v3368_v11 = vld [vmem:[%s9038_s22 + $0xd0] sm:$0xff] }
 0xc81   : > { %v3282_v29 = vmul.f32 %v7900_v25, %v9640_v28  ;;  %v3283_v30 = vmul.f32 %v7900_v25, %v9643_v59  ;;  %v9763_v12 = vpack.c.bf16 %v3327_v36, %v3325_v34  ;;  %v9765_v42 = vpack.c.bf16 %v3326_v63, %v3324_v17  ;;  %v3361_v59 = vld [vmem:[%s9038_s22 + $0x98] sm:$0xff] }
 0xc82   : > { %v7902_v43 = vpop.eup %7901  ;;  %v6803_v50 = vcombine.high %v3361_v59, %v3365_v38  ;;  %v3369_v34 = vld [vmem:[%s9038_s22 + $0xd8] sm:$0xff]  ;;  %v6802_v36 = vcombine.low %v3361_v59, %v3365_v38 }
 0xc83   : > { %v3284_v13 = vmul.f32 %v7902_v43, %v9646_v37  ;;  %v3285_v7 = vmul.f32 %v7902_v43, %v9649_v41  ;;  %4184 = vmatprep.mubr.bf16.mxu1 %v9763_v12  ;;  %4247 = vmatprep.mubr.bf16.mxu0 %v9763_v12  ;;  %v3306_v28 = vmul.f32 %v9734_v58, %v3283_v30  ;;  %v3376_v43 = vld [vmem:[%s9038_s22 + $0x110] sm:$0xff] }
 0xc84   : > { %4185 = vmatmul.mubr.bf16.vlgmr.msra.gmra.mrb[20].mxu1 %v9765_v42  ;;  %4248 = vmatmul.mubr.bf16.vlgmr.msra.gmra.mrb[60].mxu0 %v9765_v42  ;;  %v3305_v37 = vmul.f32 %v9737_v32, %v3282_v29  ;;  %v6794_v41 = vcombine.low %v3353_v4, %v3357_v21  ;;  %v6811_v30 = vcombine.high %v3369_v34, %v3373_v49 }
 0xc85   : > { %4279 = vmatpush1.bf16.msra.mxu1 %v6784_v56  ;;  %4342 = vmatpush1.bf16.msra.mxu0 %v6786_v52  ;;  %v3308_v51 = vmul.f32 %v9734_v58, %v3285_v7  ;;  %v3307_v62 = vmul.f32 %v9737_v32, %v3284_v13  ;;  %v3329_v16 = vadd.f32 %v9742_v45, %v3306_v28  ;;  %v3372_v56 = vld [vmem:[%s9038_s22 + $0xf0] sm:$0xff]  ;;  %v3381_v13 = vld [vmem:[%s9038_s22 + $0x138] sm:$0xff] }
 0xc86   : > { %4280 = vmatprep.subr.bf16.mxu1 %v6793_v44  ;;  %4343 = vmatprep.subr.bf16.mxu0 %v6795_v9  ;;  %v6800_v52 = vcombine.low %v3360_v8, %v3364_v61  ;;  %v3328_v17 = vadd.f32 %v9745_v46, %v3305_v37  ;;  %v6809_v29 = vcombine.high %v3368_v11, %v3372_v56  ;;  %v3380_v9 = vld [vmem:[%s9038_s22 + $0x130] sm:$0xff]  ;;  %v3377_v8 = vld [vmem:[%s9038_s22 + $0x118] sm:$0xff] }
 0xc87   : > { %v3331_v53 = vadd.f32 %v9742_v45, %v3308_v51  ;;  %v3330_v1 = vadd.f32 %v9745_v46, %v3307_v62  ;;  %v6808_v7 = vcombine.low %v3368_v11, %v3372_v56  ;;  %v6817_v59 = vcombine.high %v3376_v43, %v3380_v9  ;;  %v3384_v62 = vld [vmem:[%s9038_s22 + $0x150] sm:$0xff] }
 0xc88   : > { %v7904_v10 = vpop.eup %7903  ;;  %v6819_v38 = vcombine.high %v3377_v8, %v3381_v13  ;;  %v3396_v56 = vld [vmem:[%s9038_s22 + $0x1b0] sm:$0xff] }
 0xc89   : > { %v3286_v63 = vmul.f32 %v7904_v10, %v9660_v22  ;;  %v3287_v18 = vmul.f32 %v7904_v10, %v9663_v54  ;;  %4281 = vmatpush1.bf16.msra.mxu1 %v6792_v14  ;;  %4344 = vmatpush1.bf16.msra.mxu0 %v6794_v41  ;;  %v9797_v4 = vpack.c.bf16 %v3331_v53, %v3329_v16 }
 0xc8a   : > { %v7906_v21 = vpop.eup %7905  ;;  %4282 = vmatprep.subr.bf16.mxu1 %v6801_v0  ;;  %4345 = vmatprep.subr.bf16.mxu0 %v6803_v50  ;;  %v9799_v25 = vpack.c.bf16 %v3330_v1, %v3328_v17  ;;  %v6816_v0 = vcombine.low %v3376_v43, %v3380_v9  ;;  %v3388_v50 = vld [vmem:[%s9038_s22 + $0x170] sm:$0xff]  ;;  %v6818_v16 = vcombine.low %v3377_v8, %v3381_v13  ;;  %v3409_v9 = vld [vmem:[%s9038_s22 + $0x218] sm:$0xff] }
 0xc8b   : > { %v3288_v44 = vmul.f32 %v7906_v21, %v9666_v23  ;;  %v3289_v22 = vmul.f32 %v7906_v21, %v9669_v19  ;;  %4194 = vmatprep.mubr.bf16.mxu1 %v9797_v4  ;;  %4257 = vmatprep.mubr.bf16.mxu0 %v9797_v4  ;;  %v3310_v54 = vmul.f32 %v9734_v58, %v3287_v18  ;;  %v3404_v18 = vld [vmem:[%s9038_s22 + $0x1f0] sm:$0xff]  ;;  %v3401_v21 = vld [vmem:[%s9038_s22 + $0x1d8] sm:$0xff] }
 0xc8c   : > { %4195 = vmatmul.mubr.bf16.gmra.mrb[24].mxu1 %v9799_v25  ;;  %4258 = vmatmul.mubr.bf16.gmra.mrb[64].mxu0 %v9799_v25  ;;  %v3309_v28 = vmul.f32 %v9737_v32, %v3286_v63  ;;  %v6810_v23 = vcombine.low %v3369_v34, %v3373_v49  ;;  %v3393_v34 = vld [vmem:[%s9038_s22 + $0x198] sm:$0xff]  ;;  %v6824_v10 = vcombine.low %v3384_v62, %v3388_v50  ;;  %v3400_v63 = vld [vmem:[%s9038_s22 + $0x1d0] sm:$0xff] }
 0xc8d   : > { %4283 = vmatpush1.bf16.msra.mxu1 %v6800_v52  ;;  %4346 = vmatpush1.bf16.msra.mxu0 %v6802_v36  ;;  %v3312_v19 = vmul.f32 %v9734_v58, %v3289_v22  ;;  %v3311_v61 = vmul.f32 %v9737_v32, %v3288_v44  ;;  %v3333_v14 = vadd.f32 %v9742_v45, %v3310_v54  ;;  %v3385_v58 = vld [vmem:[%s9038_s22 + $0x158] sm:$0xff]  ;;  %v3408_v22 = vld [vmem:[%s9038_s22 + $0x210] sm:$0xff] }
 0xc8e   : > { %4284 = vmatprep.subr.bf16.mxu1 %v6809_v29  ;;  %4347 = vmatprep.subr.bf16.mxu0 %v6811_v30  ;;  %v3332_v41 = vadd.f32 %v9745_v46, %v3309_v28  ;;  %v3389_v32 = vld [vmem:[%s9038_s22 + $0x178] sm:$0xff]  ;;  %v3412_v54 = vld [vmem:[%s9038_s22 + $0x230] sm:$0xff]  ;;  %v6840_v13 = vcombine.low %v3400_v63, %v3404_v18 }
 0xc8f   : > { %v3335_v37 = vadd.f32 %v9742_v45, %v3312_v19  ;;  %v3334_v51 = vadd.f32 %v9745_v46, %v3311_v61  ;;  %v3392_v45 = vld [vmem:[%s9038_s22 + $0x190] sm:$0xff]  ;;  %v6825_v46 = vcombine.high %v3384_v62, %v3388_v50  ;;  %v6827_v1 = vcombine.high %v3385_v58, %v3389_v32  ;;  %v3397_v49 = vld [vmem:[%s9038_s22 + $0x1b8] sm:$0xff] }
 0xc90   : > { %v6826_v52 = vcombine.low %v3385_v58, %v3389_v32  ;;  %v6833_v36 = vcombine.high %v3392_v45, %v3396_v56  ;;  %v6835_v17 = vcombine.high %v3393_v34, %v3397_v49  ;;  %v3405_v29 = vld [vmem:[%s9038_s22 + $0x1f8] sm:$0xff]  ;;  %v6832_v30 = vcombine.low %v3392_v45, %v3396_v56  ;;  %v3416_v19 = vld [vmem:[%s9038_s22 + $0x250] sm:$0xff] }
 0xc91   : > { %4285 = vmatpush1.bf16.msra.mxu1 %v6808_v7  ;;  %4348 = vmatpush1.bf16.msra.mxu0 %v6810_v23  ;;  %v9823_v11 = vpack.c.bf16 %v3335_v37, %v3333_v14  ;;  %v9825_v53 = vpack.c.bf16 %v3334_v51, %v3332_v41  ;;  %v6834_v43 = vcombine.low %v3393_v34, %v3397_v49  ;;  %v3413_v8 = vld [vmem:[%s9038_s22 + $0x238] sm:$0xff]  ;;  %v3420_v61 = vld [vmem:[%s9038_s22 + $0x270] sm:$0xff] }
 0xc92   : > { %4286 = vmatprep.subr.bf16.mxu1 %v6817_v59  ;;  %4349 = vmatprep.subr.bf16.mxu0 %v6819_v38  ;;  %v6843_v44 = vcombine.high %v3401_v21, %v3405_v29  ;;  %v6842_v7 = vcombine.low %v3401_v21, %v3405_v29  ;;  %v6849_v28 = vcombine.high %v3408_v22, %v3412_v54  ;;  %v3417_v59 = vld [vmem:[%s9038_s22 + $0x258] sm:$0xff]  ;;  %v3424_v62 = vld [vmem:[%s9038_s22 + $0x290] sm:$0xff] }
 0xc93   : > { %4204 = vmatprep.mubr.bf16.mxu1 %v9823_v11  ;;  %4267 = vmatprep.mubr.bf16.mxu0 %v9823_v11  ;;  %v6851_v23 = vcombine.high %v3409_v9, %v3413_v8  ;;  %v3421_v38 = vld [vmem:[%s9038_s22 + $0x278] sm:$0xff]  ;;  %v6848_v14 = vcombine.low %v3408_v22, %v3412_v54  ;;  %v6850_v37 = vcombine.low %v3409_v9, %v3413_v8  ;;  %v3436_v56 = vld [vmem:[%s9038_s22 + $0x2f0] sm:$0xff] }
 0xc94   : > { %4205 = vmatmul.mubr.bf16.gmra.mrb[28].mxu1 %v9825_v53  ;;  %4268 = vmatmul.mubr.bf16.gmra.mrb[68].mxu0 %v9825_v53  ;;  %v6857_v41 = vcombine.high %v3416_v19, %v3420_v61  ;;  %v6859_v51 = vcombine.high %v3417_v59, %v3421_v38  ;;  %v3425_v50 = vld [vmem:[%s9038_s22 + $0x298] sm:$0xff]  ;;  %v6856_v32 = vcombine.low %v3416_v19, %v3420_v61  ;;  %v3448_v22 = vld [vmem:[%s9038_s22 + $0x350] sm:$0xff] }
 0xc95   : > { %4287 = vmatpush1.bf16.msra.mxu1 %v6816_v0  ;;  %4350 = vmatpush1.bf16.msra.mxu0 %v6818_v16  ;;  %v3428_v0 = vld [vmem:[%s9038_s22 + $0x2b0] sm:$0xff]  ;;  %v3429_v58 = vld [vmem:[%s9038_s22 + $0x2b8] sm:$0xff]  ;;  %v6858_v16 = vcombine.low %v3417_v59, %v3421_v38 }
 0xc96   : > { %4310 = vmatprep.mubr.bf16.mxu1 %v9763_v12  ;;  %4373 = vmatprep.mubr.bf16.mxu0 %v9763_v12  ;;  %v6841_v12 = vcombine.high %v3400_v63, %v3404_v18  ;;  %v6865_v45 = vcombine.high %v3424_v62, %v3428_v0  ;;  %v3433_v34 = vld [vmem:[%s9038_s22 + $0x2d8] sm:$0xff]  ;;  %v3440_v63 = vld [vmem:[%s9038_s22 + $0x310] sm:$0xff] }
 0xc97   : > { %4288 = vmatprep.subr.bf16.mxu1 %v6825_v46  ;;  %4351 = vmatprep.subr.bf16.mxu0 %v6827_v1  ;;  %v6867_v46 = vcombine.high %v3425_v50, %v3429_v58  ;;  %v3432_v1 = vld [vmem:[%s9038_s22 + $0x2d0] sm:$0xff]  ;;  %v3437_v49 = vld [vmem:[%s9038_s22 + $0x2f8] sm:$0xff] }
 0xc98   : > { %v3444_v18 = vld [vmem:[%s9038_s22 + $0x330] sm:$0xff]  ;;  %v3441_v21 = vld [vmem:[%s9038_s22 + $0x318] sm:$0xff] }
 0xc99   : > { %4289 = vmatpush1.bf16.msra.mxu1 %v6824_v10  ;;  %4352 = vmatpush1.bf16.msra.mxu0 %v6826_v52  ;;  %v6864_v10 = vcombine.low %v3424_v62, %v3428_v0  ;;  %v6866_v52 = vcombine.low %v3425_v50, %v3429_v58  ;;  %v3445_v29 = vld [vmem:[%s9038_s22 + $0x338] sm:$0xff]  ;;  %v3452_v54 = vld [vmem:[%s9038_s22 + $0x370] sm:$0xff] }
 0xc9a   : > { %4290 = vmatprep.subr.bf16.mxu1 %v6833_v36  ;;  %4353 = vmatprep.subr.bf16.mxu0 %v6835_v17  ;;  %v6873_v36 = vcombine.high %v3432_v1, %v3436_v56  ;;  %v6875_v17 = vcombine.high %v3433_v34, %v3437_v49  ;;  %v3449_v9 = vld [vmem:[%s9038_s22 + $0x358] sm:$0xff]  ;;  %v3456_v19 = vld [vmem:[%s9038_s22 + $0x390] sm:$0xff] }
 0xc9b   : > { %v3453_v8 = vld [vmem:[%s9038_s22 + $0x378] sm:$0xff]  ;;  %v3460_v61 = vld [vmem:[%s9038_s22 + $0x3b0] sm:$0xff] }
 0xc9c   : > { %v3457_v59 = vld [vmem:[%s9038_s22 + $0x398] sm:$0xff]  ;;  %v3464_v62 = vld [vmem:[%s9038_s22 + $0x3d0] sm:$0xff] }
 0xc9d   : > { %4291 = vmatpush1.bf16.msra.mxu1 %v6832_v30  ;;  %4354 = vmatpush1.bf16.msra.mxu0 %v6834_v43  ;;  %v6872_v30 = vcombine.low %v3432_v1, %v3436_v56  ;;  %v6874_v43 = vcombine.low %v3433_v34, %v3437_v49  ;;  %v3461_v38 = vld [vmem:[%s9038_s22 + $0x3b8] sm:$0xff]  ;;  %v3468_v0 = vld [vmem:[%s9038_s22 + $0x3f0] sm:$0xff]  ;;  %v7645_v34 = vld [vmem:[%s9040_s0 + $0x4] ss:$8 sps:$4 sm:$0xff]  }
 0xc9e   : > { %4292 = vmatprep.subr.bf16.mxu1 %v6841_v12  ;;  %4355 = vmatprep.subr.bf16.mxu0 %v6843_v44  ;;  %v6881_v12 = vcombine.high %v3440_v63, %v3444_v18  ;;  %v6883_v44 = vcombine.high %v3441_v21, %v3445_v29  ;;  %v3465_v50 = vld [vmem:[%s9038_s22 + $0x3d8] sm:$0xff]  ;;  %v6904_v1 = vcombine.low %v3464_v62, %v3468_v0  ;;  %v7643_v49 = vld [vmem:[%s9040_s0] ss:$8 sps:$4 sm:$0xff]  }
 0xc9f   : > { %v3469_v58 = vld [vmem:[%s9038_s22 + $0x3f8] sm:$0xff] }
 0xca0   : > { %v6906_v56 = vcombine.low %v3465_v50, %v3469_v58 }
 0xca1   : > { %4293 = vmatpush1.bf16.msra.mxu1 %v6840_v13  ;;  %4356 = vmatpush1.bf16.msra.mxu0 %v6842_v7  ;;  %v6880_v13 = vcombine.low %v3440_v63, %v3444_v18  ;;  %v6882_v7 = vcombine.low %v3441_v21, %v3445_v29  ;;  %v7654_v63 = vld [vmem:[%s9040_s0 + $0x34] ss:$8 sps:$4 sm:$0xff]   ;;  %v7655_v18 = vld [vmem:[%s9040_s0 + $0x40] ss:$8 sps:$4 sm:$0xff]  }
 0xca2   : > { %4294 = vmatprep.subr.bf16.mxu1 %v6849_v28  ;;  %4357 = vmatprep.subr.bf16.mxu0 %v6851_v23  ;;  %v6889_v28 = vcombine.high %v3448_v22, %v3452_v54  ;;  %v6891_v23 = vcombine.high %v3449_v9, %v3453_v8  ;;  %v7660_v21 = vld [vmem:[%s9040_s0 + $0x54] ss:$8 sps:$4 sm:$0xff]   ;;  %v7661_v29 = vld [vmem:[%s9040_s0 + $0x60] ss:$8 sps:$4 sm:$0xff]  }
 0xca5   : > { %4295 = vmatpush1.bf16.msra.mxu1 %v6848_v14  ;;  %4358 = vmatpush1.bf16.msra.mxu0 %v6850_v37  ;;  %v6888_v14 = vcombine.low %v3448_v22, %v3452_v54  ;;  %v6890_v37 = vcombine.low %v3449_v9, %v3453_v8  ;;  %v7670_v22 = vld [vmem:[%s9040_s0 + $0x90] ss:$8 sps:$4 sm:$0xff]   ;;  %v7675_v54 = vld [vmem:[%s9040_s0 + $0xa4] ss:$8 sps:$4 sm:$0xff]   ;;  %v7673_v9 = vld [vmem:[%s9040_s0 + $0xa0] ss:$8 sps:$4 sm:$0xff]  }
 0xca6   : > { %4296 = vmatprep.subr.bf16.mxu1 %v6857_v41  ;;  %4359 = vmatprep.subr.bf16.mxu0 %v6859_v51  ;;  %v6897_v41 = vcombine.high %v3456_v19, %v3460_v61  ;;  %v6899_v51 = vcombine.high %v3457_v59, %v3461_v38  ;;  %v7678_v8 = vld [vmem:[%s9040_s0 + $0xb4] ss:$8 sps:$4 sm:$0xff]  }
 0xca9   : > { %4297 = vmatpush1.bf16.msra.mxu1 %v6856_v32  ;;  %4360 = vmatpush1.bf16.msra.mxu0 %v6858_v16  ;;  %v6896_v32 = vcombine.low %v3456_v19, %v3460_v61  ;;  %v6898_v16 = vcombine.low %v3457_v59, %v3461_v38  ;;  %v7682_v19 = vld [vmem:[%s9040_s0 + $0xd0] ss:$8 sps:$4 sm:$0xff]   ;;  %v7687_v61 = vld [vmem:[%s9040_s0 + $0xe4] ss:$8 sps:$4 sm:$0xff]   ;;  %v7685_v59 = vld [vmem:[%s9040_s0 + $0xe0] ss:$8 sps:$4 sm:$0xff]  }
 0xcaa   : > { %4298 = vmatprep.subr.bf16.mxu1 %v6865_v45  ;;  %4361 = vmatprep.subr.bf16.mxu0 %v6867_v46  ;;  %v6905_v45 = vcombine.high %v3464_v62, %v3468_v0  ;;  %v6907_v46 = vcombine.high %v3465_v50, %v3469_v58  ;;  %v7690_v38 = vld [vmem:[%s9040_s0 + $0xf4] ss:$8 sps:$4 sm:$0xff]  }
 0xcad   : > { %4299 = vmatpush1.bf16.msra.mxu1 %v6864_v10  ;;  %4362 = vmatpush1.bf16.msra.mxu0 %v6866_v52  ;;  %v7648_v10 = vld [vmem:[%s9040_s0 + $0x14] ss:$8 sps:$4 sm:$0xff]   ;;  %v7646_v52 = vld [vmem:[%s9040_s0 + $0x10] ss:$8 sps:$4 sm:$0xff]  }
 0xcae   : > { %4300 = vmatprep.subr.bf16.mxu1 %v6873_v36  ;;  %4363 = vmatprep.subr.bf16.mxu0 %v6875_v17  ;;  %v7651_v36 = vld [vmem:[%s9040_s0 + $0x24] ss:$8 sps:$4 sm:$0xff]   ;;  %v7649_v17 = vld [vmem:[%s9040_s0 + $0x20] ss:$8 sps:$4 sm:$0xff]  }
 0xcb1   : > { %4301 = vmatpush1.bf16.msra.mxu1 %v6872_v30  ;;  %4364 = vmatpush1.bf16.msra.mxu0 %v6874_v43  ;;  %v7666_v30 = vld [vmem:[%s9040_s0 + $0x74] ss:$8 sps:$4 sm:$0xff]   ;;  %v7664_v43 = vld [vmem:[%s9040_s0 + $0x70] ss:$8 sps:$4 sm:$0xff]  }
 0xcb2   : > { %4302 = vmatprep.subr.bf16.mxu1 %v6881_v12  ;;  %4365 = vmatprep.subr.bf16.mxu0 %v6883_v44  ;;  %v7669_v12 = vld [vmem:[%s9040_s0 + $0x84] ss:$8 sps:$4 sm:$0xff]   ;;  %v7672_v44 = vld [vmem:[%s9040_s0 + $0x94] ss:$8 sps:$4 sm:$0xff]  }
 0xcb5   : > { %4303 = vmatpush1.bf16.msra.mxu1 %v6880_v13  ;;  %4366 = vmatpush1.bf16.msra.mxu0 %v6882_v7  ;;  %v7676_v13 = vld [vmem:[%s9040_s0 + $0xb0] ss:$8 sps:$4 sm:$0xff]   ;;  %v7681_v7 = vld [vmem:[%s9040_s0 + $0xc4] ss:$8 sps:$4 sm:$0xff]  }
 0xcb6   : > { %4304 = vmatprep.subr.bf16.mxu1 %v6889_v28  ;;  %4367 = vmatprep.subr.bf16.mxu0 %v6891_v23  ;;  %v7679_v28 = vld [vmem:[%s9040_s0 + $0xc0] ss:$8 sps:$4 sm:$0xff]   ;;  %v7684_v23 = vld [vmem:[%s9040_s0 + $0xd4] ss:$8 sps:$4 sm:$0xff]  }
 0xcb9   : > { %4305 = vmatpush1.bf16.msra.mxu1 %v6888_v14  ;;  %4368 = vmatpush1.bf16.msra.mxu0 %v6890_v37  ;;  %v7688_v14 = vld [vmem:[%s9040_s0 + $0xf0] ss:$8 sps:$4 sm:$0xff]   ;;  %v7693_v37 = vld [vmem:[%s9040_s0 + $0x104] ss:$8 sps:$4 sm:$0xff]  }
 0xcba   : > { %4306 = vmatprep.subr.bf16.mxu1 %v6897_v41  ;;  %4369 = vmatprep.subr.bf16.mxu0 %v6899_v51  ;;  %v9917_v41 = vld [vmem:[%s9070_s4] sm:$0xff] }
 0xcbb   : > { %v9921_v51 = vrot.slane %v9917_v41, %v9214_v3  ;;  %v9926_v62 = vrot.slane %v9917_v41, %v1529_v60  ;;  %v9930_v0 = vrot.slane %v9917_v41, %v9211_v2  ;;  %v9935_v50 = vrot.slane %v9917_v41, %v1533_v6 }
 0xcbd   : > { %4307 = vmatpush1.bf16.msra.mxu1 %v6896_v32  ;;  %4370 = vmatpush1.bf16.msra.mxu0 %v6898_v16 }
 0xcbe   : > { %4308 = vmatprep.subr.bf16.mxu1 %v6905_v45  ;;  %4371 = vmatprep.subr.bf16.mxu0 %v6907_v46 }
 0xcc1   : > { %4309 = vmatpush1.bf16.msra.mxu1 %v6904_v1  ;;  %4372 = vmatpush1.bf16.msra.mxu0 %v6906_v56 }
 0xcc2   : > { %5640 = vmatprep.subr.bf16.mxu1 %v7645_v34 }
 0xcc4   : > { %4311 = vmatmul.mubr.bf16.vlgmr.msra.gmra.mrb[32].mxu1 %v9765_v42  ;;  %4374 = vmatmul.mubr.bf16.vlgmr.msra.gmra.mrb[72].mxu0 %v9765_v42  ;;  %v7652_v42 = vld [vmem:[%s9040_s0 + $0x30] ss:$8 sps:$4 sm:$0xff]  }
 0xcc5   : > { %4320 = vmatprep.mubr.bf16.mxu1 %v9797_v4  ;;  %4383 = vmatprep.mubr.bf16.mxu0 %v9797_v4  ;;  %v7657_v4 = vld [vmem:[%s9040_s0 + $0x44] ss:$8 sps:$4 sm:$0xff]  }
 0xcc6   : > { %5641 = vmatpush1.bf16.msra.mxu1 %v7643_v49 }
 0xcc7   : > { %5642 = vmatprep.subr.bf16.mxu1 %v7648_v10 }
 0xcca   : > { %5643 = vmatpush1.bf16.msra.mxu1 %v7646_v52 }
 0xccb   : > { %5644 = vmatprep.subr.bf16.mxu1 %v7651_v36 }
 0xccc   : > { %4321 = vmatmul.mubr.bf16.gmra.mrb[36].mxu1 %v9799_v25  ;;  %4384 = vmatmul.mubr.bf16.gmra.mrb[76].mxu0 %v9799_v25  ;;  %v7658_v25 = vld [vmem:[%s9040_s0 + $0x50] ss:$8 sps:$4 sm:$0xff]  }
 0xccd   : > { %4330 = vmatprep.mubr.bf16.mxu1 %v9823_v11  ;;  %4393 = vmatprep.mubr.bf16.mxu0 %v9823_v11  ;;  %v7663_v11 = vld [vmem:[%s9040_s0 + $0x64] ss:$8 sps:$4 sm:$0xff]  }
 0xcce   : > { %5645 = vmatpush1.bf16.msra.mxu1 %v7649_v17 }
 0xccf   : > { %5646 = vmatprep.subr.bf16.mxu1 %v7654_v63 }
 0xcd2   : > { %5647 = vmatpush1.bf16.msra.mxu1 %v7652_v42 }
 0xcd3   : > { %5648 = vmatprep.subr.bf16.mxu1 %v7657_v4 }
 0xcd4   : > { %4331 = vmatmul.mubr.bf16.gmra.mrb[40].mxu1 %v9825_v53  ;;  %4394 = vmatmul.mubr.bf16.gmra.mrb[80].mxu0 %v9825_v53  ;;  %v7667_v53 = vld [vmem:[%s9040_s0 + $0x80] ss:$8 sps:$4 sm:$0xff]  }
 0xcd6   : > { %5649 = vmatpush1.bf16.msra.mxu1 %v7655_v18 }
 0xcd7   : > { %5650 = vmatprep.subr.bf16.mxu1 %v7660_v21 }
 0xcda   : > { %5651 = vmatpush1.bf16.msra.mxu1 %v7658_v25 }
 0xcdb   : > { %5652 = vmatprep.subr.bf16.mxu1 %v7663_v11 }
 0xcde   : > { %5653 = vmatpush1.bf16.msra.mxu1 %v7661_v29 }
 0xcdf   : > { %5654 = vmatprep.subr.bf16.mxu1 %v7666_v30 }
 0xce2   : > { %5655 = vmatpush1.bf16.msra.mxu1 %v7664_v43 }
 0xce3   : > { %5656 = vmatprep.subr.bf16.mxu1 %v7669_v12 }
 0xce6   : > { %5657 = vmatpush1.bf16.msra.mxu1 %v7667_v53 }
 0xce7   : > { %5658 = vmatprep.subr.bf16.mxu1 %v7672_v44 }
 0xcea   : > { %5659 = vmatpush1.bf16.msra.mxu1 %v7670_v22 }
 0xceb   : > { %5660 = vmatprep.subr.bf16.mxu1 %v7675_v54 }
 0xcee   : > { %5661 = vmatpush1.bf16.msra.mxu1 %v7673_v9 }
 0xcef   : > { %5662 = vmatprep.subr.bf16.mxu1 %v7678_v8 }
 0xcf2   : > { %5663 = vmatpush1.bf16.msra.mxu1 %v7676_v13 }
 0xcf3   : > { %5664 = vmatprep.subr.bf16.mxu1 %v7681_v7 }
 0xcf6   : > { %5665 = vmatpush1.bf16.msra.mxu1 %v7679_v28 }
 0xcf7   : > { %5666 = vmatprep.subr.bf16.mxu1 %v7684_v23 }
 0xcfa   : > { %5667 = vmatpush1.bf16.msra.mxu1 %v7682_v19 }
 0xcfb   : > { %5668 = vmatprep.subr.bf16.mxu1 %v7687_v61 }
 0xcfe   : > { %5669 = vmatpush1.bf16.msra.mxu1 %v7685_v59 }
 0xcff   : > { %5670 = vmatprep.subr.bf16.mxu1 %v7690_v38 }
 0xd02   : > { %5671 = vmatpush1.bf16.msra.mxu1 %v7688_v14 }
 0xd03   : > { %5703 = vmatprep.subr.bf16.mxu1 %v7693_v37 }
 0xd57   : > { %v4186_v58 = vpop.f32.mrb[20].mxu1  ;;  %v4249_v32 = vpop.f32.mrb[60].mxu0 }
 0xd58   : > { %v9938_v16 = vadd.f32 %v4186_v58, %v9921_v51  ;;  %v9941_v45 = vadd.f32 %v4249_v32, %v9926_v62  ;;  %v4188_v46 = vpop.f32.mrb[21].mxu1  ;;  %v4251_v60 = vpop.f32.mrb[61].mxu0 }
 0xd59   : > { %v9944_v1 = vadd.f32 %v4188_v46, %v9930_v0  ;;  %v9947_v56 = vadd.f32 %v4251_v60, %v9935_v50  ;;  %v4190_v34 = vpop.f32.mrb[22].mxu1  ;;  %v4253_v49 = vpop.f32.mrb[62].mxu0 }
 0xd5a   : > { %v4404_v6 = vmul.f32 %v9938_v16, %v9938_v16  ;;  %v4406_v10 = vmul.f32 %v9941_v45, %v9941_v45  ;;  %v9954_v52 = vadd.f32 %v4190_v34, %v9921_v51  ;;  %v9957_v36 = vadd.f32 %v4253_v49, %v9926_v62  ;;  %v4192_v17 = vpop.f32.mrb[23].mxu1  ;;  %v4255_v63 = vpop.f32.mrb[63].mxu0 }
 0xd5b   : > { %v4405_v42 = vmul.f32 %v9944_v1, %v9944_v1  ;;  %v4407_v4 = vmul.f32 %v9947_v56, %v9947_v56  ;;  %v9964_v18 = vadd.f32 %v4192_v17, %v9930_v0  ;;  %v9967_v21 = vadd.f32 %v4255_v63, %v9935_v50 }
 0xd5c   : > { %v4452_v25 = vmul.f32 %v4404_v6, %v9938_v16  ;;  %v4454_v11 = vmul.f32 %v4406_v10, %v9941_v45  ;;  %v4412_v29 = vmul.f32 %v9954_v52, %v9954_v52  ;;  %v4414_v30 = vmul.f32 %v9957_v36, %v9957_v36 }
 0xd5d   : > { %v4453_v43 = vmul.f32 %v4405_v42, %v9944_v1  ;;  %v4455_v12 = vmul.f32 %v4407_v4, %v9947_v56  ;;  %v4413_v53 = vmul.f32 %v9964_v18, %v9964_v18  ;;  %v4415_v44 = vmul.f32 %v9967_v21, %v9967_v21 }
 0xd5e   : > { %v4500_v22 = vmul.f32 0.044715, %v4452_v25  ;;  %v4502_v54 = vmul.f32 0.044715, %v4454_v11  ;;  %v4460_v9 = vmul.f32 %v4412_v29, %v9954_v52  ;;  %v4462_v8 = vmul.f32 %v4414_v30, %v9957_v36 }
 0xd5f   : > { %v4501_v13 = vmul.f32 0.044715, %v4453_v43  ;;  %v4503_v7 = vmul.f32 0.044715, %v4455_v12  ;;  %v4461_v28 = vmul.f32 %v4413_v53, %v9964_v18  ;;  %v4463_v23 = vmul.f32 %v4415_v44, %v9967_v21  ;;  %v4196_v19 = vpop.f32.mrb[24].mxu1  ;;  %v4259_v61 = vpop.f32.mrb[64].mxu0 }
 0xd60   : > { %v4548_v59 = vadd.f32 %v4500_v22, %v9938_v16  ;;  %v4550_v38 = vadd.f32 %v4502_v54, %v9941_v45  ;;  %v4508_v14 = vmul.f32 0.044715, %v4460_v9  ;;  %v4510_v37 = vmul.f32 0.044715, %v4462_v8  ;;  %v4198_v58 = vpop.f32.mrb[25].mxu1  ;;  %v4261_v32 = vpop.f32.mrb[65].mxu0 }
 0xd61   : > { %v4549_v46 = vadd.f32 %v4501_v13, %v9944_v1  ;;  %v4551_v60 = vadd.f32 %v4503_v7, %v9947_v56  ;;  %v4509_v34 = vmul.f32 0.044715, %v4461_v28  ;;  %v4511_v49 = vmul.f32 0.044715, %v4463_v23  ;;  %v4200_v6 = vpop.f32.mrb[26].mxu1  ;;  %v4263_v10 = vpop.f32.mrb[66].mxu0 }
 0xd62   : > { %v4596_v17 = vmul.f32 0.7978846, %v4548_v59  ;;  %v4598_v63 = vmul.f32 0.7978846, %v4550_v38  ;;  %v4556_v42 = vadd.f32 %v4508_v14, %v9954_v52  ;;  %v4558_v4 = vadd.f32 %v4510_v37, %v9957_v36  ;;  %v4202_v25 = vpop.f32.mrb[27].mxu1  ;;  %v4265_v11 = vpop.f32.mrb[67].mxu0 }
 0xd63   : > { %v4597_v29 = vmul.f32 0.7978846, %v4549_v46  ;;  %v4599_v30 = vmul.f32 0.7978846, %v4551_v60  ;;  %v4557_v43 = vadd.f32 %v4509_v34, %v9964_v18  ;;  %v4559_v12 = vadd.f32 %v4511_v49, %v9967_v21 }
 0xd64   : > { %7907 = vtanh.f32 %v4596_v17  ;;  %v4604_v53 = vmul.f32 0.7978846, %v4556_v42  ;;  %v4606_v44 = vmul.f32 0.7978846, %v4558_v4  ;;  %v9994_v22 = vadd.f32 %v4196_v19, %v9921_v51 }
 0xd65   : > { %7909 = vtanh.f32 %v4598_v63  ;;  %v4605_v54 = vmul.f32 0.7978846, %v4557_v43  ;;  %v4607_v9 = vmul.f32 0.7978846, %v4559_v12  ;;  %v9997_v8 = vadd.f32 %v4259_v61, %v9926_v62 }
 0xd66   : > { %7911 = vtanh.f32 %v4597_v29  ;;  %v4420_v13 = vmul.f32 %v9994_v22, %v9994_v22  ;;  %v10002_v7 = vadd.f32 %v4198_v58, %v9930_v0  ;;  %v10005_v28 = vadd.f32 %v4261_v32, %v9935_v50 }
 0xd67   : > { %7913 = vtanh.f32 %v4599_v30  ;;  %v4422_v23 = vmul.f32 %v9997_v8, %v9997_v8  ;;  %v10010_v19 = vadd.f32 %v4200_v6, %v9921_v51  ;;  %v10013_v61 = vadd.f32 %v4263_v10, %v9926_v62  ;;  %v4206_v59 = vpop.f32.mrb[28].mxu1  ;;  %v10015_v38 = vpop.f32.mrb[68].mxu0 }
 0xd68   : > { %7915 = vtanh.f32 %v4604_v53  ;;  %v4468_v14 = vmul.f32 %v4420_v13, %v9994_v22  ;;  %v4421_v37 = vmul.f32 %v10002_v7, %v10002_v7  ;;  %v4423_v58 = vmul.f32 %v10005_v28, %v10005_v28  ;;  %v10022_v32 = vpop.f32.mrb[29].mxu1  ;;  %v10024_v46 = vpop.f32.mrb[69].mxu0 }
 0xd69   : > { %7917 = vtanh.f32 %v4606_v44  ;;  %v4470_v60 = vmul.f32 %v4422_v23, %v9997_v8  ;;  %v4428_v34 = vmul.f32 %v10010_v19, %v10010_v19  ;;  %v4430_v49 = vmul.f32 %v10013_v61, %v10013_v61  ;;  %v10031_v6 = vpop.f32.mrb[30].mxu1  ;;  %v10033_v10 = vpop.f32.mrb[70].mxu0 }
 0xd6a   : > { %7919 = vtanh.f32 %v4605_v54  ;;  %v4516_v17 = vmul.f32 0.044715, %v4468_v14  ;;  %v4469_v63 = vmul.f32 %v4421_v37, %v10002_v7  ;;  %v4471_v42 = vmul.f32 %v4423_v58, %v10005_v28  ;;  %v10037_v4 = vpop.f32.mrb[31].mxu1  ;;  %v10039_v29 = vpop.f32.mrb[71].mxu0 }
 0xd6b   : > { %7921 = vtanh.f32 %v4607_v9  ;;  %v4518_v30 = vmul.f32 0.044715, %v4470_v60  ;;  %v4476_v43 = vmul.f32 %v4428_v34, %v10010_v19  ;;  %v4478_v12 = vmul.f32 %v4430_v49, %v10013_v61 }
 0xd6c   : > { %v4564_v53 = vadd.f32 %v4516_v17, %v9994_v22  ;;  %v4517_v44 = vmul.f32 0.044715, %v4469_v63  ;;  %v4519_v13 = vmul.f32 0.044715, %v4471_v42  ;;  %v10045_v54 = vadd.f32 %v4202_v25, %v9930_v0 }
 0xd6d   : > { %v4566_v23 = vadd.f32 %v4518_v30, %v9997_v8  ;;  %v4524_v14 = vmul.f32 0.044715, %v4476_v43  ;;  %v4526_v37 = vmul.f32 0.044715, %v4478_v12  ;;  %v10049_v58 = vadd.f32 %v4265_v11, %v9935_v50 }
 0xd6e   : > { %v7908_v9 = vpop.eup %7907  ;;  %v4612_v60 = vmul.f32 0.7978846, %v4564_v53  ;;  %v4565_v34 = vadd.f32 %v4517_v44, %v10002_v7  ;;  %v4567_v49 = vadd.f32 %v4519_v13, %v10005_v28  ;;  %v4429_v17 = vmul.f32 %v10045_v54, %v10045_v54 }
 0xd6f   : > { %v7910_v63 = vpop.eup %7909  ;;  %v4692_v42 = vadd.f32 1.0, %v7908_v9  ;;  %v4614_v25 = vmul.f32 0.7978846, %v4566_v23  ;;  %v4572_v27 = vadd.f32 %v4524_v14, %v10010_v19  ;;  %v4574_v30 = vadd.f32 %v4526_v37, %v10013_v61 }
 0xd70   : > { %v10057_v43 = vpop.eup %7911  ;;  %v4694_v11 = vadd.f32 1.0, %v7910_v63  ;;  %7923 = vtanh.f32 %v4612_v60  ;;  %v4613_v12 = vmul.f32 0.7978846, %v4565_v34  ;;  %v4615_v53 = vmul.f32 0.7978846, %v4567_v49 }
 0xd71   : > { %v10059_v26 = vpop.eup %7913  ;;  %v4740_v44 = vmul.f32 0.5, %v4692_v42  ;;  %7925 = vtanh.f32 %v4614_v25  ;;  %v4620_v13 = vmul.f32 0.7978846, %v4572_v27  ;;  %v4622_v39 = vmul.f32 0.7978846, %v4574_v30 }
 0xd72   : > { %v7916_v35 = vpop.eup %7915  ;;  %v4742_v33 = vmul.f32 0.5, %v4694_v11  ;;  %7927 = vtanh.f32 %v4613_v12  ;;  %v4477_v23 = vmul.f32 %v4429_v17, %v10045_v54  ;;  %v4431_v14 = vmul.f32 %v10049_v58, %v10049_v58 }
 0xd73   : > { %v7918_v37 = vpop.eup %7917  ;;  %v10065_v9 = vmul.f32 %v4740_v44, %v9938_v16  ;;  %v4700_v60 = vadd.f32 1.0, %v7916_v35  ;;  %7929 = vtanh.f32 %v4615_v53  ;;  %v10068_v34 = vadd.f32 %v4206_v59, %v9921_v51 }
 0xd74   : > { %v10070_v49 = vpop.eup %7919  ;;  %v10073_v27 = vmul.f32 %v4742_v33, %v9941_v45  ;;  %v4702_v63 = vadd.f32 1.0, %v7918_v37  ;;  %7931 = vtanh.f32 %v4620_v13  ;;  %v4525_v17 = vmul.f32 0.044715, %v4477_v23 }
 0xd75   : > { %v10075_v42 = vpop.eup %7921  ;;  %v4748_v25 = vmul.f32 0.5, %v4700_v60  ;;  %7933 = vtanh.f32 %v4622_v39  ;;  %v4479_v16 = vmul.f32 %v4431_v14, %v10049_v58  ;;  %v4436_v35 = vmul.f32 %v10068_v34, %v10068_v34 }
 0xd76   : > { %v4750_v30 = vmul.f32 0.5, %v4702_v63  ;;  %v4573_v59 = vadd.f32 %v4525_v17, %v10045_v54  ;;  %v10083_v11 = vadd.f32 %v10015_v38, %v9926_v62  ;;  %v10087_v33 = vadd.f32 %v10022_v32, %v9930_v0 }
 0xd77   : > { %v10090_v45 = vmul.f32 %v4748_v25, %v9954_v52  ;;  %v4527_v39 = vmul.f32 0.044715, %v4479_v16  ;;  %v4484_v12 = vmul.f32 %v4436_v35, %v10068_v34  ;;  %v10095_v53 = vadd.f32 %v10024_v46, %v9935_v50 }
 0xd78   : > { %v10098_v44 = vmul.f32 %v4750_v30, %v9957_v36  ;;  %v4621_v13 = vmul.f32 0.7978846, %v4573_v59  ;;  %v4438_v38 = vmul.f32 %v10083_v11, %v10083_v11  ;;  %v4437_v32 = vmul.f32 %v10087_v33, %v10087_v33 }
 0xd79   : > { %v4575_v23 = vadd.f32 %v4527_v39, %v10049_v58  ;;  %v4532_v14 = vmul.f32 0.044715, %v4484_v12  ;;  %v4439_v46 = vmul.f32 %v10095_v53, %v10095_v53  ;;  %v10119_v30 = vadd.f32 %v10031_v6, %v9921_v51 }
 0xd7a   : > { %v7924_v37 = vpop.eup %7923  ;;  %7935 = vtanh.f32 %v4621_v13  ;;  %v4486_v60 = vmul.f32 %v4438_v38, %v10083_v11  ;;  %v4485_v63 = vmul.f32 %v4437_v32, %v10087_v33  ;;  %v10123_v13 = vadd.f32 %v10033_v10, %v9926_v62 }
 0xd7b   : > { %v10113_v17 = vpop.eup %7925  ;;  %v4623_v25 = vmul.f32 0.7978846, %v4575_v23  ;;  %v4580_v16 = vadd.f32 %v4532_v14, %v10068_v34  ;;  %v4487_v35 = vmul.f32 %v4439_v46, %v10095_v53  ;;  %v10127_v38 = vadd.f32 %v10037_v4, %v9930_v0 }
 0xd7c   : > { %v7928_v59 = vpop.eup %7927  ;;  %v4534_v39 = vmul.f32 0.044715, %v4486_v60  ;;  %v4533_v12 = vmul.f32 0.044715, %v4485_v63  ;;  %v4444_v51 = vmul.f32 %v10119_v30, %v10119_v30  ;;  %v4446_v62 = vmul.f32 %v10123_v13, %v10123_v13 }
 0xd7d   : > { %v10129_v32 = vpop.eup %7929  ;;  %7937 = vtanh.f32 %v4623_v25  ;;  %v4628_v23 = vmul.f32 0.7978846, %v4580_v16  ;;  %v4535_v14 = vmul.f32 0.044715, %v4487_v35  ;;  %v4445_v0 = vmul.f32 %v10127_v38, %v10127_v38 }
 0xd7e   : > { %v7932_v6 = vpop.eup %7931  ;;  %v4582_v46 = vadd.f32 %v4534_v39, %v10083_v11  ;;  %v4581_v60 = vadd.f32 %v4533_v12, %v10087_v33  ;;  %v4492_v63 = vmul.f32 %v4444_v51, %v10119_v30  ;;  %v10145_v25 = vadd.f32 %v10039_v29, %v9935_v50 }
 0xd7f   : > { %v10139_v10 = vpop.eup %7933  ;;  %7939 = vtanh.f32 %v4628_v23  ;;  %v4583_v4 = vadd.f32 %v4535_v14, %v10095_v53  ;;  %v4494_v39 = vmul.f32 %v4446_v62, %v10123_v13  ;;  %v4493_v12 = vmul.f32 %v4445_v0, %v10127_v38 }
 0xd80   : > { %v4630_v16 = vmul.f32 0.7978846, %v4582_v46  ;;  %v4629_v35 = vmul.f32 0.7978846, %v4581_v60  ;;  %v4540_v52 = vmul.f32 0.044715, %v4492_v63  ;;  %v4447_v57 = vmul.f32 %v10145_v25, %v10145_v25 }
 0xd81   : > { %v4631_v36 = vmul.f32 0.7978846, %v4583_v4  ;;  %v4693_v23 = vadd.f32 1.0, %v10057_v43  ;;  %v4542_v14 = vmul.f32 0.044715, %v4494_v39  ;;  %v4701_v47 = vadd.f32 1.0, %v10070_v49 }
 0xd82   : > { %7941 = vtanh.f32 %v4630_v16  ;;  %v4541_v51 = vmul.f32 0.044715, %v4493_v12  ;;  %v4588_v50 = vadd.f32 %v4540_v52, %v10119_v30  ;;  %v4495_v29 = vmul.f32 %v4447_v57, %v10145_v25 }
 0xd83   : > { %7943 = vtanh.f32 %v4629_v35  ;;  %v4741_v46 = vmul.f32 0.5, %v4693_v23  ;;  %v4590_v62 = vadd.f32 %v4542_v14, %v10123_v13  ;;  %v4749_v4 = vmul.f32 0.5, %v4701_v47 }
 0xd84   : > { %v7936_v60 = vpop.eup %7935  ;;  %7945 = vtanh.f32 %v4631_v36  ;;  %v4589_v0 = vadd.f32 %v4541_v51, %v10127_v38  ;;  %v4636_v43 = vmul.f32 0.7978846, %v4588_v50  ;;  %v4543_v63 = vmul.f32 0.044715, %v4495_v29  ;;  %v7691_v51 = vld [vmem:[%s9040_s0 + $0x100] ss:$8 sps:$4 sm:$0xff]  }
 0xd85   : > { %v4789_v16 = vmul.f32 %v4741_v46, %v9944_v1  ;;  %v4709_v39 = vadd.f32 1.0, %v7928_v59  ;;  %v4638_v49 = vmul.f32 0.7978846, %v4590_v62  ;;  %v4797_v52 = vmul.f32 %v4749_v4, %v9964_v18  ;;  %v7696_v59 = vld [vmem:[%s9040_s0 + $0x114] ss:$8 sps:$4 sm:$0xff]  }
 0xd86   : > { %v4637_v35 = vmul.f32 0.7978846, %v4589_v0  ;;  %v4717_v57 = vadd.f32 1.0, %v7936_v60  ;;  %7947 = vtanh.f32 %v4636_v43  ;;  %v4591_v36 = vadd.f32 %v4543_v63, %v10145_v25 }
 0xd87   : > { %v7938_v12 = vpop.eup %7937  ;;  %v4757_v23 = vmul.f32 0.5, %v4709_v39  ;;  %v4708_v14 = vadd.f32 1.0, %v7924_v37  ;;  %7949 = vtanh.f32 %v4638_v49  ;;  %v4837_v47 = vpack.c.bf16 %v4797_v52, %v4789_v16  ;;  %v7694_v16 = vld [vmem:[%s9040_s0 + $0x110] ss:$8 sps:$4 sm:$0xff]  }
 0xd88   : > { %v4765_v50 = vmul.f32 0.5, %v4717_v57  ;;  %v4716_v29 = vadd.f32 1.0, %v7932_v6  ;;  %7951 = vtanh.f32 %v4637_v35  ;;  %v4639_v1 = vmul.f32 0.7978846, %v4591_v36  ;;  %v7699_v35 = vld [vmem:[%s9040_s0 + $0x124] ss:$8 sps:$4 sm:$0xff]  }
 0xd89   : > { %v7940_v48 = vpop.eup %7939  ;;  %v4756_v46 = vmul.f32 0.5, %v4708_v14  ;;  %5672 = vmatprep.mubr.bf16.mxu1 %v4837_v47  ;;  %v4805_v18 = vmul.f32 %v4757_v23, %v10002_v7  ;;  %v4695_v37 = vadd.f32 1.0, %v10059_v26  ;;  %v10944_v0 = vpack.c.bf16 %v10090_v45, %v10065_v9 }
 0xd8a   : > { %v4813_v60 = vmul.f32 %v4765_v50, %v10045_v54  ;;  %v4764_v62 = vmul.f32 0.5, %v4716_v29  ;;  %7953 = vtanh.f32 %v4639_v1  ;;  %v4724_v6 = vadd.f32 1.0, %v7940_v48 }
 0xd8b   : > { %5673 = vmatmul.mubr.bf16.vlgmr.msra.gmra.mrb[44].mxu1 %v10944_v0  ;;  %v4703_v4 = vadd.f32 1.0, %v10075_v42  ;;  %v4711_v43 = vadd.f32 1.0, %v10129_v32  ;;  %v4804_v54 = vmul.f32 %v4756_v46, %v9994_v22  ;;  %v4743_v49 = vmul.f32 0.5, %v4695_v37 }
 0xd8c   : > { %v7942_v63 = vpop.eup %7941  ;;  %5704 = vmatpush1.bf16.msra.mxu1 %v7691_v51  ;;  %v4845_v7 = vpack.c.bf16 %v4813_v60, %v4805_v18  ;;  %v4812_v39 = vmul.f32 %v4764_v62, %v10010_v19  ;;  %v4719_v45 = vadd.f32 1.0, %v7938_v12  ;;  %v4710_v42 = vadd.f32 1.0, %v10113_v17  ;;  %v7697_v17 = vld [vmem:[%s9040_s0 + $0x120] ss:$8 sps:$4 sm:$0xff]  }
 0xd8d   : > { %v7944_v26 = vpop.eup %7943  ;;  %5705 = vmatprep.subr.bf16.mxu1 %v7696_v59  ;;  %v4751_v9 = vmul.f32 0.5, %v4703_v4  ;;  %v4759_v48 = vmul.f32 0.5, %v4711_v43  ;;  %v3498_v36 = vsub.s32 6, %v9208_v55  ;;  %v3502_v22 = vsub.s32 7, %v9208_v55  ;;  %v7702_v59 = vld [vmem:[%s9040_s0 + $0x134] ss:$8 sps:$4 sm:$0xff]  }
 0xd8e   : > { %v7946_v52 = vpop.eup %7945  ;;  %5682 = vmatprep.mubr.bf16.mxu1 %v4845_v7  ;;  %v4844_v32 = vpack.c.bf16 %v4812_v39, %v4804_v54  ;;  %v4725_v57 = vadd.f32 1.0, %v7944_v26  ;;  %v10178_v19 = vmul.f32 %v4743_v49, %v9947_v56  ;;  %v4767_v14 = vmul.f32 0.5, %v4719_v45  ;;  %v7705_v26 = vld [vmem:[%s9040_s0 + $0x144] ss:$8 sps:$4 sm:$0xff]  }
 0xd8f   : > { %v10181_v23 = vmul.f32 %v4751_v9, %v9967_v21  ;;  %v4718_v12 = vadd.f32 1.0, %v10139_v10  ;;  %v4772_v47 = vmul.f32 0.5, %v4724_v6  ;;  %v4758_v51 = vmul.f32 0.5, %v4710_v42 }
 0xd90   : > { %5706 = vmatpush1.bf16.msra.mxu1 %v7694_v16  ;;  %v4727_v50 = vadd.f32 1.0, %v7946_v52  ;;  %v4726_v29 = vadd.f32 1.0, %v7942_v63  ;;  %v7948_v1 = vpop.eup %7947  ;;  %v10189_v56 = vmul.f32 %v4759_v48, %v10005_v28  ;;  %v10192_v21 = vmul.f32 %v4767_v14, %v10049_v58  ;;  %v7700_v63 = vld [vmem:[%s9040_s0 + $0x130] ss:$8 sps:$4 sm:$0xff]  }
 0xd91   : > { %5707 = vmatprep.subr.bf16.mxu1 %v7699_v35  ;;  %v4839_v46 = vpack.c.bf16 %v10181_v23, %v10178_v19  ;;  %v4766_v10 = vmul.f32 0.5, %v4718_v12  ;;  %v7950_v18 = vpop.eup %7949  ;;  %v4773_v60 = vmul.f32 0.5, %v4725_v57  ;;  %v4732_v62 = vadd.f32 1.0, %v7948_v1  ;;  %v7709_v19 = vld [vmem:[%s9040_s0 + $0x160] ss:$8 sps:$4 sm:$0xff]  }
 0xd92   : > { %v10195_v37 = vmul.f32 %v4758_v51, %v9997_v8  ;;  %v4775_v0 = vmul.f32 0.5, %v4727_v50  ;;  %v7952_v6 = vpop.eup %7951  ;;  %v4734_v43 = vadd.f32 1.0, %v7950_v18  ;;  %v4774_v58 = vmul.f32 0.5, %v4726_v29  ;;  %v7708_v51 = vld [vmem:[%s9040_s0 + $0x154] ss:$8 sps:$4 sm:$0xff]  }
 0xd93   : > { %5683 = vmatmul.mubr.bf16.gmra.mrb[48].mxu1 %v4844_v32  ;;  %v10200_v28 = vmul.f32 %v4766_v10, %v10013_v61  ;;  %v4733_v16 = vadd.f32 1.0, %v7952_v6  ;;  %v4780_v7 = vmul.f32 0.5, %v4732_v62  ;;  %v10945_v54 = vsub.s32 4, %v9208_v55 }
 0xd94   : > { %5708 = vmatpush1.bf16.msra.mxu1 %v7697_v17  ;;  %v10209_v39 = vrot.slane %v9917_v41, %v3498_v36  ;;  %v7954_v49 = vpop.eup %7953  ;;  %v10946_v61 = vsub.s32 5, %v9208_v55  ;;  %v10218_v9 = vrot.slane %v9917_v41, %v3502_v22  ;;  %v4782_v48 = vmul.f32 0.5, %v4734_v43 }
 0xd95   : > { %v10206_v8 = vrot.slane %v9917_v41, %v10945_v54  ;;  %5709 = vmatprep.subr.bf16.mxu1 %v7702_v59  ;;  %v4781_v42 = vmul.f32 0.5, %v4733_v16  ;;  %v4820_v52 = vmul.f32 %v4772_v47, %v10068_v34  ;;  %v4828_v32 = vmul.f32 %v4780_v7, %v10119_v30  ;;  %v7703_v34 = vld [vmem:[%s9040_s0 + $0x140] ss:$8 sps:$4 sm:$0xff]   ;;  %v7706_v16 = vld [vmem:[%s9040_s0 + $0x150] ss:$8 sps:$4 sm:$0xff]  }
 0xd96   : > { %v10215_v35 = vrot.slane %v9917_v41, %v10946_v61  ;;  %v4821_v57 = vmul.f32 %v4773_v60, %v10087_v33  ;;  %v10226_v14 = vmul.f32 %v4775_v0, %v10095_v53  ;;  %v10229_v41 = vmul.f32 %v4774_v58, %v10083_v11 }
 0xd97   : > { %v4312_v55 = vpop.f32.mrb[32].mxu1  ;;  %v4375_v36 = vpop.f32.mrb[72].mxu0  ;;  %v10232_v22 = vmul.f32 %v4782_v48, %v10123_v13  ;;  %v4829_v12 = vmul.f32 %v4781_v42, %v10127_v38  ;;  %v4852_v17 = vpack.c.bf16 %v4828_v32, %v4820_v52  ;;  %v4735_v29 = vadd.f32 1.0, %v7954_v49 }
 0xd98   : > { %5710 = vmatpush1.bf16.msra.mxu1 %v7700_v63  ;;  %v10237_v30 = vadd.f32 %v4312_v55, %v10206_v8  ;;  %v10240_v33 = vadd.f32 %v4375_v36, %v10209_v39  ;;  %v4314_v47 = vpop.f32.mrb[33].mxu1  ;;  %v4377_v53 = vpop.f32.mrb[73].mxu0 }
 0xd99   : > { %5711 = vmatprep.subr.bf16.mxu1 %v7705_v26  ;;  %v10244_v11 = vadd.f32 %v4314_v47, %v10215_v35  ;;  %v10247_v13 = vadd.f32 %v4377_v53, %v10218_v9  ;;  %v4316_v50 = vpop.f32.mrb[34].mxu1  ;;  %v4379_v38 = vpop.f32.mrb[74].mxu0  ;;  %v4853_v59 = vpack.c.bf16 %v4829_v12, %v4821_v57  ;;  %v7711_v26 = vld [vmem:[%s9040_s0 + $0x164] ss:$8 sps:$4 sm:$0xff]   ;;  %v10278_v52 = vmul.f32 0.5, %v4735_v29 }
 0xd9a   : > { %v4408_v10 = vmul.f32 %v10237_v30, %v10237_v30  ;;  %v4410_v18 = vmul.f32 %v10240_v33, %v10240_v33  ;;  %v10256_v60 = vadd.f32 %v4316_v50, %v10206_v8  ;;  %v4318_v62 = vpop.f32.mrb[35].mxu1  ;;  %v4381_v0 = vpop.f32.mrb[75].mxu0  ;;  %v10263_v58 = vadd.f32 %v4379_v38, %v10209_v39 }
 0xd9b   : > { %v4409_v6 = vmul.f32 %v10244_v11, %v10244_v11  ;;  %v4411_v43 = vmul.f32 %v10247_v13, %v10247_v13  ;;  %v10266_v63 = vadd.f32 %v4318_v62, %v10215_v35  ;;  %5692 = vmatprep.mubr.bf16.mxu1 %v4853_v59  ;;  %v10288_v47 = vadd.f32 %v4381_v0, %v10218_v9 }
 0xd9c   : > { %5712 = vmatpush1.bf16.msra.mxu1 %v7703_v34  ;;  %v4456_v7 = vmul.f32 %v4408_v10, %v10237_v30  ;;  %v4458_v54 = vmul.f32 %v4410_v18, %v10240_v33  ;;  %v4416_v49 = vmul.f32 %v10256_v60, %v10256_v60  ;;  %v4418_v42 = vmul.f32 %v10263_v58, %v10263_v58  ;;  %v7714_v10 = vld [vmem:[%s9040_s0 + $0x174] ss:$8 sps:$4 sm:$0xff]  }
 0xd9d   : > { %5693 = vmatmul.mubr.bf16.gmra.mrb[52].mxu1 %v4852_v17  ;;  %5713 = vmatprep.subr.bf16.mxu1 %v7708_v51  ;;  %v4457_v61 = vmul.f32 %v4409_v6, %v10244_v11  ;;  %v4459_v48 = vmul.f32 %v4411_v43, %v10247_v13  ;;  %v4417_v36 = vmul.f32 %v10266_v63, %v10266_v63 }
 0xd9e   : > { %5735 = vmatprep.mubr.bf16.mxu1 %v4839_v46  ;;  %v4504_v32 = vmul.f32 0.044715, %v4456_v7  ;;  %v4506_v57 = vmul.f32 0.044715, %v4458_v54  ;;  %v4464_v55 = vmul.f32 %v4416_v49, %v10256_v60  ;;  %v4466_v17 = vmul.f32 %v4418_v42, %v10263_v58 }
 0xd9f   : > { %v4505_v12 = vmul.f32 0.044715, %v4457_v61  ;;  %v4507_v34 = vmul.f32 0.044715, %v4459_v48  ;;  %v4322_v53 = vpop.f32.mrb[36].mxu1  ;;  %v4385_v51 = vpop.f32.mrb[76].mxu0  ;;  %v4465_v38 = vmul.f32 %v4417_v36, %v10266_v63  ;;  %v4419_v6 = vmul.f32 %v10288_v47, %v10288_v47 }
 0xda0   : > { %5714 = vmatpush1.bf16.msra.mxu1 %v7706_v16  ;;  %v4552_v23 = vadd.f32 %v4504_v32, %v10237_v30  ;;  %v4554_v46 = vadd.f32 %v4506_v57, %v10240_v33  ;;  %v4512_v50 = vmul.f32 0.044715, %v4464_v55  ;;  %v4324_v29 = vpop.f32.mrb[37].mxu1  ;;  %v4387_v59 = vpop.f32.mrb[77].mxu0  ;;  %v4514_v0 = vmul.f32 0.044715, %v4466_v17 }
 0xda1   : > { %5715 = vmatprep.subr.bf16.mxu1 %v7711_v26  ;;  %v4553_v18 = vadd.f32 %v4505_v12, %v10244_v11  ;;  %v4555_v62 = vadd.f32 %v4507_v34, %v10247_v13  ;;  %v4326_v43 = vpop.f32.mrb[38].mxu1  ;;  %v4389_v16 = vpop.f32.mrb[78].mxu0  ;;  %v4513_v61 = vmul.f32 0.044715, %v4465_v38  ;;  %v4467_v32 = vmul.f32 %v4419_v6, %v10288_v47  ;;  %v7712_v36 = vld [vmem:[%s9040_s0 + $0x170] ss:$8 sps:$4 sm:$0xff]  }
 0xda2   : > { %v4600_v7 = vmul.f32 0.7978846, %v4552_v23  ;;  %v4602_v54 = vmul.f32 0.7978846, %v4554_v46  ;;  %v4560_v49 = vadd.f32 %v4512_v50, %v10256_v60  ;;  %v4562_v42 = vadd.f32 %v4514_v0, %v10263_v58  ;;  %v4328_v57 = vpop.f32.mrb[39].mxu1  ;;  %v4391_v55 = vpop.f32.mrb[79].mxu0 }
 0xda3   : > { %v4601_v48 = vmul.f32 0.7978846, %v4553_v18  ;;  %v4603_v26 = vmul.f32 0.7978846, %v4555_v62  ;;  %v4561_v34 = vadd.f32 %v4513_v61, %v10266_v63  ;;  %v10305_v17 = vadd.f32 %v4322_v53, %v10206_v8  ;;  %v7717_v50 = vld [vmem:[%s9040_s0 + $0x184] ss:$8 sps:$4 sm:$0xff]  }
 0xda4   : > { %5716 = vmatpush1.bf16.msra.mxu1 %v7709_v19  ;;  %7955 = vtanh.f32 %v4600_v7  ;;  %v4608_v12 = vmul.f32 0.7978846, %v4560_v49  ;;  %v4610_v23 = vmul.f32 0.7978846, %v4562_v42  ;;  %v4515_v46 = vmul.f32 0.044715, %v4467_v32 }
 0xda5   : > { %7957 = vtanh.f32 %v4602_v54  ;;  %5717 = vmatprep.subr.bf16.mxu1 %v7714_v10  ;;  %v10309_v38 = vadd.f32 %v4385_v51, %v10209_v39  ;;  %v4609_v18 = vmul.f32 0.7978846, %v4561_v34  ;;  %v4424_v19 = vmul.f32 %v10305_v17, %v10305_v17  ;;  %v7715_v7 = vld [vmem:[%s9040_s0 + $0x180] ss:$8 sps:$4 sm:$0xff]   ;;  %v7720_v42 = vld [vmem:[%s9040_s0 + $0x194] ss:$8 sps:$4 sm:$0xff]  }
 0xda6   : > { %7959 = vtanh.f32 %v4601_v48  ;;  %v10314_v62 = vadd.f32 %v4324_v29, %v10215_v35  ;;  %v4563_v53 = vadd.f32 %v4515_v46, %v10288_v47  ;;  %v10320_v0 = vadd.f32 %v4387_v59, %v10218_v9 }
 0xda7   : > { %7961 = vtanh.f32 %v4603_v26  ;;  %v4426_v10 = vmul.f32 %v10309_v38, %v10309_v38  ;;  %v10322_v51 = vpop.f32.mrb[40].mxu1  ;;  %v10324_v6 = vpop.f32.mrb[80].mxu0  ;;  %v4472_v29 = vmul.f32 %v4424_v19, %v10305_v17  ;;  %v10331_v49 = vadd.f32 %v4326_v43, %v10206_v8 }
 0xda8   : > { %5718 = vmatpush1.bf16.msra.mxu1 %v7712_v36  ;;  %7963 = vtanh.f32 %v4608_v12  ;;  %v4425_v54 = vmul.f32 %v10314_v62, %v10314_v62  ;;  %v10333_v61 = vpop.f32.mrb[41].mxu1  ;;  %v10335_v48 = vpop.f32.mrb[81].mxu0  ;;  %v4611_v59 = vmul.f32 0.7978846, %v4563_v53  ;;  %v4427_v32 = vmul.f32 %v10320_v0, %v10320_v0 }
 0xda9   : > { %7965 = vtanh.f32 %v4610_v23  ;;  %5719 = vmatprep.subr.bf16.mxu1 %v7717_v50  ;;  %v4474_v26 = vmul.f32 %v4426_v10, %v10309_v38  ;;  %v10341_v36 = vpop.f32.mrb[42].mxu1  ;;  %v10343_v12 = vpop.f32.mrb[82].mxu0  ;;  %v4520_v43 = vmul.f32 0.044715, %v4472_v29  ;;  %v4432_v23 = vmul.f32 %v10331_v49, %v10331_v49  ;;  %v7718_v29 = vld [vmem:[%s9040_s0 + $0x190] ss:$8 sps:$4 sm:$0xff]  }
 0xdaa   : > { %7967 = vtanh.f32 %v4609_v18  ;;  %v4473_v34 = vmul.f32 %v4425_v54, %v10314_v62  ;;  %v10348_v46 = vpop.f32.mrb[43].mxu1  ;;  %v10350_v50 = vpop.f32.mrb[83].mxu0  ;;  %v4475_v53 = vmul.f32 %v4427_v32, %v10320_v0  ;;  %v10354_v10 = vadd.f32 %v4389_v16, %v10209_v39 }
 0xdab   : > { %7969 = vtanh.f32 %v4611_v59  ;;  %v4522_v19 = vmul.f32 0.044715, %v4474_v26  ;;  %v4568_v18 = vadd.f32 %v4520_v43, %v10305_v17  ;;  %v4480_v1 = vmul.f32 %v4432_v23, %v10331_v49 }
 0xdac   : > { %5720 = vmatpush1.bf16.msra.mxu1 %v7715_v7  ;;  %v4521_v54 = vmul.f32 0.044715, %v4473_v34  ;;  %v10360_v45 = vadd.f32 %v4328_v57, %v10215_v35  ;;  %v4523_v59 = vmul.f32 0.044715, %v4475_v53  ;;  %v4434_v26 = vmul.f32 %v10354_v10, %v10354_v10  ;;  %v7723_v7 = vld [vmem:[%s9040_s0 + $0x1a4] ss:$8 sps:$4 sm:$0xff]  }
 0xdad   : > { %v4570_v4 = vadd.f32 %v4522_v19, %v10309_v38  ;;  %5721 = vmatprep.subr.bf16.mxu1 %v7720_v42  ;;  %v10366_v16 = vadd.f32 %v4391_v55, %v10218_v9  ;;  %v4616_v43 = vmul.f32 0.7978846, %v4568_v18  ;;  %v4528_v23 = vmul.f32 0.044715, %v4480_v1  ;;  %v7726_v1 = vld [vmem:[%s9040_s0 + $0x1b4] ss:$8 sps:$4 sm:$0xff]  }
 0xdae   : > { %v7956_v32 = vpop.eup %7955  ;;  %v4569_v34 = vadd.f32 %v4521_v54, %v10314_v62  ;;  %v4433_v57 = vmul.f32 %v10360_v45, %v10360_v45  ;;  %v4571_v53 = vadd.f32 %v4523_v59, %v10320_v0  ;;  %v4482_v24 = vmul.f32 %v4434_v26, %v10354_v10 }
 0xdaf   : > { %v7958_v19 = vpop.eup %7957  ;;  %v4696_v15 = vadd.f32 1.0, %v7956_v32  ;;  %v4618_v42 = vmul.f32 0.7978846, %v4570_v4  ;;  %7971 = vtanh.f32 %v4616_v43  ;;  %v4576_v54 = vadd.f32 %v4528_v23, %v10331_v49 }
 0xdb0   : > { %v10375_v55 = vpop.eup %7959  ;;  %v4698_v20 = vadd.f32 1.0, %v7958_v19  ;;  %v4617_v18 = vmul.f32 0.7978846, %v4569_v34  ;;  %5722 = vmatpush1.bf16.msra.mxu1 %v7718_v29  ;;  %v4619_v32 = vmul.f32 0.7978846, %v4571_v53  ;;  %v4481_v19 = vmul.f32 %v4433_v57, %v10360_v45 }
 0xdb1   : > { %v10379_v31 = vpop.eup %7961  ;;  %v4744_v5 = vmul.f32 0.5, %v4696_v15  ;;  %7973 = vtanh.f32 %v4618_v42  ;;  %v4530_v4 = vmul.f32 0.044715, %v4482_v24  ;;  %5723 = vmatprep.subr.bf16.mxu1 %v7723_v7  ;;  %v4624_v2 = vmul.f32 0.7978846, %v4576_v54 }
 0xdb2   : > { %v7964_v59 = vpop.eup %7963  ;;  %v4746_v26 = vmul.f32 0.5, %v4698_v20  ;;  %7975 = vtanh.f32 %v4617_v18  ;;  %v4529_v20 = vmul.f32 0.044715, %v4481_v19  ;;  %v7724_v42 = vld [vmem:[%s9040_s0 + $0x1b0] ss:$8 sps:$4 sm:$0xff]   ;;  %v10398_v18 = vadd.f32 %v10322_v51, %v10206_v8 }
 0xdb3   : > { %v7966_v43 = vpop.eup %7965  ;;  %v10383_v29 = vmul.f32 %v4744_v5, %v10237_v30  ;;  %v4704_v34 = vadd.f32 1.0, %v7964_v59  ;;  %7977 = vtanh.f32 %v4619_v32  ;;  %v4578_v15 = vadd.f32 %v4530_v4, %v10354_v10  ;;  %v7727_v19 = vld [vmem:[%s9040_s0 + $0x1c0] ss:$8 sps:$4 sm:$0xff]  }
 0xdb4   : > { %v10386_v23 = vpop.eup %7967  ;;  %v10389_v24 = vmul.f32 %v4746_v26, %v10240_v33  ;;  %v4706_v7 = vadd.f32 1.0, %v7966_v43  ;;  %7979 = vtanh.f32 %v4624_v2  ;;  %5724 = vmatpush1.bf16.msra.mxu1 %v7721_v40  ;;  %v4435_v30 = vmul.f32 %v10366_v16, %v10366_v16  ;;  %v7729_v33 = vld [vmem:[%s9040_s0 + $0x1c4] ss:$8 sps:$4 sm:$0xff]  }
 0xdb5   : > { %v10392_v57 = vpop.eup %7969  ;;  %v4752_v53 = vmul.f32 0.5, %v4704_v34  ;;  %v4626_v5 = vmul.f32 0.7978846, %v4578_v15  ;;  %5725 = vmatprep.subr.bf16.mxu1 %v7726_v1  ;;  %v4577_v2 = vadd.f32 %v4529_v20, %v10360_v45  ;;  %v10404_v40 = vadd.f32 %v10324_v6, %v10209_v39 }
 0xdb6   : > { %10947 = vst [vmem:[#allocation50_spill] sm:$0xff] %v10389_v24  ;;  %v4754_v54 = vmul.f32 0.5, %v4706_v7  ;;  %v10408_v32 = vadd.f32 %v10333_v61, %v10215_v35  ;;  %v4483_v51 = vmul.f32 %v4435_v30, %v10366_v16  ;;  %v4440_v1 = vmul.f32 %v10398_v18, %v10398_v18 }
 0xdb7   : > { %v10411_v4 = vmul.f32 %v4752_v53, %v10256_v60  ;;  %7981 = vtanh.f32 %v4626_v5  ;;  %v4625_v26 = vmul.f32 0.7978846, %v4577_v2  ;;  %v4442_v6 = vmul.f32 %v10404_v40, %v10404_v40 }
 0xdb8   : > { %v10417_v59 = vmul.f32 %v4754_v54, %v10263_v58  ;;  %v4441_v61 = vmul.f32 %v10408_v32, %v10408_v32  ;;  %5726 = vmatpush1.bf16.msra.mxu1 %v7724_v42  ;;  %v4531_v43 = vmul.f32 0.044715, %v4483_v51  ;;  %v4488_v34 = vmul.f32 %v4440_v1, %v10398_v18  ;;  %v7732_v58 = vld [vmem:[%s9040_s0 + $0x1d4] ss:$8 sps:$4 sm:$0xff]  }
 0xdb9   : > { %v10429_v15 = vadd.f32 %v10335_v48, %v10218_v9  ;;  %5727 = vmatprep.subr.bf16.mxu1 %v7729_v33  ;;  %v10432_v7 = vpop.eup %7971  ;;  %7983 = vtanh.f32 %v4625_v26  ;;  %v4490_v42 = vmul.f32 %v4442_v6, %v10404_v40  ;;  %v10445_v33 = vadd.f32 %v10341_v36, %v10206_v8 }
 0xdba   : > { %10948 = vst [vmem:[#allocation51_spill] sm:$0xff] %v10417_v59  ;;  %v4489_v53 = vmul.f32 %v4441_v61, %v10408_v32  ;;  %v4579_v30 = vadd.f32 %v4531_v43, %v10366_v16  ;;  %v4536_v54 = vmul.f32 0.044715, %v4488_v34  ;;  %v10449_v26 = vadd.f32 %v10343_v12, %v10209_v39  ;;  %v7730_v61 = vld [vmem:[%s9040_s0 + $0x1d0] ss:$8 sps:$4 sm:$0xff]  }
 0xdbb   : > { %v10438_v5 = vpop.eup %7973  ;;  %v4443_v48 = vmul.f32 %v10429_v15, %v10429_v15  ;;  %v4538_v51 = vmul.f32 0.044715, %v4490_v42  ;;  %v10453_v6 = vadd.f32 %v10348_v46, %v10215_v35  ;;  %v4448_v36 = vmul.f32 %v10445_v33, %v10445_v33  ;;  %v7735_v39 = vld [vmem:[%s9040_s0 + $0x1e4] ss:$8 sps:$4 sm:$0xff]  }
 0xdbc   : > { %v7976_v2 = vpop.eup %7975  ;;  %v4537_v1 = vmul.f32 0.044715, %v4489_v53  ;;  %5728 = vmatpush1.bf16.msra.mxu1 %v7727_v19  ;;  %v4627_v34 = vmul.f32 0.7978846, %v4579_v30  ;;  %v4584_v20 = vadd.f32 %v4536_v54, %v10398_v18  ;;  %v4450_v19 = vmul.f32 %v10449_v26, %v10449_v26 }
 0xdbd   : > { %v10456_v43 = vpop.eup %7977  ;;  %v4491_v8 = vmul.f32 %v4443_v48, %v10429_v15  ;;  %5729 = vmatprep.subr.bf16.mxu1 %v7732_v58  ;;  %v4586_v35 = vadd.f32 %v4538_v51, %v10404_v40  ;;  %v4449_v42 = vmul.f32 %v10453_v6, %v10453_v6  ;;  %v4496_v58 = vmul.f32 %v4448_v36, %v10445_v33 }
 0xdbe   : > { %v10463_v12 = vpop.eup %7979  ;;  %v4585_v46 = vadd.f32 %v4537_v1, %v10408_v32  ;;  %7985 = vtanh.f32 %v4627_v34  ;;  %v4632_v53 = vmul.f32 0.7978846, %v4584_v20  ;;  %v4498_v60 = vmul.f32 %v4450_v19, %v10449_v26  ;;  %v7733_v1 = vld [vmem:[%s9040_s0 + $0x1e0] ss:$8 sps:$4 sm:$0xff]   ;;  %v7738_v34 = vld [vmem:[%s9040_s0 + $0x1f4] ss:$8 sps:$4 sm:$0xff]  }
 0xdbf   : > { %v4539_v30 = vmul.f32 0.044715, %v4491_v8  ;;  %v4634_v54 = vmul.f32 0.7978846, %v4586_v35  ;;  %v4497_v51 = vmul.f32 %v4449_v42, %v10453_v6  ;;  %v4544_v59 = vmul.f32 0.044715, %v4496_v58 }
 0xdc0   : > { %v4633_v48 = vmul.f32 0.7978846, %v4585_v46  ;;  %5730 = vmatpush1.bf16.msra.mxu1 %v7730_v61  ;;  %7987 = vtanh.f32 %v4632_v53  ;;  %v10480_v20 = vadd.f32 %v10350_v50, %v10218_v9  ;;  %v4546_v8 = vmul.f32 0.044715, %v4498_v60  ;;  %v7736_v60 = vld [vmem:[%s9040_s0 + $0x1f0] ss:$8 sps:$4 sm:$0xff]  }
 0xdc1   : > { %v10475_v3 = vpop.eup %7981  ;;  %v4587_v24 = vadd.f32 %v4539_v30, %v10429_v15  ;;  %5731 = vmatprep.subr.bf16.mxu1 %v7735_v39  ;;  %7989 = vtanh.f32 %v4634_v54  ;;  %v4545_v36 = vmul.f32 0.044715, %v4497_v51  ;;  %v10485_v61 = vmul.f32 %v10278_v52, %v10145_v25 }
 0xdc2   : > { %7991 = vtanh.f32 %v4633_v48  ;;  %v4592_v46 = vadd.f32 %v4544_v59, %v10445_v33  ;;  %v4451_v19 = vmul.f32 %v10480_v20, %v10480_v20  ;;  %v4594_v9 = vadd.f32 %v4546_v8, %v10449_v26  ;;  %v7741_v59 = vld [vmem:[%s9040_s0 + $0x204] ss:$8 sps:$4 sm:$0xff]  }
 0xdc3   : > { %v4635_v35 = vmul.f32 0.7978846, %v4587_v24  ;;  %v7984_v42 = vpop.eup %7983  ;;  %v4593_v50 = vadd.f32 %v4545_v36, %v10453_v6  ;;  %v4855_v39 = vpack.c.bf16 %v10485_v61, %v10226_v14  ;;  %v4697_v25 = vadd.f32 1.0, %v10375_v55  ;;  %v7739_v55 = vld [vmem:[%s9040_s0 + $0x200] ss:$8 sps:$4 sm:$0xff]  }
 0xdc4   : > { %5732 = vmatpush1.bf16.msra.mxu1 %v7733_v1  ;;  %v4640_v52 = vmul.f32 0.7978846, %v4592_v46  ;;  %v4499_v24 = vmul.f32 %v4451_v19, %v10480_v20  ;;  %v4705_v53 = vadd.f32 1.0, %v10386_v23  ;;  %v4642_v30 = vmul.f32 0.7978846, %v4594_v9 }
 0xdc5   : > { %7993 = vtanh.f32 %v4635_v35  ;;  %5733 = vmatprep.subr.bf16.mxu1 %v7738_v34  ;;  %v4641_v58 = vmul.f32 0.7978846, %v4593_v50  ;;  %v4745_v54 = vmul.f32 0.5, %v4697_v25  ;;  %v4713_v48 = vadd.f32 1.0, %v7976_v2  ;;  %v7744_v19 = vld [vmem:[%s9040_s0 + $0x214] ss:$8 sps:$4 sm:$0xff]  }
 0xdc6   : > { %7995 = vtanh.f32 %v4640_v52  ;;  %v4547_v51 = vmul.f32 0.044715, %v4499_v24  ;;  %v4753_v1 = vmul.f32 0.5, %v4705_v53  ;;  %v4721_v8 = vadd.f32 1.0, %v7984_v42 }
 0xdc7   : > { %7997 = vtanh.f32 %v4642_v30  ;;  %v10501_v36 = vmul.f32 %v4745_v54, %v10244_v11  ;;  %v4761_v35 = vmul.f32 0.5, %v4713_v48  ;;  %v4712_v34 = vadd.f32 1.0, %v10432_v7 }
 0xdc8   : > { %5734 = vmatpush1.bf16.msra.mxu1 %v7736_v60  ;;  %v7986_v46 = vpop.eup %7985  ;;  %7999 = vtanh.f32 %v4641_v58  ;;  %v4595_v23 = vadd.f32 %v4547_v51, %v10480_v20  ;;  %v10507_v2 = vmul.f32 %v4753_v1, %v10266_v63  ;;  %v4769_v42 = vmul.f32 0.5, %v4721_v8 }
 0xdc9   : > { %5766 = vmatprep.subr.bf16.mxu1 %v7741_v59  ;;  %v10510_v9 = vmul.f32 %v4761_v35, %v10314_v62  ;;  %v4720_v11 = vadd.f32 1.0, %v10463_v12  ;;  %v4760_v50 = vmul.f32 0.5, %v4712_v34  ;;  %v4699_v60 = vadd.f32 1.0, %v10379_v31  ;;  %v7742_v31 = vld [vmem:[%s9040_s0 + $0x210] ss:$8 sps:$4 sm:$0xff]  }
 0xdca   : > { %v7988_v7 = vpop.eup %7987  ;;  %v4643_v25 = vmul.f32 0.7978846, %v4595_v23  ;;  %v10949_v52 = vpack.c.bf16 %v10098_v44, %v10073_v27  ;;  %v4841_v63 = vpack.c.bf16 %v10507_v2, %v10501_v36  ;;  %v10520_v24 = vmul.f32 %v4769_v42, %v10360_v45  ;;  %v7747_v44 = vld [vmem:[%s9040_s0 + $0x224] ss:$8 sps:$4 sm:$0xff]   ;;  %v7762_v36 = vld [vmem:[%s9040_s0 + $0x274] ss:$8 sps:$4 sm:$0xff]  }
 0xdcb   : > { %v4707_v62 = vadd.f32 1.0, %v10392_v57  ;;  %v7990_v59 = vpop.eup %7989  ;;  %v10950_v12 = vpack.c.bf16 %v10192_v21, %v10189_v56  ;;  %v4768_v53 = vmul.f32 0.5, %v4720_v11  ;;  %v4728_v30 = vadd.f32 1.0, %v7988_v7  ;;  %v7765_v2 = vld [vmem:[%s9040_s0 + $0x284] ss:$8 sps:$4 sm:$0xff]  }
 0xdcc   : > { %5736 = vmatmul.mubr.bf16.vlgmr.msra.gmra.mrb[44].mxu1 %v10949_v52  ;;  %v4747_v58 = vmul.f32 0.5, %v4699_v60  ;;  %v7992_v27 = vpop.eup %7991  ;;  %8001 = vtanh.f32 %v4643_v25  ;;  %v4849_v45 = vpack.c.bf16 %v10520_v24, %v10510_v9  ;;  %v4715_v57 = vadd.f32 1.0, %v10456_v43  ;;  %v7745_v43 = vld [vmem:[%s9040_s0 + $0x220] ss:$8 sps:$4 sm:$0xff]   ;;  %v7804_v24 = vld [vmem:[%s9040_s0 + $0x354] ss:$8 sps:$4 sm:$0xff]  }
 0xdcd   : > { %5745 = vmatprep.mubr.bf16.mxu1 %v10950_v12  ;;  %5767 = vmatpush1.bf16.msra.mxu1 %v7739_v55  ;;  %v4755_v54 = vmul.f32 0.5, %v4707_v62  ;;  %v10532_v56 = vmul.f32 %v4760_v50, %v10305_v17  ;;  %v10535_v21 = vmul.f32 %v4768_v53, %v10331_v49  ;;  %v4729_v48 = vadd.f32 1.0, %v7992_v27  ;;  %v7799_v9 = vld [vmem:[%s9040_s0 + $0x340] ss:$8 sps:$4 sm:$0xff]  }
 0xdce   : > { %5768 = vmatprep.subr.bf16.mxu1 %v7744_v19  ;;  %v10538_v51 = vmul.f32 %v4747_v58, %v10247_v13  ;;  %v4723_v55 = vadd.f32 1.0, %v7986_v46  ;;  %v4763_v35 = vmul.f32 0.5, %v4715_v57  ;;  %v4714_v34 = vadd.f32 1.0, %v10438_v5  ;;  %v7750_v19 = vld [vmem:[%s9040_s0 + $0x234] ss:$8 sps:$4 sm:$0xff]  }
 0xdcf   : > { %v7994_v1 = vpop.eup %7993  ;;  %v10541_v8 = vmul.f32 %v4755_v54, %v10288_v47  ;;  %v4848_v17 = vpack.c.bf16 %v10535_v21, %v10532_v56  ;;  %v4722_v49 = vadd.f32 1.0, %v10475_v3  ;;  %v4776_v13 = vmul.f32 0.5, %v4728_v30  ;;  %v7807_v56 = vld [vmem:[%s9040_s0 + $0x364] ss:$8 sps:$4 sm:$0xff]   ;;  %v7805_v21 = vld [vmem:[%s9040_s0 + $0x360] ss:$8 sps:$4 sm:$0xff]  }
 0xdd0   : > { %v7996_v23 = vpop.eup %7995  ;;  %v4771_v47 = vmul.f32 0.5, %v4723_v55  ;;  %v4762_v46 = vmul.f32 0.5, %v4714_v34  ;;  %v4777_v50 = vmul.f32 0.5, %v4729_v48  ;;  %v10552_v60 = vmul.f32 %v4763_v35, %v10320_v0  ;;  %v7748_v0 = vld [vmem:[%s9040_s0 + $0x230] ss:$8 sps:$4 sm:$0xff]  }
 0xdd1   : > { %5769 = vmatpush1.bf16.msra.mxu1 %v7742_v31  ;;  %v4843_v42 = vpack.c.bf16 %v10541_v8, %v10538_v51  ;;  %v7998_v11 = vpop.eup %7997  ;;  %v4736_v5 = vadd.f32 1.0, %v7996_v23  ;;  %v4770_v7 = vmul.f32 0.5, %v4722_v49  ;;  %v10951_v3 = vpack.c.bf16 %v10200_v28, %v10195_v37  ;;  %v7753_v28 = vld [vmem:[%s9040_s0 + $0x244] ss:$8 sps:$4 sm:$0xff]   ;;  %v7754_v34 = vld [vmem:[%s9040_s0 + $0x250] ss:$8 sps:$4 sm:$0xff]  }
 0xdd2   : > { %5770 = vmatprep.subr.bf16.mxu1 %v7747_v44  ;;  %v8000_v25 = vpop.eup %7999  ;;  %v10558_v52 = vmul.f32 %v4771_v47, %v10366_v16  ;;  %v4731_v62 = vadd.f32 1.0, %v7994_v1  ;;  %v4730_v12 = vadd.f32 1.0, %v7990_v59  ;;  %v4738_v31 = vadd.f32 1.0, %v7998_v11  ;;  %v7759_v23 = vld [vmem:[%s9040_s0 + $0x264] ss:$8 sps:$4 sm:$0xff]  }
 0xdd3   : > { %v4737_v53 = vadd.f32 1.0, %v8000_v25  ;;  %v4784_v30 = vmul.f32 0.5, %v4736_v5  ;;  %v10565_v58 = vmul.f32 %v4762_v46, %v10309_v38  ;;  %v10568_v37 = vmul.f32 %v4770_v7, %v10354_v10  ;;  %v7769_v47 = vld [vmem:[%s9040_s0 + $0x2a0] ss:$8 sps:$4 sm:$0xff]   ;;  %v7774_v46 = vld [vmem:[%s9040_s0 + $0x2b4] ss:$8 sps:$4 sm:$0xff]  }
 0xdd4   : > { %5746 = vmatmul.mubr.bf16.gmra.mrb[48].mxu1 %v10951_v3  ;;  %v4851_v16 = vpack.c.bf16 %v10558_v52, %v10552_v60  ;;  %v4778_v59 = vmul.f32 0.5, %v4730_v12  ;;  %v4786_v27 = vmul.f32 0.5, %v4738_v31  ;;  %v10574_v61 = vmul.f32 %v4776_v13, %v10398_v18  ;;  %v7751_v18 = vld [vmem:[%s9040_s0 + $0x240] ss:$8 sps:$4 sm:$0xff]   ;;  %v7771_v13 = vld [vmem:[%s9040_s0 + $0x2a4] ss:$8 sps:$4 sm:$0xff]  }
 0xdd5   : > { %5755 = vmatprep.mubr.bf16.mxu1 %v4855_v39  ;;  %5771 = vmatpush1.bf16.msra.mxu1 %v7745_v43  ;;  %v4785_v14 = vmul.f32 0.5, %v4737_v53  ;;  %v10577_v39 = vmul.f32 %v4784_v30, %v10445_v33  ;;  %v4850_v38 = vpack.c.bf16 %v10568_v37, %v10565_v58  ;;  %v10582_v44 = vmul.f32 %v4777_v50, %v10408_v32  ;;  %v7756_v32 = vld [vmem:[%s9040_s0 + $0x254] ss:$8 sps:$4 sm:$0xff]   ;;  %v7772_v11 = vld [vmem:[%s9040_s0 + $0x2b0] ss:$8 sps:$4 sm:$0xff]   ;;  %v10959_v52 = vld [vmem:[#allocation36_spill] sm:$0xff] }
 0xdd6   : > { %5772 = vmatprep.subr.bf16.mxu1 %v7750_v19  ;;  %v8002_v10 = vpop.eup %8001  ;;  %v10585_v54 = vmul.f32 %v4778_v59, %v10404_v40  ;;  %v10588_v57 = vmul.f32 %v4786_v27, %v10449_v26  ;;  %v4779_v55 = vmul.f32 0.5, %v4731_v62  ;;  %v7766_v19 = vld [vmem:[%s9040_s0 + $0x290] ss:$8 sps:$4 sm:$0xff]   ;;  %v7777_v50 = vld [vmem:[%s9040_s0 + $0x2c4] ss:$8 sps:$4 sm:$0xff]  }
 0xdd7   : > { %v10592_v48 = vmul.f32 %v4785_v14, %v10453_v6  ;;  %v4856_v33 = vpack.c.bf16 %v10577_v39, %v10574_v61  ;;  %v4739_v1 = vadd.f32 1.0, %v8002_v10  ;;  %v10952_v6 = vpack.c.bf16 %v10232_v22, %v10229_v41  ;;  %v7757_v22 = vld [vmem:[%s9040_s0 + $0x260] ss:$8 sps:$4 sm:$0xff]   ;;  %v7780_v7 = vld [vmem:[%s9040_s0 + $0x2d4] ss:$8 sps:$4 sm:$0xff]  }
 0xdd8   : > { %v4858_v40 = vpack.c.bf16 %v10588_v57, %v10585_v54  ;;  %v10609_v43 = vmul.f32 %v4779_v55, %v10429_v15  ;;  %v7760_v15 = vld [vmem:[%s9040_s0 + $0x270] ss:$8 sps:$4 sm:$0xff]   ;;  %v7775_v5 = vld [vmem:[%s9040_s0 + $0x2c0] ss:$8 sps:$4 sm:$0xff]   ;;  %v7783_v3 = vld [vmem:[%s9040_s0 + $0x2e4] ss:$8 sps:$4 sm:$0xff]  }
 0xdd9   : > { %5773 = vmatpush1.bf16.msra.mxu1 %v7748_v0  ;;  %v4857_v26 = vpack.c.bf16 %v10592_v48, %v10582_v44  ;;  %v4787_v35 = vmul.f32 0.5, %v4739_v1  ;;  %v7778_v25 = vld [vmem:[%s9040_s0 + $0x2d0] ss:$8 sps:$4 sm:$0xff]   ;;  %v7781_v62 = vld [vmem:[%s9040_s0 + $0x2e0] ss:$8 sps:$4 sm:$0xff]  }
 0xdda   : > { %5774 = vmatprep.subr.bf16.mxu1 %v7753_v28  ;;  %v7786_v12 = vld [vmem:[%s9040_s0 + $0x2f4] ss:$8 sps:$4 sm:$0xff]   ;;  %v7784_v31 = vld [vmem:[%s9040_s0 + $0x2f0] ss:$8 sps:$4 sm:$0xff]   ;;  %v7789_v0 = vld [vmem:[%s9040_s0 + $0x304] ss:$8 sps:$4 sm:$0xff]   ;;  %v10953_v28 = vpack.c.bf16 %v10411_v4, %v10383_v29 }
 0xddb   : > { %v10612_v49 = vmul.f32 %v4787_v35, %v10480_v20  ;;  %v7763_v20 = vld [vmem:[%s9040_s0 + $0x280] ss:$8 sps:$4 sm:$0xff]   ;;  %v7792_v30 = vld [vmem:[%s9040_s0 + $0x314] ss:$8 sps:$4 sm:$0xff]   ;;  %v7790_v59 = vld [vmem:[%s9040_s0 + $0x310] ss:$8 sps:$4 sm:$0xff]  }
 0xddc   : > { %5756 = vmatmul.mubr.bf16.gmra.mrb[52].mxu1 %v10952_v6  ;;  %v7787_v53 = vld [vmem:[%s9040_s0 + $0x300] ss:$8 sps:$4 sm:$0xff]   ;;  %v7795_v27 = vld [vmem:[%s9040_s0 + $0x324] ss:$8 sps:$4 sm:$0xff]   ;;  %v7798_v10 = vld [vmem:[%s9040_s0 + $0x334] ss:$8 sps:$4 sm:$0xff]  }
 0xddd   : > { %5775 = vmatpush1.bf16.msra.mxu1 %v7751_v18  ;;  %5798 = vmatprep.mubr.bf16.mxu1 %v4841_v63  ;;  %v4859_v41 = vpack.c.bf16 %v10612_v49, %v10609_v43  ;;  %v7768_v63 = vld [vmem:[%s9040_s0 + $0x294] ss:$8 sps:$4 sm:$0xff]   ;;  %v7793_v14 = vld [vmem:[%s9040_s0 + $0x320] ss:$8 sps:$4 sm:$0xff]   ;;  %v7796_v29 = vld [vmem:[%s9040_s0 + $0x330] ss:$8 sps:$4 sm:$0xff]  }
 0xdde   : > { %5776 = vmatprep.subr.bf16.mxu1 %v7756_v32  ;;  %v7801_v4 = vld [vmem:[%s9040_s0 + $0x344] ss:$8 sps:$4 sm:$0xff]   ;;  %v7808_v61 = vld [vmem:[%s9040_s0 + $0x370] ss:$8 sps:$4 sm:$0xff]   ;;  %v7811_v51 = vld [vmem:[%s9040_s0 + $0x380] ss:$8 sps:$4 sm:$0xff]  }
 0xddf   : > { %v7813_v39 = vld [vmem:[%s9040_s0 + $0x384] ss:$8 sps:$4 sm:$0xff]   ;;  %v7816_v8 = vld [vmem:[%s9040_s0 + $0x394] ss:$8 sps:$4 sm:$0xff]   ;;  %v7817_v18 = vld [vmem:[%s9040_s0 + $0x3a0] ss:$8 sps:$4 sm:$0xff]  }
 0xde0   : > { %v7819_v44 = vld [vmem:[%s9040_s0 + $0x3a4] ss:$8 sps:$4 sm:$0xff]   ;;  %v7822_v48 = vld [vmem:[%s9040_s0 + $0x3b4] ss:$8 sps:$4 sm:$0xff]   ;;  %v7823_v55 = vld [vmem:[%s9040_s0 + $0x3c0] ss:$8 sps:$4 sm:$0xff]  }
 0xde1   : > { %5777 = vmatpush1.bf16.msra.mxu1 %v7754_v34  ;;  %v7825_v1 = vld [vmem:[%s9040_s0 + $0x3c4] ss:$8 sps:$4 sm:$0xff]   ;;  %v7828_v32 = vld [vmem:[%s9040_s0 + $0x3d4] ss:$8 sps:$4 sm:$0xff]   ;;  %v7829_v6 = vld [vmem:[%s9040_s0 + $0x3e0] ss:$8 sps:$4 sm:$0xff]  }
 0xde2   : > { %5778 = vmatprep.subr.bf16.mxu1 %v7759_v23  ;;  %v7831_v35 = vld [vmem:[%s9040_s0 + $0x3e4] ss:$8 sps:$4 sm:$0xff]   ;;  %v7834_v34 = vld [vmem:[%s9040_s0 + $0x3f4] ss:$8 sps:$4 sm:$0xff]   ;;  %v7832_v23 = vld [vmem:[%s9040_s0 + $0x3f0] ss:$8 sps:$4 sm:$0xff]  }
 0xde3   : > { %v10960_v43 = vld [vmem:[#allocation38_spill] sm:$0xff]  ;;  %v10961_v54 = vld [vmem:[#allocation39_spill] sm:$0xff] }
 0xde5   : > { %5779 = vmatpush1.bf16.msra.mxu1 %v7757_v22  ;;  %v10954_v22 = vld [vmem:[#allocation51_spill] sm:$0xff] }
 0xde6   : > { %5780 = vmatprep.subr.bf16.mxu1 %v7762_v36  ;;  %v10955_v36 = vld [vmem:[#allocation50_spill] sm:$0xff] }
 0xde9   : > { %5781 = vmatpush1.bf16.msra.mxu1 %v7760_v15  ;;  %v10956_v15 = vpack.c.bf16 %v10954_v22, %v10955_v36 }
 0xdea   : > { %5782 = vmatprep.subr.bf16.mxu1 %v7765_v2  ;;  %v4988_v2 = vld [vmem:[%s949_s9] sm:$0x3]  ;;  %s10972_s9 = sld [smem:[#allocation32_spill]] }
 0xded   : > { %5783 = vmatpush1.bf16.msra.mxu1 %v7763_v20  ;;  %v10958_v20 = vld [vmem:[#allocation37_spill] sm:$0xff] }
 0xdee   : > { %5784 = vmatprep.subr.bf16.mxu1 %v7768_v63  ;;  %v4993_v60 = vrot.slane %v4988_v2, %v10958_v20 }
 0xdf0   : > { %p7036_p5 = scmp.ne.s32.totalorder %s10972_s9, 1 }
 0xdf1   : > { %5785 = vmatpush1.bf16.msra.mxu1 %v7766_v19  ;;  %vm5927_vm3 = vcmask (!%p7036_p5), 1041409   ;;  %vm5933_vm4 = vcmask (!%p7036_p5), 1041408   ;;  %v8017_v22 = vld [vmem:[#allocation20] ss:$8 sps:$4 sm:$0xff] (!%p7036_p5)   ;;  %v8018_v36 = vld [vmem:[#allocation20 + $0x14] ss:$8 sps:$4 sm:$0xff] (!%p7036_p5)  }
 0xdf2   : > { %5786 = vmatprep.subr.bf16.mxu1 %v7771_v13  ;;  %v8023_v20 = vld [vmem:[#allocation20 + $0x20] ss:$8 sps:$4 sm:$0xff] (!%p7036_p5)   ;;  %s10973_s25 = sld [smem:[#allocation65_spill]] (!%p7036_p5)  ;;  %s10974_s26 = sld [smem:[#allocation66_spill]] (!%p7036_p5) }
 0xdf5   : > { %5787 = vmatpush1.bf16.msra.mxu1 %v7769_v47  ;;  %v10962_v47 = vld [vmem:[#allocation40_spill] sm:$0xff] }
 0xdf6   : > { %5788 = vmatprep.subr.bf16.mxu1 %v7774_v46 }
 0xdf9   : > { %5789 = vmatpush1.bf16.msra.mxu1 %v7772_v11  ;;  %v10963_v11 = vld [vmem:[#allocation41_spill] sm:$0xff] }
 0xdfa   : > { %5790 = vmatprep.subr.bf16.mxu1 %v7777_v50 }
 0xdfd   : > { %5791 = vmatpush1.bf16.msra.mxu1 %v7775_v5 }
 0xdfe   : > { %5792 = vmatprep.subr.bf16.mxu1 %v7780_v7 }
 0xe01   : > { %5793 = vmatpush1.bf16.msra.mxu1 %v7778_v25 }
 0xe02   : > { %5794 = vmatprep.subr.bf16.mxu1 %v7783_v3 }
 0xe05   : > { %5795 = vmatpush1.bf16.msra.mxu1 %v7781_v62 }
 0xe06   : > { %5796 = vmatprep.subr.bf16.mxu1 %v7786_v12  ;;  %v10964_v12 = vld [vmem:[#allocation42_spill] sm:$0xff] }
 0xe09   : > { %5797 = vmatpush1.bf16.msra.mxu1 %v7784_v31 }
 0xe0a   : > { %5829 = vmatprep.subr.bf16.mxu1 %v7789_v0 }
 0xe0c   : > { %5799 = vmatmul.mubr.bf16.vlgmr.msra.gmra.mrb[44].mxu1 %v10953_v28 }
 0xe0d   : > { %5808 = vmatprep.mubr.bf16.mxu1 %v4849_v45  ;;  %5830 = vmatpush1.bf16.msra.mxu1 %v7787_v53  ;;  %v7802_v45 = vld [vmem:[%s9040_s0 + $0x350] ss:$8 sps:$4 sm:$0xff]  }
 0xe0e   : > { %5831 = vmatprep.subr.bf16.mxu1 %v7792_v30  ;;  %v10965_v30 = vld [vmem:[#allocation43_spill] sm:$0xff] }
 0xe11   : > { %5832 = vmatpush1.bf16.msra.mxu1 %v7790_v59 }
 0xe12   : > { %5833 = vmatprep.subr.bf16.mxu1 %v7795_v27  ;;  %v10966_v27 = vld [vmem:[#allocation44_spill] sm:$0xff] }
 0xe14   : > { %5809 = vmatmul.mubr.bf16.gmra.mrb[48].mxu1 %v4848_v17  ;;  %v7810_v17 = vld [vmem:[%s9040_s0 + $0x374] ss:$8 sps:$4 sm:$0xff]  }
 0xe15   : > { %5818 = vmatprep.mubr.bf16.mxu1 %v4857_v26  ;;  %5834 = vmatpush1.bf16.msra.mxu1 %v7793_v14  ;;  %v7826_v26 = vld [vmem:[%s9040_s0 + $0x3d0] ss:$8 sps:$4 sm:$0xff]  }
 0xe16   : > { %5835 = vmatprep.subr.bf16.mxu1 %v7798_v10  ;;  %v10967_v10 = vld [vmem:[#allocation45_spill] sm:$0xff] }
 0xe19   : > { %5836 = vmatpush1.bf16.msra.mxu1 %v7796_v29 }
 0xe1a   : > { %5837 = vmatprep.subr.bf16.mxu1 %v7801_v4 }
 0xe1c   : > { %5819 = vmatmul.mubr.bf16.gmra.mrb[52].mxu1 %v4856_v33  ;;  %v7820_v33 = vld [vmem:[%s9040_s0 + $0x3b0] ss:$8 sps:$4 sm:$0xff]  }
 0xe1d   : > { %5838 = vmatpush1.bf16.msra.mxu1 %v7799_v9  ;;  %5861 = vmatprep.mubr.bf16.mxu1 %v4843_v42  ;;  %v7814_v42 = vld [vmem:[%s9040_s0 + $0x390] ss:$8 sps:$4 sm:$0xff]  }
 0xe1e   : > { %5839 = vmatprep.subr.bf16.mxu1 %v7804_v24 }
 0xe21   : > { %5840 = vmatpush1.bf16.msra.mxu1 %v7802_v45 }
 0xe22   : > { %5841 = vmatprep.subr.bf16.mxu1 %v7807_v56 }
 0xe25   : > { %5842 = vmatpush1.bf16.msra.mxu1 %v7805_v21  ;;  %v10968_v21 = vld [vmem:[#allocation46_spill] sm:$0xff] }
 0xe26   : > { %5843 = vmatprep.subr.bf16.mxu1 %v7810_v17 }
 0xe29   : > { %5844 = vmatpush1.bf16.msra.mxu1 %v7808_v61 }
 0xe2a   : > { %5845 = vmatprep.subr.bf16.mxu1 %v7813_v39 }
 0xe2d   : > { %5846 = vmatpush1.bf16.msra.mxu1 %v7811_v51  ;;  %v10969_v51 = vld [vmem:[#allocation47_spill] sm:$0xff] }
 0xe2e   : > { %5847 = vmatprep.subr.bf16.mxu1 %v7816_v8 }
 0xe31   : > { %5848 = vmatpush1.bf16.msra.mxu1 %v7814_v42 }
 0xe32   : > { %5849 = vmatprep.subr.bf16.mxu1 %v7819_v44  ;;  %v10970_v44 = vld [vmem:[#allocation48_spill] sm:$0xff] }
 0xe35   : > { %5850 = vmatpush1.bf16.msra.mxu1 %v7817_v18 }
 0xe36   : > { %5851 = vmatprep.subr.bf16.mxu1 %v7822_v48  ;;  %v10971_v48 = vld [vmem:[#allocation49_spill] sm:$0xff] }
 0xe39   : > { %5852 = vmatpush1.bf16.msra.mxu1 %v7820_v33 }
 0xe3a   : > { %5853 = vmatprep.subr.bf16.mxu1 %v7825_v1 }
 0xe3d   : > { %5854 = vmatpush1.bf16.msra.mxu1 %v7823_v55 }
 0xe3e   : > { %5855 = vmatprep.subr.bf16.mxu1 %v7828_v32 }
 0xe41   : > { %5856 = vmatpush1.bf16.msra.mxu1 %v7826_v26 }
 0xe42   : > { %5857 = vmatprep.subr.bf16.mxu1 %v7831_v35 }
 0xe45   : > { %5858 = vmatpush1.bf16.msra.mxu1 %v7829_v6 }
 0xe46   : > { %5859 = vmatprep.subr.bf16.mxu1 %v7834_v34 }
 0xe49   : > { %5860 = vmatpush1.bf16.msra.mxu1 %v7832_v23  ;;  %v8015_v23 = vld [vmem:[#allocation20 + $0x4] ss:$8 sps:$4 sm:$0xff] (!%p7036_p5)  }
 0xe4a   : > { %6220 = vmatprep.subr.bf16.mxu0 (!%p7036_p5), %v8015_v23 }
 0xe4b   : > { %6221 = vmatpush1.bf16.msra.mxu0 (!%p7036_p5), %v8017_v22 }
 0xe4c   : > { %5862 = vmatmul.mubr.bf16.vlgmr.msra.gmra.mrb[44].mxu1 %v10956_v15  ;;  %v8020_v15 = vld [vmem:[#allocation20 + $0x10] ss:$8 sps:$4 sm:$0xff] (!%p7036_p5)   ;;  %6222 = vmatprep.subr.bf16.mxu0 (!%p7036_p5), %v8018_v36 }
 0xe4d   : > { %5871 = vmatprep.mubr.bf16.mxu1 %v4851_v16  ;;  %v4997_v16 = vrot.slane %v4988_v2, %v10959_v52  ;;  %v8021_v2 = vld [vmem:[#allocation20 + $0x24] ss:$8 sps:$4 sm:$0xff] (!%p7036_p5)   ;;  %v8026_v52 = vld [vmem:[#allocation20 + $0x30] ss:$8 sps:$4 sm:$0xff] (!%p7036_p5)  }
 0xe4f   : > { %6223 = vmatpush1.bf16.msra.mxu0 (!%p7036_p5), %v8020_v15 }
 0xe50   : > { %6224 = vmatprep.subr.bf16.mxu0 (!%p7036_p5), %v8021_v2 }
 0xe53   : > { %6225 = vmatpush1.bf16.msra.mxu0 (!%p7036_p5), %v8023_v20 }
 0xe54   : > { %5872 = vmatmul.mubr.bf16.gmra.mrb[48].mxu1 %v4850_v38 }
 0xe55   : > { %5881 = vmatprep.mubr.bf16.mxu1 %v4859_v41 }
 0xe5c   : > { %5882 = vmatmul.mubr.bf16.gmra.mrb[52].mxu1 %v4858_v40 }
 0xf1f   : > { %v5863_v63 = vpop.f32.mrb[44].mxu1 }
 0xf20   : > { %v7208_v58 = vadd.f32 %v5863_v63, %v4993_v60  ;;  %v5865_v37 = vpop.f32.mrb[45].mxu1  ;;  %v8029_v63 = vld [vmem:[#allocation20 + $0x40] ss:$8 sps:$4 sm:$0xff] (!%p7036_p5)  }
 0xf21   : > { %v7209_v38 = vadd.f32 %v5865_v37, %v4997_v16  ;;  %v5867_v19 = vpop.f32.mrb[46].mxu1  ;;  %v8032_v37 = vld [vmem:[#allocation20 + $0x50] ss:$8 sps:$4 sm:$0xff] (!%p7036_p5)  }
 0xf22   : > { %v5892_v49 = vadd.f32 %v7208_v58, %v10960_v43  ;;  %v7210_v41 = vadd.f32 %v5867_v19, %v4993_v60  ;;  %v5869_v13 = vpop.f32.mrb[47].mxu1  ;;  %v8030_v58 = vld [vmem:[#allocation20 + $0x54] ss:$8 sps:$4 sm:$0xff] (!%p7036_p5)   ;;  %v8035_v19 = vld [vmem:[#allocation20 + $0x60] ss:$8 sps:$4 sm:$0xff] (!%p7036_p5)  }
 0xf23   : > { %v5893_v57 = vadd.f32 %v7209_v38, %v10961_v54  ;;  %v7211_v40 = vadd.f32 %v5869_v13, %v4997_v16  ;;  %v8033_v38 = vld [vmem:[#allocation20 + $0x64] ss:$8 sps:$4 sm:$0xff] (!%p7036_p5)   ;;  %v8036_v43 = vld [vmem:[#allocation20 + $0x74] ss:$8 sps:$4 sm:$0xff] (!%p7036_p5)  }
 0xf24   : > { %5904 = vst [vmem:[#allocation2] sm:$0xff] %v5892_v49  ;;  %v5894_v46 = vadd.f32 %v7210_v41, %v10962_v47  ;;  %v8038_v49 = vld [vmem:[#allocation20 + $0x70] ss:$8 sps:$4 sm:$0xff] (!%p7036_p5)  }
 0xf25   : > { %5905 = vst [vmem:[#allocation2 + $0x8] sm:$0xff] %v5893_v57  ;;  %v5895_v50 = vadd.f32 %v7211_v40, %v10963_v11 }
 0xf26   : > { %5906 = vst [vmem:[#allocation2 + $0x10] sm:$0xff] %v5894_v46 }
 0xf27   : > { %5907 = vst [vmem:[#allocation2 + $0x18] sm:$0xff] %v5895_v50  ;;  %v5873_v5 = vpop.f32.mrb[48].mxu1 }
 0xf28   : > { %v7212_v7 = vadd.f32 %v5873_v5, %v4993_v60  ;;  %v5875_v25 = vpop.f32.mrb[49].mxu1 }
 0xf29   : > { %v7213_v3 = vadd.f32 %v5875_v25, %v4997_v16  ;;  %v5877_v62 = vpop.f32.mrb[50].mxu1 }
 0xf2a   : > { %v10713_v31 = vadd.f32 %v7212_v7, %v10964_v12  ;;  %v7214_v0 = vadd.f32 %v5877_v62, %v4993_v60  ;;  %v5879_v53 = vpop.f32.mrb[51].mxu1 }
 0xf2b   : > { %v10716_v28 = vadd.f32 %v7213_v3, %v10965_v30  ;;  %v7215_v59 = vadd.f32 %v5879_v53, %v4997_v16 }
 0xf2c   : > { %5908 = vst [vmem:[#allocation2 + $0x20] sm:$0xff] %v10713_v31  ;;  %v5898_v14 = vadd.f32 %v7214_v0, %v10966_v27  ;;  %v8044_v27 = vld [vmem:[#allocation20 + $0x90] ss:$8 sps:$4 sm:$0xff] (!%p7036_p5)  }
 0xf2d   : > { %5909 = vst [vmem:[#allocation2 + $0x28] sm:$0xff] %v10716_v28  ;;  %v5899_v29 = vadd.f32 %v7215_v59, %v10967_v10  ;;  %v8042_v59 = vld [vmem:[#allocation20 + $0x94] ss:$8 sps:$4 sm:$0xff] (!%p7036_p5)   ;;  %v8047_v10 = vld [vmem:[#allocation20 + $0xa0] ss:$8 sps:$4 sm:$0xff] (!%p7036_p5)  }
 0xf2e   : > { %5910 = vst [vmem:[#allocation2 + $0x30] sm:$0xff] %v5898_v14  ;;  %v8045_v14 = vld [vmem:[#allocation20 + $0xa4] ss:$8 sps:$4 sm:$0xff] (!%p7036_p5)  }
 0xf2f   : > { %5911 = vst [vmem:[#allocation2 + $0x38] sm:$0xff] %v5899_v29  ;;  %v5883_v4 = vpop.f32.mrb[52].mxu1  ;;  %v8048_v29 = vld [vmem:[#allocation20 + $0xb4] ss:$8 sps:$4 sm:$0xff] (!%p7036_p5)  }
 0xf30   : > { %v7216_v9 = vadd.f32 %v5883_v4, %v4993_v60  ;;  %v5885_v24 = vpop.f32.mrb[53].mxu1  ;;  %v8050_v4 = vld [vmem:[#allocation20 + $0xb0] ss:$8 sps:$4 sm:$0xff] (!%p7036_p5)  }
 0xf31   : > { %v7217_v45 = vadd.f32 %v5885_v24, %v4997_v16  ;;  %v5887_v56 = vpop.f32.mrb[54].mxu1  ;;  %5919 = sbr.rel (%p7036_p5) target bundleno = 4610 (0x1202), region = 144  ;;  %v8053_v24 = vld [vmem:[#allocation20 + $0xc0] ss:$8 sps:$4 sm:$0xff] (!%p7036_p5)  }
 0xf32   : > { %v5900_v17 = vadd.f32 %v7216_v9, %v10968_v21  ;;  %v7218_v61 = vadd.f32 %v5887_v56, %v4993_v60  ;;  %v5889_v39 = vpop.f32.mrb[55].mxu1  ;;  %v8024_v60 = vld [vmem:[#allocation20 + $0x34] ss:$8 sps:$4 sm:$0xff] (!%p7036_p5)   ;;  %v8051_v9 = vld [vmem:[#allocation20 + $0xc4] ss:$8 sps:$4 sm:$0xff] (!%p7036_p5)  }
 0xf33   : > { %v5901_v8 = vadd.f32 %v7217_v45, %v10969_v51  ;;  %v7219_v42 = vadd.f32 %v5889_v39, %v4997_v16  ;;  %6226 = vmatprep.subr.bf16.mxu0 (!%p7036_p5), %v8024_v60  ;;  %v8027_v16 = vld [vmem:[#allocation20 + $0x44] ss:$8 sps:$4 sm:$0xff] (!%p7036_p5)   ;;  %v8054_v45 = vld [vmem:[#allocation20 + $0xd4] ss:$8 sps:$4 sm:$0xff] (!%p7036_p5)   ;;  %v8056_v56 = vld [vmem:[#allocation20 + $0xd0] ss:$8 sps:$4 sm:$0xff] (!%p7036_p5)  }
 0xf34   : > { %5912 = vst [vmem:[#allocation2 + $0x40] sm:$0xff] %v5900_v17  ;;  %v5902_v18 = vadd.f32 %v7218_v61, %v10970_v44  ;;  %6227 = vmatpush1.bf16.msra.mxu0 (!%p7036_p5), %v8026_v52  ;;  %v8057_v21 = vld [vmem:[#allocation20 + $0xe4] ss:$8 sps:$4 sm:$0xff] (!%p7036_p5)   ;;  %v8059_v17 = vld [vmem:[#allocation20 + $0xe0] ss:$8 sps:$4 sm:$0xff] (!%p7036_p5)  }
 0xf35   : > { %5913 = vst [vmem:[#allocation2 + $0x48] sm:$0xff] %v5901_v8  ;;  %v5903_v33 = vadd.f32 %v7219_v42, %v10971_v48  ;;  %6228 = vmatprep.subr.bf16.mxu0 (!%p7036_p5), %v8027_v16  ;;  %v8060_v61 = vld [vmem:[#allocation20 + $0xf4] ss:$8 sps:$4 sm:$0xff] (!%p7036_p5)   ;;  %v8062_v39 = vld [vmem:[#allocation20 + $0xf0] ss:$8 sps:$4 sm:$0xff] (!%p7036_p5)  }
 0xf36   : > { %5914 = vst [vmem:[#allocation2 + $0x50] sm:$0xff] %v5902_v18  ;;  %v5926_v1 = vrot.slane (!%p7036_p5), %v5902_v18, 7  ;;  %v5920_v44 = vld [vmem:[%s10973_s25] sm:$0x3] (!%p7036_p5)  ;;  %v10975_v48 = vld [vmem:[#allocation37_spill] sm:$0xff] (!%p7036_p5) }
 0xf37   : > { %5915 = vst [vmem:[#allocation2 + $0x58] sm:$0xff] %v5903_v33  ;;  %v5929_v55 = vrot.slane (!%p7036_p5), %v5903_v33, 7 }
 0xf38   : > { %v5928_v32 = vsel %vm5927_vm3, %v5926_v1, %v10713_v31  ;;  %6229 = vmatpush1.bf16.msra.mxu0 %v8029_v63  ;;  %v10976_v1 = vld [vmem:[#allocation36_spill] sm:$0xff] }
 0xf39   : > { %v5930_v26 = vsel %vm5927_vm3, %v5929_v55, %v10716_v28  ;;  %v5934_v35 = vsel %vm5933_vm4, %v5928_v32, 0.0  ;;  %6230 = vmatprep.subr.bf16.mxu0 %v8030_v58  ;;  %v5986_v55 = vrot.slane %v5920_v44, %v10976_v1 }
 0xf3a   : > { %v5935_v6 = vsel %vm5933_vm4, %v5930_v26, 0.0 }
 0xf3b   : > { %v5936_v34 = vadd.f32 %v5935_v6, %v5934_v35 }
 0xf3c   : > { %6231 = vmatpush1.bf16.msra.mxu0 %v8032_v37 }
 0xf3d   : > { %5937 = vadd.xlane.f32.xlu0 %v5936_v34  ;;  %6232 = vmatprep.subr.bf16.mxu0 %v8033_v38 }
 0xf40   : > { %6233 = vmatpush1.bf16.msra.mxu0 %v8035_v19 }
 0xf41   : > { %6234 = vmatprep.subr.bf16.mxu0 %v8036_v43 }
 0xf44   : > { %6235 = vmatpush1.bf16.msra.mxu0 %v8038_v49 }
 0xfca   : > { %v5938_v41 = vpop.xlane.xlu0 %5937 }
 0xfcb   : > { %v5939_v13 = vmul.f32 0.00390625, %v5938_v41 }
 0xfcd   : > { %v5941_v54 = vrot.slane %v5939_v13, 1  ;;  %v5944_v57 = vsub.f32 %v10713_v31, %v5939_v13  ;;  %v5945_v40 = vsub.f32 %v10716_v28, %v5939_v13  ;;  %v8039_v31 = vld [vmem:[#allocation20 + $0x84] ss:$8 sps:$4 sm:$0xff]   ;;  %v8041_v28 = vld [vmem:[#allocation20 + $0x80] ss:$8 sps:$4 sm:$0xff]  }
 0xfce   : > { %6236 = vmatprep.subr.bf16.mxu0 %v8039_v31 }
 0xfcf   : > { %v5946_v47 = vsub.f32 %v5902_v18, %v5941_v54  ;;  %v5947_v46 = vsub.f32 %v5903_v33, %v5941_v54  ;;  %v5948_v5 = vmul.f32 %v5944_v57, %v5944_v57  ;;  %v5949_v7 = vmul.f32 %v5945_v40, %v5945_v40  ;;  %6237 = vmatpush1.bf16.msra.mxu0 %v8041_v28  ;;  %v5921_v18 = vld [vmem:[%s10974_s26] sm:$0x3] }
 0xfd0   : > { %6238 = vmatprep.subr.bf16.mxu0 %v8042_v59  ;;  %v5982_v33 = vrot.slane %v5920_v44, %v10975_v48  ;;  %v5997_v26 = vrot.slane %v5921_v18, %v10975_v48  ;;  %v6001_v34 = vrot.slane %v5921_v18, %v10976_v1 }
 0xfd1   : > { %v5950_v11 = vmul.f32 %v5946_v47, %v5946_v47  ;;  %v5951_v50 = vmul.f32 %v5947_v46, %v5947_v46 }
 0xfd3   : > { %v5956_v25 = vrot.slane %v5950_v11, 7  ;;  %v5958_v3 = vrot.slane %v5951_v50, 7  ;;  %6239 = vmatpush1.bf16.msra.mxu0 %v8044_v27 }
 0xfd4   : > { %6240 = vmatprep.subr.bf16.mxu0 %v8045_v14 }
 0xfd5   : > { %v5957_v62 = vsel %vm5927_vm3, %v5956_v25, %v5948_v5  ;;  %v5959_v12 = vsel %vm5927_vm3, %v5958_v3, %v5949_v7 }
 0xfd6   : > { %v5962_v0 = vsel %vm5933_vm4, %v5957_v62, 0.0  ;;  %v5963_v53 = vsel %vm5933_vm4, %v5959_v12, 0.0 }
 0xfd7   : > { %v5964_v30 = vadd.f32 %v5963_v53, %v5962_v0  ;;  %6241 = vmatpush1.bf16.msra.mxu0 %v8047_v10 }
 0xfd8   : > { %6242 = vmatprep.subr.bf16.mxu0 %v8048_v29 }
 0xfd9   : > { %5965 = vadd.xlane.f32.xlu0 %v5964_v30 }
 0xfdb   : > { %6243 = vmatpush1.bf16.msra.mxu0 %v8050_v4 }
 0xfdc   : > { %6244 = vmatprep.subr.bf16.mxu0 %v8051_v9 }
 0xfdf   : > { %6245 = vmatpush1.bf16.msra.mxu0 %v8053_v24 }
 0xfe0   : > { %6246 = vmatprep.subr.bf16.mxu0 %v8054_v45 }
 0xfe3   : > { %6247 = vmatpush1.bf16.msra.mxu0 %v8056_v56 }
 0xfe4   : > { %6248 = vmatprep.subr.bf16.mxu0 %v8057_v21 }
 0xfe7   : > { %6249 = vmatpush1.bf16.msra.mxu0 %v8059_v17 }
 0xfe8   : > { %6250 = vmatprep.subr.bf16.mxu0 %v8060_v61 }
 0xfeb   : > { %6251 = vmatpush1.bf16.msra.mxu0 %v8062_v39 }
0x1066   : > { %v5966_v51 = vpop.xlane.xlu0 %5965 }
0x1067   : > { %v5967_v8 = vmul.f32 0.00390625, %v5966_v51 }
0x1069   : > { %v5968_v42 = vadd.f32 1e-06, %v5967_v8 }
0x106b   : > { %8063 = vrsqrt.f32 %v5968_v42 }
0x1075   : > { %v8064_v32 = vpop.eup %8063 }
0x1076   : > { %v5971_v35 = vrot.slane %v8064_v32, 1  ;;  %v5975_v6 = vmul.f32 %v8064_v32, %v5945_v40  ;;  %v5974_v23 = vmul.f32 %v8064_v32, %v5944_v57 }
0x1078   : > { %v5977_v22 = vmul.f32 %v5971_v35, %v5947_v46  ;;  %v5990_v36 = vmul.f32 %v5986_v55, %v5975_v6  ;;  %v5976_v15 = vmul.f32 %v5971_v35, %v5946_v47  ;;  %v5989_v2 = vmul.f32 %v5982_v33, %v5974_v23 }
0x107a   : > { %v5992_v20 = vmul.f32 %v5986_v55, %v5977_v22  ;;  %v6005_v60 = vadd.f32 %v6001_v34, %v5990_v36  ;;  %v5991_v52 = vmul.f32 %v5982_v33, %v5976_v15  ;;  %v6004_v16 = vadd.f32 %v5997_v26, %v5989_v2 }
0x107c   : > { %v6007_v63 = vadd.f32 %v6001_v34, %v5992_v20  ;;  %v6006_v58 = vadd.f32 %v5997_v26, %v5991_v52  ;;  %v6009_v37 = vpack.c.bf16 %v6005_v60, %v6005_v60  ;;  %v6008_v19 = vpack.c.bf16 %v6004_v16, %v6004_v16 }
0x107e   : > { %v6011_v38 = vpack.c.bf16 %v6007_v63, %v6007_v63  ;;  %v6010_v43 = vpack.c.bf16 %v6006_v58, %v6006_v58  ;;  %v6049_v13 = vunpack.c.l.b16 %v6009_v37  ;;  %v6048_v40 = vunpack.c.l.b16 %v6008_v19 }
0x1080   : > { %v6051_v49 = vunpack.c.l.b16 %v6011_v38  ;;  %v6050_v41 = vunpack.c.l.b16 %v6010_v43 }
0x1082   : > { %v6054_v54 = vrot.slane %v6051_v49, 7  ;;  %v6052_v57 = vrot.slane %v6050_v41, 7 }
0x1084   : > { %v6055_v46 = vsel %vm5927_vm3, %v6054_v54, %v6049_v13  ;;  %v6053_v47 = vsel %vm5927_vm3, %v6052_v57, %v6048_v40 }
0x1085   : > { %v6057_v11 = vpack.c.b16 %v6055_v46, %v6055_v46  ;;  %v6056_v50 = vpack.c.b16 %v6053_v47, %v6053_v47 }
0x1087   : > { %6252 = vmatprep.mubr.bf16.mxu0 %v6057_v11 }
0x1088   : > { %6253 = vmatmul.mubr.bf16.vlgmr.msra.gmra.mrb[0].mxu0 %v6056_v50 }
0x115b   : > { %v6254_v5 = vpop.f32.mrb[0].mxu0 }
0x115c   : > { %v6261_v7 = vmul.f32 %v6254_v5, %v6254_v5  ;;  %v6256_v25 = vpop.f32.mrb[1].mxu0 }
0x115d   : > { %v6262_v3 = vmul.f32 %v6256_v25, %v6256_v25  ;;  %v6258_v62 = vpop.f32.mrb[2].mxu0 }
0x115e   : > { %v6259_v12 = vpop.f32.mrb[3].mxu0  ;;  %v6263_v0 = vsel %vm5933_vm4, %v6261_v7, 0.0 }
0x115f   : > { %v6264_v53 = vsel %vm5933_vm4, %v6262_v3, 0.0 }
0x1160   : > { %v6265_v30 = vadd.f32 %v6264_v53, %v6263_v0 }
0x1162   : > { %6266 = vadd.xlane.f32.xlu1 %v6265_v30 }
0x11ef   : > { %v6267_v31 = vpop.xlane.xlu1 %6266 }
0x11f0   : > { %v6268_v28 = vadd.f32 1e-12, %v6267_v31 }
0x11f2   : > { %8065 = vrsqrt.f32 %v6268_v28 }
0x11fc   : > { %v8066_v59 = vpop.eup %8065 }
0x11fd   : > { %v6270_v27 = vmul.f32 %v8066_v59, %v6254_v5  ;;  %v6271_v14 = vmul.f32 %v8066_v59, %v6256_v25 }
0x11ff   : > { %v6274_v10 = vcombine.low %v6270_v27, %v6271_v14 }
0x1201   : > { %7069 = vst.sshfl [vmem:[#allocation21] sm:$0x33 pattern:$0x76325410] %v6274_v10 }
0x1202 PF: > { %s10977_s1 = sld [smem:[#allocation32_spill]]  ;;  %s8500_s6 = smov [#allocation21]  }
0x1203   : > { %s6291_s5 = sshll.u32 %s8500_s6, 4  ;;  %s6292_s5 = int_to_ptr.vmem [resolvable:$true] %s6291_s5 }
0x1204   : > { %s8389_s10 = scalar_lea.vmem %s6292_s5, 64  ;;  %p8396_p11 = scmp.lt.s32.totalorder %s6292_s5, %s6292_s5 }
0x1205   : > { %p8390_p7 = scmp.ne.s32.totalorder %s6292_s5, %s8389_s10  ;;  %p8397_p10 = scmp.lt.s32.totalorder %s8389_s10, %s8389_s10 }
0x1207   : > { %p8398_p1 = por %p8397_p10, %p8396_p11 }
0x1208   : > { %p7354_p0 = scmp.eq.s32.totalorder %s10977_s1, 1 }
0x120a   : > { %p8391_p3 = pnand %p8390_p7, %p7354_p0 }
0x120c   : > { %p8392_p13 = pneg %p8391_p3 }
0x120e   : > { %p8399_p4 = pnand %p8398_p1, %p8392_p13 }
0x1210   : > { %8402 = shalt.err (!%p8399_p4)
}
0x1211   : > { %s10978_s29 = sld [smem:[#allocation68_spill]] }
0x1217   : > { %s10979_s15 = smov %s10978_s29  ;;  %s8403_s16 = scalar_lea.hbm %s10978_s29, 64 }
0x1218   : > { %p8404_p8 = scmp.ne.s32.totalorder %s10979_s15, %s8403_s16  ;;  %p8409_p9 = scmp.lt.u32.totalorder %s8403_s16, %s10979_s15 }
0x121a   : > { %p8405_p6 = pnand %p8404_p8, %p7354_p0 }
0x121c   : > { %p8406_p2 = pneg %p8405_p6 }
0x121e   : > { %p8411_p12 = pnand %p8409_p9, %p8406_p2 }
0x1220   : > { %8414 = shalt.err (!%p8411_p12)
}
0x1221   : > { %7307 = dma.vmem_to_hbm [thread:$0]  (%p7354_p0), %s6292_s5, 64, %s10979_s15, [#allocation5]  }
0x1222   : > { %8460 = dma.done.wait (%p7354_p0), [#allocation5], 64  }
0x1223   : > { %8462 = vsyncadd (%p7354_p0), [#allocation5], 4294967232 }
0x1224 PF: > { %s10980_s30 = sld [smem:[#allocation34_spill]]  ;;  %s10981_s27 = sld [smem:[#allocation30_spill]] }
0x1225   : > { %s10982_s28 = sld [smem:[#allocation31_spill]]  ;;  %s10983_s29 = sld [smem:[#allocation35_spill]] }
0x122a   : > { %p40_p5 = scmp.ge.s32.totalorder %s10980_s30, 4  }
0x122c   :  { %42 = sbr.rel (!%p40_p5) target bundleno = 30 (0x1e), region = 241 }
0x1233   :  { %6304 = vsyncpa [#allocation4], 1 }
0x1234   :  { %6306 = vsyncpa [#allocation4 + $0x1], 1 }
0x1235   :  { %6307 = vsyncpa [#allocation7], 1 }
0x1236   :  { %6308 = vsyncpa [#allocation10], 1 }
0x1237   :  { %6310 = vsyncpa [#allocation10 + $0x1], 1 }
0x1238   :  { %6311 = vsyncpa [#allocation13], 1 }
0x1239   :  { %6313 = vsyncpa [#allocation13 + $0x1], 1 }
0x123a   :  { %6314 = vsyncpa [#allocation16], 1 }
0x123b   :  { %6316 = vsyncpa [#allocation16 + $0x1], 1 }
0x123c   :  { %6317 = vsyncpa [#allocation19], 1 }
0x123d   :  { %6319 = vsyncpa [#allocation19 + $0x1], 1 }
0x123e   :  { %6320 = vsyncpa [#allocation5], 1 }
0x123f   :  { %6322 = vsyncpa [#allocation5 + $0x1], 1 }

</bundles_post_ra>
